<compile_context>
chip_gen: v7x
topology: tpu7x:2x2x1
jax: 0.10.0
libtpu: 0.0.40
codegen_flags: <defaults>
</compile_context>

<pallas_src>
import functools
import math
from typing import NamedTuple

import jax
import jax.numpy as jnp
from jax.experimental import pallas as pl
from jax.experimental.pallas import tpu as pltpu


class FusedCfg(NamedTuple):
    in_c: int
    height: int
    width: int
    stem_splits: tuple   # lane boundaries of (p1 | p2-head | p3-head) in stem
    cat_splits: tuple    # lane boundaries of (p1 | p2 | p3 | p4) in concat
    out_c: int


# ----------------------------------------------------------------------------
# The single fused kernel
# ----------------------------------------------------------------------------

def _fused_inception_kernel(
        x_ref,
        stem_m, stem_b, p2b_m, p2b_b, p2c_m, p2c_b,
        p3b_m, p3b_b, p3c_m, p3c_b, p3d_m, p3d_b, p3e_m, p3e_b,
        p4_m, p4_b, fin_m, fin_b, spl_ref, smn_ref,
        o_ref, cat_ref, *, cfg):
    """Whole InceptionAttention forward for one batch element (H, W*C layout)."""
    f32 = jnp.float32
    x = x_ref[0]                                   # (H, W*in_c)
    h = x.shape[0]

    def conv(a, m_ref, b_ref, ph):
        # a: (H_in, W_in*Cin); m_ref: (kh, W_in*Cin, W_out*Cout); b_ref: (1, W_out*Cout)
        kh = m_ref.shape[0]
        h_in, k_in = a.shape
        h_out = h_in + 2 * ph - kh + 1
        if ph:
            z = jnp.zeros((ph, k_in), f32)
            a = jnp.concatenate([z, a, z], axis=0)
        acc = jnp.dot(a[0:h_out, :], m_ref[0], preferred_element_type=f32)
        for dh in range(1, kh):
            acc = acc + jnp.dot(a[dh:dh + h_out, :], m_ref[dh],
                                preferred_element_type=f32)
        return acc + b_ref[...]

    def relu(t):
        return jnp.maximum(t, 0.0)

    # --- merged 1x1 stem: p1, p2[0], p3[0] share one matmul over x -----------
    stem = relu(conv(x, stem_m, stem_b, 0))
    s1, s2, s3 = cfg.stem_splits
    p1 = stem[:, 0:s1]
    a2 = stem[:, s1:s2]
    a3 = stem[:, s2:s3]

    # --- branch p2: (1,7) pad 1 -> (7,1) pad 2, ReLU after each ---------------
    p2 = relu(conv(a2, p2b_m, p2b_b, 1))
    p2 = relu(conv(p2, p2c_m, p2c_b, 2))

    # --- branch p3: (7,1)p1 -> (1,7)p2 -> (7,1)p1 -> (1,7)p2, ReLU each -------
    p3 = relu(conv(a3, p3b_m, p3b_b, 1))
    p3 = relu(conv(p3, p3c_m, p3c_b, 2))
    p3 = relu(conv(p3, p3d_m, p3d_b, 1))
    p3 = relu(conv(p3, p3e_m, p3e_b, 2))

    # --- branch p4: 3x3 / stride 1 / pad 1 max-pool, then 1x1 conv + ReLU -----
    wc = x.shape[1]
    ic = cfg.in_c
    lane = jax.lax.broadcasted_iota(jnp.int32, x.shape, 1)
    left = jnp.where(lane < ic, -jnp.inf,
                     jnp.dot(x, spl_ref[...], preferred_element_type=f32))
    right = jnp.where(lane >= wc - ic, -jnp.inf,
                      jnp.dot(x, smn_ref[...], preferred_element_type=f32))
    hmax = jnp.maximum(x, jnp.maximum(left, right))        # horizontal 3-max
    ninf = jnp.full((1, wc), -jnp.inf, f32)
    vpad = jnp.concatenate([ninf, hmax, ninf], axis=0)
    pooled = jnp.maximum(jnp.maximum(vpad[0:h], vpad[1:h + 1]),
                         vpad[2:h + 2])                     # vertical 3-max
    p4 = relu(conv(pooled, p4_m, p4_b, 0))

    # --- concat branches into a zero-row-padded VMEM canvas, final 3x3 conv ---
    e1, e2, e3, e4 = cfg.cat_splits
    zrow = jnp.zeros((1, e4), f32)
    cat_ref[0:1, :] = zrow
    cat_ref[h + 1:h + 2, :] = zrow
    cat_ref[1:h + 1, 0:e1] = p1
    cat_ref[1:h + 1, e1:e2] = p2
    cat_ref[1:h + 1, e2:e3] = p3
    cat_ref[1:h + 1, e3:e4] = p4

    acc = jnp.dot(cat_ref[0:h, :], fin_m[0], preferred_element_type=f32)
    for dh in range(1, fin_m.shape[0]):
        acc = acc + jnp.dot(cat_ref[dh:dh + h, :], fin_m[dh],
                            preferred_element_type=f32)
    o_ref[0] = (acc + fin_b[...]).astype(o_ref.dtype)


def _const_idx(i, nd):
    return (0,) * nd


def fused_forward(weights, x_nchw, *, cfg):
    """NCHW in -> NCHW out; one pallas_call for the whole module."""
    n, c, h, w = x_nchw.shape
    x2d = jnp.transpose(x_nchw, (0, 2, 3, 1)).reshape(n, h, w * c)
    cat_w = cfg.cat_splits[-1]
    out_c = cfg.out_c

    in_specs = [pl.BlockSpec((1, h, w * c), lambda i: (i, 0, 0))]
    for arr in weights:
        in_specs.append(
            pl.BlockSpec(arr.shape, functools.partial(_const_idx, nd=arr.ndim)))

    out2d = pl.pallas_call(
        functools.partial(_fused_inception_kernel, cfg=cfg),
        out_shape=jax.ShapeDtypeStruct((n, h, w * out_c), jnp.float32),
        grid=(n,),
        in_specs=in_specs,
        out_specs=pl.BlockSpec((1, h, w * out_c), lambda i: (i, 0, 0)),
        scratch_shapes=[pltpu.VMEM((h + 2, cat_w), jnp.float32)],
        compiler_params=pltpu.CompilerParams(
            dimension_semantics=("parallel",)),
    )(x2d, *weights)

    return jnp.transpose(out2d.reshape(n, h, w, out_c), (0, 3, 1, 2))


# ----------------------------------------------------------------------------
# Host-side weight packing: conv -> per-kernel-row banded matrices
# ----------------------------------------------------------------------------

def _layer_mats(w, b, *, w_in, pw):
    """w: (kh, kw, Cin, Cout) HWIO; returns (M, bias_row, w_out) where
    M[dh, wi*Cin+ci, wo*Cout+co] = w[dh, wi-wo+pw, ci, co] (zero if out of range)."""
    kh, kw, cin, cout = w.shape
    w_out = w_in + 2 * pw - kw + 1
    mats = []
    for dh in range(kh):
        m = jnp.zeros((w_in * cin, w_out * cout), jnp.float32)
        for dw in range(kw):
            shift = jnp.eye(w_in, w_out, k=pw - dw, dtype=jnp.float32)
            m = m + jnp.kron(shift, w[dh, dw])
        mats.append(m)
    brow = jnp.tile(b, w_out)[None, :].astype(jnp.float32)
    return jnp.stack(mats), brow, w_out


def pack_params(params, *, height, width, in_c, c1, c2, c3, c4):
    W = width

    # merged 1x1 stems (p1, p2[0], p3[0])
    m1, b1, _ = _layer_mats(*params["p1"][0], w_in=W, pw=0)
    m2, b2, _ = _layer_mats(*params["p2"][0], w_in=W, pw=0)
    m3, b3, _ = _layer_mats(*params["p3"][0], w_in=W, pw=0)
    stem_m = jnp.concatenate([m1, m2, m3], axis=2)
    stem_b = jnp.concatenate([b1, b2, b3], axis=1)

    # branch p2: (1,7) pad 1 -> (7,1) pad 2
    p2b_m, p2b_b, wcur = _layer_mats(*params["p2"][1], w_in=W, pw=1)
    p2c_m, p2c_b, _ = _layer_mats(*params["p2"][2], w_in=wcur, pw=2)

    # branch p3: (7,1)p1 -> (1,7)p2 -> (7,1)p1 -> (1,7)p2
    p3b_m, p3b_b, wcur = _layer_mats(*params["p3"][1], w_in=W, pw=1)
    p3c_m, p3c_b, wcur = _layer_mats(*params["p3"][2], w_in=wcur, pw=2)
    p3d_m, p3d_b, wcur = _layer_mats(*params["p3"][3], w_in=wcur, pw=1)
    p3e_m, p3e_b, _ = _layer_mats(*params["p3"][4], w_in=wcur, pw=2)

    # branch p4: 1x1 conv after the max-pool
    p4_m, p4_b, _ = _layer_mats(*params["p4"][0], w_in=W, pw=0)

    # final 3x3 conv over the (branch-block-major) concat canvas
    wf, bf = params["final"]
    sizes = (c1[0], c2[-1], c3[-1], c4[0])
    parts, off, fin_b = [], 0, None
    for sz in sizes:
        mi, fin_b, _ = _layer_mats(wf[:, :, off:off + sz, :], bf, w_in=W, pw=1)
        parts.append(mi)
        off += sz
    fin_m = jnp.concatenate(parts, axis=1)

    # lane-shift matrices for the max-pool's horizontal neighbours
    wc = W * in_c
    spl = jnp.eye(wc, wc, k=in_c, dtype=jnp.float32)    # picks x[:, l - in_c]
    smn = jnp.eye(wc, wc, k=-in_c, dtype=jnp.float32)   # picks x[:, l + in_c]

    weights = (stem_m, stem_b, p2b_m, p2b_b, p2c_m, p2c_b,
               p3b_m, p3b_b, p3c_m, p3c_b, p3d_m, p3d_b, p3e_m, p3e_b,
               p4_m, p4_b, fin_m, fin_b, spl, smn)

    s1 = W * c1[0]
    s2 = s1 + W * c2[0]
    s3 = s2 + W * c3[0]
    e1 = W * c1[0]
    e2 = e1 + W * c2[-1]
    e3 = e2 + W * c3[-1]
    e4 = e3 + W * c4[0]
    cfg = FusedCfg(in_c=in_c, height=height, width=W,
                   stem_splits=(s1, s2, s3),
                   cat_splits=(e1, e2, e3, e4), out_c=2)
    return weights, cfg


# ----------------------------------------------------------------------------
# Parameters (deterministic init mimicking PyTorch's default uniform bound)
# ----------------------------------------------------------------------------

def _init_conv(key, kh, kw, cin, cout):
    fan_in = kh * kw * cin
    bound = 1.0 / math.sqrt(fan_in)
    kw_, kb_ = jax.random.split(key)
    w = jax.random.uniform(kw_, (kh, kw, cin, cout), jnp.float32, -bound, bound)
    b = jax.random.uniform(kb_, (cout,), jnp.float32, -bound, bound)
    return w, b


def init_params(key, in_c, c1, c2, c3, c4):
    ks = jax.random.split(key, 11)
    params = {
        "p1": [_init_conv(ks[0], 1, 1, in_c, c1[0])],
        "p2": [
            _init_conv(ks[1], 1, 1, in_c, c2[0]),
            _init_conv(ks[2], 1, 7, c2[0], c2[1]),
            _init_conv(ks[3], 7, 1, c2[1], c2[2]),
        ],
        "p3": [
            _init_conv(ks[4], 1, 1, in_c, c3[0]),
            _init_conv(ks[5], 7, 1, c3[0], c3[0]),
            _init_conv(ks[6], 1, 7, c3[0], c3[1]),
            _init_conv(ks[7], 7, 1, c3[1], c3[1]),
            _init_conv(ks[8], 1, 7, c3[1], c3[2]),
        ],
        "p4": [_init_conv(ks[9], 1, 1, in_c, c4[0])],
    }
    out_c = c1[0] + c2[-1] + c3[-1] + c4[0]
    params["final"] = _init_conv(ks[10], 3, 3, out_c, 2)
    return params


# ----------------------------------------------------------------------------
# Pure-JAX reference (no Pallas) for correctness checking
# ----------------------------------------------------------------------------

def _conv_ref(x, w, b, ph, pw, relu):
    kh, kw, cin, cout = w.shape
    xp = jnp.pad(x, ((0, 0), (ph, ph), (pw, pw), (0, 0)))
    n, hp, wp, _ = xp.shape
    ho, wo = hp - kh + 1, wp - kw + 1
    cols = [xp[:, dh:dh + ho, dw:dw + wo, :]
            for dh in range(kh) for dw in range(kw)]
    pat = jnp.concatenate(cols, axis=-1).reshape(n, ho * wo, kh * kw * cin)
    out = pat @ w.reshape(kh * kw * cin, cout) + b
    if relu:
        out = jnp.maximum(out, 0.0)
    return out.reshape(n, ho, wo, cout)


def _maxpool_ref(x):
    xp = jnp.pad(x, ((0, 0), (1, 1), (1, 1), (0, 0)), constant_values=-jnp.inf)
    n, hp, wp, c = xp.shape
    h, w = hp - 2, wp - 2
    out = jnp.full((n, h, w, c), -jnp.inf, x.dtype)
    for dh in range(3):
        for dw in range(3):
            out = jnp.maximum(out, xp[:, dh:dh + h, dw:dw + w, :])
    return out


def reference_forward(params, x_nchw):
    x = jnp.transpose(x_nchw, (0, 2, 3, 1))
    w, b = params["p1"][0]
    p1 = _conv_ref(x, w, b, 0, 0, True)
    (w1, b1), (w2, b2), (w3, b3) = params["p2"]
    p2 = _conv_ref(x, w1, b1, 0, 0, True)
    p2 = _conv_ref(p2, w2, b2, 1, 1, True)
    p2 = _conv_ref(p2, w3, b3, 2, 2, True)
    (w1, b1), (w2, b2), (w3, b3), (w4, b4), (w5, b5) = params["p3"]
    p3 = _conv_ref(x, w1, b1, 0, 0, True)
    p3 = _conv_ref(p3, w2, b2, 1, 1, True)
    p3 = _conv_ref(p3, w3, b3, 2, 2, True)
    p3 = _conv_ref(p3, w4, b4, 1, 1, True)
    p3 = _conv_ref(p3, w5, b5, 2, 2, True)
    w, b = params["p4"][0]
    p4 = _conv_ref(_maxpool_ref(x), w, b, 0, 0, True)
    cat = jnp.concatenate([p1, p2, p3, p4], axis=-1)
    wf, bf = params["final"]
    out = _conv_ref(cat, wf, bf, 1, 1, False)
    return jnp.transpose(out, (0, 3, 1, 2))


if __name__ == "__main__":
    key = jax.random.PRNGKey(0)
    in_c = 4
    c1, c2, c3, c4 = (8,), (8, 8, 8), (8, 8, 8), (8,)

    pkey, xkey = jax.random.split(key)
    params = init_params(pkey, in_c, c1, c2, c3, c4)
    x = jax.random.normal(xkey, (2, in_c, 16, 16), jnp.float32)   # NCHW input

    weights, cfg = pack_params(params, height=16, width=16, in_c=in_c,
                               c1=c1, c2=c2, c3=c3, c4=c4)
    fwd = jax.jit(functools.partial(fused_forward, cfg=cfg))
    out = fwd(weights, x)
    jax.block_until_ready(out)
    assert out.shape == (2, 2, 16, 16), out.shape
    assert out.dtype == jnp.float32

    ref = reference_forward(params, x)
    err = float(jnp.max(jnp.abs(out - ref)))
    assert err < 1e-3, f"fused kernel mismatch vs reference: {err}"
    print("KERNEL_OK")
</pallas_src>

<mosaic_0001>
module attributes {stable_mosaic.version = 11 : i64} {
  func.func @_fused_inception_kernel(%arg0: i32, %arg1: memref<1x16x64xf32, #tpu.memory_space<vmem>>, %arg2: memref<1x64x384xf32, #tpu.memory_space<vmem>>, %arg3: memref<1x384xf32, #tpu.memory_space<vmem>>, %arg4: memref<1x128x96xf32, #tpu.memory_space<vmem>>, %arg5: memref<1x96xf32, #tpu.memory_space<vmem>>, %arg6: memref<7x96x128xf32, #tpu.memory_space<vmem>>, %arg7: memref<1x128xf32, #tpu.memory_space<vmem>>, %arg8: memref<7x128x144xf32, #tpu.memory_space<vmem>>, %arg9: memref<1x144xf32, #tpu.memory_space<vmem>>, %arg10: memref<1x144x128xf32, #tpu.memory_space<vmem>>, %arg11: memref<1x128xf32, #tpu.memory_space<vmem>>, %arg12: memref<7x128x144xf32, #tpu.memory_space<vmem>>, %arg13: memref<1x144xf32, #tpu.memory_space<vmem>>, %arg14: memref<1x144x128xf32, #tpu.memory_space<vmem>>, %arg15: memref<1x128xf32, #tpu.memory_space<vmem>>, %arg16: memref<1x64x128xf32, #tpu.memory_space<vmem>>, %arg17: memref<1x128xf32, #tpu.memory_space<vmem>>, %arg18: memref<3x512x32xf32, #tpu.memory_space<vmem>>, %arg19: memref<1x32xf32, #tpu.memory_space<vmem>>, %arg20: memref<64x64xf32, #tpu.memory_space<vmem>>, %arg21: memref<64x64xf32, #tpu.memory_space<vmem>>, %arg22: memref<1x16x32xf32, #tpu.memory_space<vmem>>, %arg23: memref<18x512xf32, #tpu.memory_space<vmem>>) attributes {dimension_semantics = [#tpu.dimension_semantics<parallel>], iteration_bounds = array<i64: 2>, scalar_prefetch = 0 : i64, scratch_operands = 1 : i64, tpu.core_type = #tpu.core_type<tc>, window_params = [{transform_indices = @transform_0, window_bounds = array<i64: 1, 16, 64>}, {pipeline_mode = #tpu.pipeline_mode<synchronous>, transform_indices = @transform_1, window_bounds = array<i64: 1, 64, 384>}, {pipeline_mode = #tpu.pipeline_mode<synchronous>, transform_indices = @transform_2, window_bounds = array<i64: 1, 384>}, {pipeline_mode = #tpu.pipeline_mode<synchronous>, transform_indices = @transform_3, window_bounds = array<i64: 1, 128, 96>}, {pipeline_mode = #tpu.pipeline_mode<synchronous>, transform_indices = @transform_4, window_bounds = array<i64: 1, 96>}, {pipeline_mode = #tpu.pipeline_mode<synchronous>, transform_indices = @transform_5, window_bounds = array<i64: 7, 96, 128>}, {pipeline_mode = #tpu.pipeline_mode<synchronous>, transform_indices = @transform_6, window_bounds = array<i64: 1, 128>}, {pipeline_mode = #tpu.pipeline_mode<synchronous>, transform_indices = @transform_7, window_bounds = array<i64: 7, 128, 144>}, {pipeline_mode = #tpu.pipeline_mode<synchronous>, transform_indices = @transform_8, window_bounds = array<i64: 1, 144>}, {pipeline_mode = #tpu.pipeline_mode<synchronous>, transform_indices = @transform_9, window_bounds = array<i64: 1, 144, 128>}, {pipeline_mode = #tpu.pipeline_mode<synchronous>, transform_indices = @transform_10, window_bounds = array<i64: 1, 128>}, {pipeline_mode = #tpu.pipeline_mode<synchronous>, transform_indices = @transform_11, window_bounds = array<i64: 7, 128, 144>}, {pipeline_mode = #tpu.pipeline_mode<synchronous>, transform_indices = @transform_12, window_bounds = array<i64: 1, 144>}, {pipeline_mode = #tpu.pipeline_mode<synchronous>, transform_indices = @transform_13, window_bounds = array<i64: 1, 144, 128>}, {pipeline_mode = #tpu.pipeline_mode<synchronous>, transform_indices = @transform_14, window_bounds = array<i64: 1, 128>}, {pipeline_mode = #tpu.pipeline_mode<synchronous>, transform_indices = @transform_15, window_bounds = array<i64: 1, 64, 128>}, {pipeline_mode = #tpu.pipeline_mode<synchronous>, transform_indices = @transform_16, window_bounds = array<i64: 1, 128>}, {pipeline_mode = #tpu.pipeline_mode<synchronous>, transform_indices = @transform_17, window_bounds = array<i64: 3, 512, 32>}, {pipeline_mode = #tpu.pipeline_mode<synchronous>, transform_indices = @transform_18, window_bounds = array<i64: 1, 32>}, {pipeline_mode = #tpu.pipeline_mode<synchronous>, transform_indices = @transform_19, window_bounds = array<i64: 64, 64>}, {pipeline_mode = #tpu.pipeline_mode<synchronous>, transform_indices = @transform_20, window_bounds = array<i64: 64, 64>}, {transform_indices = @transform_21, window_bounds = array<i64: 1, 16, 32>}]} {
    %c0 = arith.constant 0 : index
    %c0_0 = arith.constant 0 : index
    %c0_1 = arith.constant 0 : index
    %0 = vector.load %arg1[%c0, %c0_0, %c0_1] : memref<1x16x64xf32, #tpu.memory_space<vmem>>, vector<1x16x64xf32>
    %1 = vector.shape_cast %0 : vector<1x16x64xf32> to vector<16x64xf32>
    %c0_2 = arith.constant 0 : index
    %c0_3 = arith.constant 0 : index
    %c0_4 = arith.constant 0 : index
    %2 = vector.load %arg2[%c0_2, %c0_3, %c0_4] : memref<1x64x384xf32, #tpu.memory_space<vmem>>, vector<1x64x384xf32>
    %3 = vector.shape_cast %2 : vector<1x64x384xf32> to vector<64x384xf32>
    %cst = arith.constant dense<0.000000e+00> : vector<16x384xf32>
    %4 = tpu.matmul %1, %3, %cst {dimension_numbers = #tpu.dot_dimension_numbers<[1], [0], [0], [1], [0, 0, 1, 1], [], []>} : vector<16x64xf32>, vector<64x384xf32>, vector<16x384xf32> -> vector<16x384xf32>
    %c0_5 = arith.constant 0 : index
    %c0_6 = arith.constant 0 : index
    %5 = vector.load %arg3[%c0_5, %c0_6] : memref<1x384xf32, #tpu.memory_space<vmem>>, vector<1x384xf32>
    %6 = vector.broadcast %5 : vector<1x384xf32> to vector<16x384xf32>
    %7 = arith.addf %4, %6 : vector<16x384xf32>
    %cst_7 = arith.constant 0.000000e+00 : f32
    %8 = vector.broadcast %cst_7 : f32 to vector<16x384xf32>
    %9 = arith.maximumf %7, %8 : vector<16x384xf32>
    %10 = vector.extract_strided_slice %9 {offsets = [0, 0], sizes = [16, 128], strides = [1, 1]} : vector<16x384xf32> to vector<16x128xf32>
    %11 = vector.extract_strided_slice %9 {offsets = [0, 128], sizes = [16, 128], strides = [1, 1]} : vector<16x384xf32> to vector<16x128xf32>
    %12 = vector.extract_strided_slice %9 {offsets = [0, 256], sizes = [16, 128], strides = [1, 1]} : vector<16x384xf32> to vector<16x128xf32>
    %cst_8 = arith.constant 0.000000e+00 : f32
    %13 = vector.broadcast %cst_8 : f32 to vector<1x128xf32>
    %14 = tpu.concatenate %13, %11, %13 in 0 : vector<1x128xf32>, vector<16x128xf32>, vector<1x128xf32> -> vector<18x128xf32>
    %c0_9 = arith.constant 0 : index
    %c0_10 = arith.constant 0 : index
    %c0_11 = arith.constant 0 : index
    %15 = vector.load %arg4[%c0_9, %c0_10, %c0_11] : memref<1x128x96xf32, #tpu.memory_space<vmem>>, vector<1x128x96xf32>
    %16 = vector.shape_cast %15 : vector<1x128x96xf32> to vector<128x96xf32>
    %cst_12 = arith.constant dense<0.000000e+00> : vector<18x96xf32>
    %17 = tpu.matmul %14, %16, %cst_12 {dimension_numbers = #tpu.dot_dimension_numbers<[1], [0], [0], [1], [0, 0, 1, 1], [], []>} : vector<18x128xf32>, vector<128x96xf32>, vector<18x96xf32> -> vector<18x96xf32>
    %c0_13 = arith.constant 0 : index
    %c0_14 = arith.constant 0 : index
    %18 = vector.load %arg5[%c0_13, %c0_14] : memref<1x96xf32, #tpu.memory_space<vmem>>, vector<1x96xf32>
    %19 = vector.broadcast %18 : vector<1x96xf32> to vector<18x96xf32>
    %20 = arith.addf %17, %19 : vector<18x96xf32>
    %cst_15 = arith.constant 0.000000e+00 : f32
    %21 = vector.broadcast %cst_15 : f32 to vector<18x96xf32>
    %22 = arith.maximumf %20, %21 : vector<18x96xf32>
    %cst_16 = arith.constant 0.000000e+00 : f32
    %23 = vector.broadcast %cst_16 : f32 to vector<2x96xf32>
    %24 = tpu.concatenate %23, %22, %23 in 0 : vector<2x96xf32>, vector<18x96xf32>, vector<2x96xf32> -> vector<22x96xf32>
    %25 = vector.extract_strided_slice %24 {offsets = [0, 0], sizes = [16, 96], strides = [1, 1]} : vector<22x96xf32> to vector<16x96xf32>
    %c0_17 = arith.constant 0 : index
    %c0_18 = arith.constant 0 : index
    %c0_19 = arith.constant 0 : index
    %26 = vector.load %arg6[%c0_17, %c0_18, %c0_19] : memref<7x96x128xf32, #tpu.memory_space<vmem>>, vector<1x96x128xf32>
    %27 = vector.shape_cast %26 : vector<1x96x128xf32> to vector<96x128xf32>
    %cst_20 = arith.constant dense<0.000000e+00> : vector<16x128xf32>
    %28 = tpu.matmul %25, %27, %cst_20 {dimension_numbers = #tpu.dot_dimension_numbers<[1], [0], [0], [1], [0, 0, 1, 1], [], []>} : vector<16x96xf32>, vector<96x128xf32>, vector<16x128xf32> -> vector<16x128xf32>
    %29 = vector.extract_strided_slice %24 {offsets = [1, 0], sizes = [16, 96], strides = [1, 1]} : vector<22x96xf32> to vector<16x96xf32>
    %c1 = arith.constant 1 : index
    %c0_21 = arith.constant 0 : index
    %c0_22 = arith.constant 0 : index
    %30 = vector.load %arg6[%c1, %c0_21, %c0_22] : memref<7x96x128xf32, #tpu.memory_space<vmem>>, vector<1x96x128xf32>
    %31 = vector.shape_cast %30 : vector<1x96x128xf32> to vector<96x128xf32>
    %cst_23 = arith.constant dense<0.000000e+00> : vector<16x128xf32>
    %32 = tpu.matmul %29, %31, %cst_23 {dimension_numbers = #tpu.dot_dimension_numbers<[1], [0], [0], [1], [0, 0, 1, 1], [], []>} : vector<16x96xf32>, vector<96x128xf32>, vector<16x128xf32> -> vector<16x128xf32>
    %33 = arith.addf %28, %32 : vector<16x128xf32>
    %34 = vector.extract_strided_slice %24 {offsets = [2, 0], sizes = [16, 96], strides = [1, 1]} : vector<22x96xf32> to vector<16x96xf32>
    %c2 = arith.constant 2 : index
    %c0_24 = arith.constant 0 : index
    %c0_25 = arith.constant 0 : index
    %35 = vector.load %arg6[%c2, %c0_24, %c0_25] : memref<7x96x128xf32, #tpu.memory_space<vmem>>, vector<1x96x128xf32>
    %36 = vector.shape_cast %35 : vector<1x96x128xf32> to vector<96x128xf32>
    %cst_26 = arith.constant dense<0.000000e+00> : vector<16x128xf32>
    %37 = tpu.matmul %34, %36, %cst_26 {dimension_numbers = #tpu.dot_dimension_numbers<[1], [0], [0], [1], [0, 0, 1, 1], [], []>} : vector<16x96xf32>, vector<96x128xf32>, vector<16x128xf32> -> vector<16x128xf32>
    %38 = arith.addf %33, %37 : vector<16x128xf32>
    %39 = vector.extract_strided_slice %24 {offsets = [3, 0], sizes = [16, 96], strides = [1, 1]} : vector<22x96xf32> to vector<16x96xf32>
    %c3 = arith.constant 3 : index
    %c0_27 = arith.constant 0 : index
    %c0_28 = arith.constant 0 : index
    %40 = vector.load %arg6[%c3, %c0_27, %c0_28] : memref<7x96x128xf32, #tpu.memory_space<vmem>>, vector<1x96x128xf32>
    %41 = vector.shape_cast %40 : vector<1x96x128xf32> to vector<96x128xf32>
    %cst_29 = arith.constant dense<0.000000e+00> : vector<16x128xf32>
    %42 = tpu.matmul %39, %41, %cst_29 {dimension_numbers = #tpu.dot_dimension_numbers<[1], [0], [0], [1], [0, 0, 1, 1], [], []>} : vector<16x96xf32>, vector<96x128xf32>, vector<16x128xf32> -> vector<16x128xf32>
    %43 = arith.addf %38, %42 : vector<16x128xf32>
    %44 = vector.extract_strided_slice %24 {offsets = [4, 0], sizes = [16, 96], strides = [1, 1]} : vector<22x96xf32> to vector<16x96xf32>
    %c4 = arith.constant 4 : index
    %c0_30 = arith.constant 0 : index
    %c0_31 = arith.constant 0 : index
    %45 = vector.load %arg6[%c4, %c0_30, %c0_31] : memref<7x96x128xf32, #tpu.memory_space<vmem>>, vector<1x96x128xf32>
    %46 = vector.shape_cast %45 : vector<1x96x128xf32> to vector<96x128xf32>
    %cst_32 = arith.constant dense<0.000000e+00> : vector<16x128xf32>
    %47 = tpu.matmul %44, %46, %cst_32 {dimension_numbers = #tpu.dot_dimension_numbers<[1], [0], [0], [1], [0, 0, 1, 1], [], []>} : vector<16x96xf32>, vector<96x128xf32>, vector<16x128xf32> -> vector<16x128xf32>
    %48 = arith.addf %43, %47 : vector<16x128xf32>
    %49 = vector.extract_strided_slice %24 {offsets = [5, 0], sizes = [16, 96], strides = [1, 1]} : vector<22x96xf32> to vector<16x96xf32>
    %c5 = arith.constant 5 : index
    %c0_33 = arith.constant 0 : index
    %c0_34 = arith.constant 0 : index
    %50 = vector.load %arg6[%c5, %c0_33, %c0_34] : memref<7x96x128xf32, #tpu.memory_space<vmem>>, vector<1x96x128xf32>
    %51 = vector.shape_cast %50 : vector<1x96x128xf32> to vector<96x128xf32>
    %cst_35 = arith.constant dense<0.000000e+00> : vector<16x128xf32>
    %52 = tpu.matmul %49, %51, %cst_35 {dimension_numbers = #tpu.dot_dimension_numbers<[1], [0], [0], [1], [0, 0, 1, 1], [], []>} : vector<16x96xf32>, vector<96x128xf32>, vector<16x128xf32> -> vector<16x128xf32>
    %53 = arith.addf %48, %52 : vector<16x128xf32>
    %54 = vector.extract_strided_slice %24 {offsets = [6, 0], sizes = [16, 96], strides = [1, 1]} : vector<22x96xf32> to vector<16x96xf32>
    %c6 = arith.constant 6 : index
    %c0_36 = arith.constant 0 : index
    %c0_37 = arith.constant 0 : index
    %55 = vector.load %arg6[%c6, %c0_36, %c0_37] : memref<7x96x128xf32, #tpu.memory_space<vmem>>, vector<1x96x128xf32>
    %56 = vector.shape_cast %55 : vector<1x96x128xf32> to vector<96x128xf32>
    %cst_38 = arith.constant dense<0.000000e+00> : vector<16x128xf32>
    %57 = tpu.matmul %54, %56, %cst_38 {dimension_numbers = #tpu.dot_dimension_numbers<[1], [0], [0], [1], [0, 0, 1, 1], [], []>} : vector<16x96xf32>, vector<96x128xf32>, vector<16x128xf32> -> vector<16x128xf32>
    %58 = arith.addf %53, %57 : vector<16x128xf32>
    %c0_39 = arith.constant 0 : index
    %c0_40 = arith.constant 0 : index
    %59 = vector.load %arg7[%c0_39, %c0_40] : memref<1x128xf32, #tpu.memory_space<vmem>>, vector<1x128xf32>
    %60 = vector.broadcast %59 : vector<1x128xf32> to vector<16x128xf32>
    %61 = arith.addf %58, %60 : vector<16x128xf32>
    %cst_41 = arith.constant 0.000000e+00 : f32
    %62 = vector.broadcast %cst_41 : f32 to vector<16x128xf32>
    %63 = arith.maximumf %61, %62 : vector<16x128xf32>
    %cst_42 = arith.constant 0.000000e+00 : f32
    %64 = vector.broadcast %cst_42 : f32 to vector<1x128xf32>
    %65 = tpu.concatenate %64, %12, %64 in 0 : vector<1x128xf32>, vector<16x128xf32>, vector<1x128xf32> -> vector<18x128xf32>
    %66 = vector.extract_strided_slice %65 {offsets = [0, 0], sizes = [12, 128], strides = [1, 1]} : vector<18x128xf32> to vector<12x128xf32>
    %c0_43 = arith.constant 0 : index
    %c0_44 = arith.constant 0 : index
    %c0_45 = arith.constant 0 : index
    %67 = vector.load %arg8[%c0_43, %c0_44, %c0_45] : memref<7x128x144xf32, #tpu.memory_space<vmem>>, vector<1x128x144xf32>
    %68 = vector.shape_cast %67 : vector<1x128x144xf32> to vector<128x144xf32>
    %cst_46 = arith.constant dense<0.000000e+00> : vector<12x144xf32>
    %69 = tpu.matmul %66, %68, %cst_46 {dimension_numbers = #tpu.dot_dimension_numbers<[1], [0], [0], [1], [0, 0, 1, 1], [], []>} : vector<12x128xf32>, vector<128x144xf32>, vector<12x144xf32> -> vector<12x144xf32>
    %70 = vector.extract_strided_slice %65 {offsets = [1, 0], sizes = [12, 128], strides = [1, 1]} : vector<18x128xf32> to vector<12x128xf32>
    %c1_47 = arith.constant 1 : index
    %c0_48 = arith.constant 0 : index
    %c0_49 = arith.constant 0 : index
    %71 = vector.load %arg8[%c1_47, %c0_48, %c0_49] : memref<7x128x144xf32, #tpu.memory_space<vmem>>, vector<1x128x144xf32>
    %72 = vector.shape_cast %71 : vector<1x128x144xf32> to vector<128x144xf32>
    %cst_50 = arith.constant dense<0.000000e+00> : vector<12x144xf32>
    %73 = tpu.matmul %70, %72, %cst_50 {dimension_numbers = #tpu.dot_dimension_numbers<[1], [0], [0], [1], [0, 0, 1, 1], [], []>} : vector<12x128xf32>, vector<128x144xf32>, vector<12x144xf32> -> vector<12x144xf32>
    %74 = arith.addf %69, %73 : vector<12x144xf32>
    %75 = vector.extract_strided_slice %65 {offsets = [2, 0], sizes = [12, 128], strides = [1, 1]} : vector<18x128xf32> to vector<12x128xf32>
    %c2_51 = arith.constant 2 : index
    %c0_52 = arith.constant 0 : index
    %c0_53 = arith.constant 0 : index
    %76 = vector.load %arg8[%c2_51, %c0_52, %c0_53] : memref<7x128x144xf32, #tpu.memory_space<vmem>>, vector<1x128x144xf32>
    %77 = vector.shape_cast %76 : vector<1x128x144xf32> to vector<128x144xf32>
    %cst_54 = arith.constant dense<0.000000e+00> : vector<12x144xf32>
    %78 = tpu.matmul %75, %77, %cst_54 {dimension_numbers = #tpu.dot_dimension_numbers<[1], [0], [0], [1], [0, 0, 1, 1], [], []>} : vector<12x128xf32>, vector<128x144xf32>, vector<12x144xf32> -> vector<12x144xf32>
    %79 = arith.addf %74, %78 : vector<12x144xf32>
    %80 = vector.extract_strided_slice %65 {offsets = [3, 0], sizes = [12, 128], strides = [1, 1]} : vector<18x128xf32> to vector<12x128xf32>
    %c3_55 = arith.constant 3 : index
    %c0_56 = arith.constant 0 : index
    %c0_57 = arith.constant 0 : index
    %81 = vector.load %arg8[%c3_55, %c0_56, %c0_57] : memref<7x128x144xf32, #tpu.memory_space<vmem>>, vector<1x128x144xf32>
    %82 = vector.shape_cast %81 : vector<1x128x144xf32> to vector<128x144xf32>
    %cst_58 = arith.constant dense<0.000000e+00> : vector<12x144xf32>
    %83 = tpu.matmul %80, %82, %cst_58 {dimension_numbers = #tpu.dot_dimension_numbers<[1], [0], [0], [1], [0, 0, 1, 1], [], []>} : vector<12x128xf32>, vector<128x144xf32>, vector<12x144xf32> -> vector<12x144xf32>
    %84 = arith.addf %79, %83 : vector<12x144xf32>
    %85 = vector.extract_strided_slice %65 {offsets = [4, 0], sizes = [12, 128], strides = [1, 1]} : vector<18x128xf32> to vector<12x128xf32>
    %c4_59 = arith.constant 4 : index
    %c0_60 = arith.constant 0 : index
    %c0_61 = arith.constant 0 : index
    %86 = vector.load %arg8[%c4_59, %c0_60, %c0_61] : memref<7x128x144xf32, #tpu.memory_space<vmem>>, vector<1x128x144xf32>
    %87 = vector.shape_cast %86 : vector<1x128x144xf32> to vector<128x144xf32>
    %cst_62 = arith.constant dense<0.000000e+00> : vector<12x144xf32>
    %88 = tpu.matmul %85, %87, %cst_62 {dimension_numbers = #tpu.dot_dimension_numbers<[1], [0], [0], [1], [0, 0, 1, 1], [], []>} : vector<12x128xf32>, vector<128x144xf32>, vector<12x144xf32> -> vector<12x144xf32>
    %89 = arith.addf %84, %88 : vector<12x144xf32>
    %90 = vector.extract_strided_slice %65 {offsets = [5, 0], sizes = [12, 128], strides = [1, 1]} : vector<18x128xf32> to vector<12x128xf32>
    %c5_63 = arith.constant 5 : index
    %c0_64 = arith.constant 0 : index
    %c0_65 = arith.constant 0 : index
    %91 = vector.load %arg8[%c5_63, %c0_64, %c0_65] : memref<7x128x144xf32, #tpu.memory_space<vmem>>, vector<1x128x144xf32>
    %92 = vector.shape_cast %91 : vector<1x128x144xf32> to vector<128x144xf32>
    %cst_66 = arith.constant dense<0.000000e+00> : vector<12x144xf32>
    %93 = tpu.matmul %90, %92, %cst_66 {dimension_numbers = #tpu.dot_dimension_numbers<[1], [0], [0], [1], [0, 0, 1, 1], [], []>} : vector<12x128xf32>, vector<128x144xf32>, vector<12x144xf32> -> vector<12x144xf32>
    %94 = arith.addf %89, %93 : vector<12x144xf32>
    %95 = vector.extract_strided_slice %65 {offsets = [6, 0], sizes = [12, 128], strides = [1, 1]} : vector<18x128xf32> to vector<12x128xf32>
    %c6_67 = arith.constant 6 : index
    %c0_68 = arith.constant 0 : index
    %c0_69 = arith.constant 0 : index
    %96 = vector.load %arg8[%c6_67, %c0_68, %c0_69] : memref<7x128x144xf32, #tpu.memory_space<vmem>>, vector<1x128x144xf32>
    %97 = vector.shape_cast %96 : vector<1x128x144xf32> to vector<128x144xf32>
    %cst_70 = arith.constant dense<0.000000e+00> : vector<12x144xf32>
    %98 = tpu.matmul %95, %97, %cst_70 {dimension_numbers = #tpu.dot_dimension_numbers<[1], [0], [0], [1], [0, 0, 1, 1], [], []>} : vector<12x128xf32>, vector<128x144xf32>, vector<12x144xf32> -> vector<12x144xf32>
    %99 = arith.addf %94, %98 : vector<12x144xf32>
    %c0_71 = arith.constant 0 : index
    %c0_72 = arith.constant 0 : index
    %100 = vector.load %arg9[%c0_71, %c0_72] : memref<1x144xf32, #tpu.memory_space<vmem>>, vector<1x144xf32>
    %101 = vector.broadcast %100 : vector<1x144xf32> to vector<12x144xf32>
    %102 = arith.addf %99, %101 : vector<12x144xf32>
    %cst_73 = arith.constant 0.000000e+00 : f32
    %103 = vector.broadcast %cst_73 : f32 to vector<12x144xf32>
    %104 = arith.maximumf %102, %103 : vector<12x144xf32>
    %cst_74 = arith.constant 0.000000e+00 : f32
    %105 = vector.broadcast %cst_74 : f32 to vector<2x144xf32>
    %106 = tpu.concatenate %105, %104, %105 in 0 : vector<2x144xf32>, vector<12x144xf32>, vector<2x144xf32> -> vector<16x144xf32>
    %c0_75 = arith.constant 0 : index
    %c0_76 = arith.constant 0 : index
    %c0_77 = arith.constant 0 : index
    %107 = vector.load %arg10[%c0_75, %c0_76, %c0_77] : memref<1x144x128xf32, #tpu.memory_space<vmem>>, vector<1x144x128xf32>
    %108 = vector.shape_cast %107 : vector<1x144x128xf32> to vector<144x128xf32>
    %cst_78 = arith.constant dense<0.000000e+00> : vector<16x128xf32>
    %109 = tpu.matmul %106, %108, %cst_78 {dimension_numbers = #tpu.dot_dimension_numbers<[1], [0], [0], [1], [0, 0, 1, 1], [], []>} : vector<16x144xf32>, vector<144x128xf32>, vector<16x128xf32> -> vector<16x128xf32>
    %c0_79 = arith.constant 0 : index
    %c0_80 = arith.constant 0 : index
    %110 = vector.load %arg11[%c0_79, %c0_80] : memref<1x128xf32, #tpu.memory_space<vmem>>, vector<1x128xf32>
    %111 = vector.broadcast %110 : vector<1x128xf32> to vector<16x128xf32>
    %112 = arith.addf %109, %111 : vector<16x128xf32>
    %cst_81 = arith.constant 0.000000e+00 : f32
    %113 = vector.broadcast %cst_81 : f32 to vector<16x128xf32>
    %114 = arith.maximumf %112, %113 : vector<16x128xf32>
    %cst_82 = arith.constant 0.000000e+00 : f32
    %115 = vector.broadcast %cst_82 : f32 to vector<1x128xf32>
    %116 = tpu.concatenate %115, %114, %115 in 0 : vector<1x128xf32>, vector<16x128xf32>, vector<1x128xf32> -> vector<18x128xf32>
    %117 = vector.extract_strided_slice %116 {offsets = [0, 0], sizes = [12, 128], strides = [1, 1]} : vector<18x128xf32> to vector<12x128xf32>
    %c0_83 = arith.constant 0 : index
    %c0_84 = arith.constant 0 : index
    %c0_85 = arith.constant 0 : index
    %118 = vector.load %arg12[%c0_83, %c0_84, %c0_85] : memref<7x128x144xf32, #tpu.memory_space<vmem>>, vector<1x128x144xf32>
    %119 = vector.shape_cast %118 : vector<1x128x144xf32> to vector<128x144xf32>
    %cst_86 = arith.constant dense<0.000000e+00> : vector<12x144xf32>
    %120 = tpu.matmul %117, %119, %cst_86 {dimension_numbers = #tpu.dot_dimension_numbers<[1], [0], [0], [1], [0, 0, 1, 1], [], []>} : vector<12x128xf32>, vector<128x144xf32>, vector<12x144xf32> -> vector<12x144xf32>
    %121 = vector.extract_strided_slice %116 {offsets = [1, 0], sizes = [12, 128], strides = [1, 1]} : vector<18x128xf32> to vector<12x128xf32>
    %c1_87 = arith.constant 1 : index
    %c0_88 = arith.constant 0 : index
    %c0_89 = arith.constant 0 : index
    %122 = vector.load %arg12[%c1_87, %c0_88, %c0_89] : memref<7x128x144xf32, #tpu.memory_space<vmem>>, vector<1x128x144xf32>
    %123 = vector.shape_cast %122 : vector<1x128x144xf32> to vector<128x144xf32>
    %cst_90 = arith.constant dense<0.000000e+00> : vector<12x144xf32>
    %124 = tpu.matmul %121, %123, %cst_90 {dimension_numbers = #tpu.dot_dimension_numbers<[1], [0], [0], [1], [0, 0, 1, 1], [], []>} : vector<12x128xf32>, vector<128x144xf32>, vector<12x144xf32> -> vector<12x144xf32>
    %125 = arith.addf %120, %124 : vector<12x144xf32>
    %126 = vector.extract_strided_slice %116 {offsets = [2, 0], sizes = [12, 128], strides = [1, 1]} : vector<18x128xf32> to vector<12x128xf32>
    %c2_91 = arith.constant 2 : index
    %c0_92 = arith.constant 0 : index
    %c0_93 = arith.constant 0 : index
    %127 = vector.load %arg12[%c2_91, %c0_92, %c0_93] : memref<7x128x144xf32, #tpu.memory_space<vmem>>, vector<1x128x144xf32>
    %128 = vector.shape_cast %127 : vector<1x128x144xf32> to vector<128x144xf32>
    %cst_94 = arith.constant dense<0.000000e+00> : vector<12x144xf32>
    %129 = tpu.matmul %126, %128, %cst_94 {dimension_numbers = #tpu.dot_dimension_numbers<[1], [0], [0], [1], [0, 0, 1, 1], [], []>} : vector<12x128xf32>, vector<128x144xf32>, vector<12x144xf32> -> vector<12x144xf32>
    %130 = arith.addf %125, %129 : vector<12x144xf32>
    %131 = vector.extract_strided_slice %116 {offsets = [3, 0], sizes = [12, 128], strides = [1, 1]} : vector<18x128xf32> to vector<12x128xf32>
    %c3_95 = arith.constant 3 : index
    %c0_96 = arith.constant 0 : index
    %c0_97 = arith.constant 0 : index
    %132 = vector.load %arg12[%c3_95, %c0_96, %c0_97] : memref<7x128x144xf32, #tpu.memory_space<vmem>>, vector<1x128x144xf32>
    %133 = vector.shape_cast %132 : vector<1x128x144xf32> to vector<128x144xf32>
    %cst_98 = arith.constant dense<0.000000e+00> : vector<12x144xf32>
    %134 = tpu.matmul %131, %133, %cst_98 {dimension_numbers = #tpu.dot_dimension_numbers<[1], [0], [0], [1], [0, 0, 1, 1], [], []>} : vector<12x128xf32>, vector<128x144xf32>, vector<12x144xf32> -> vector<12x144xf32>
    %135 = arith.addf %130, %134 : vector<12x144xf32>
    %136 = vector.extract_strided_slice %116 {offsets = [4, 0], sizes = [12, 128], strides = [1, 1]} : vector<18x128xf32> to vector<12x128xf32>
    %c4_99 = arith.constant 4 : index
    %c0_100 = arith.constant 0 : index
    %c0_101 = arith.constant 0 : index
    %137 = vector.load %arg12[%c4_99, %c0_100, %c0_101] : memref<7x128x144xf32, #tpu.memory_space<vmem>>, vector<1x128x144xf32>
    %138 = vector.shape_cast %137 : vector<1x128x144xf32> to vector<128x144xf32>
    %cst_102 = arith.constant dense<0.000000e+00> : vector<12x144xf32>
    %139 = tpu.matmul %136, %138, %cst_102 {dimension_numbers = #tpu.dot_dimension_numbers<[1], [0], [0], [1], [0, 0, 1, 1], [], []>} : vector<12x128xf32>, vector<128x144xf32>, vector<12x144xf32> -> vector<12x144xf32>
    %140 = arith.addf %135, %139 : vector<12x144xf32>
    %141 = vector.extract_strided_slice %116 {offsets = [5, 0], sizes = [12, 128], strides = [1, 1]} : vector<18x128xf32> to vector<12x128xf32>
    %c5_103 = arith.constant 5 : index
    %c0_104 = arith.constant 0 : index
    %c0_105 = arith.constant 0 : index
    %142 = vector.load %arg12[%c5_103, %c0_104, %c0_105] : memref<7x128x144xf32, #tpu.memory_space<vmem>>, vector<1x128x144xf32>
    %143 = vector.shape_cast %142 : vector<1x128x144xf32> to vector<128x144xf32>
    %cst_106 = arith.constant dense<0.000000e+00> : vector<12x144xf32>
    %144 = tpu.matmul %141, %143, %cst_106 {dimension_numbers = #tpu.dot_dimension_numbers<[1], [0], [0], [1], [0, 0, 1, 1], [], []>} : vector<12x128xf32>, vector<128x144xf32>, vector<12x144xf32> -> vector<12x144xf32>
    %145 = arith.addf %140, %144 : vector<12x144xf32>
    %146 = vector.extract_strided_slice %116 {offsets = [6, 0], sizes = [12, 128], strides = [1, 1]} : vector<18x128xf32> to vector<12x128xf32>
    %c6_107 = arith.constant 6 : index
    %c0_108 = arith.constant 0 : index
    %c0_109 = arith.constant 0 : index
    %147 = vector.load %arg12[%c6_107, %c0_108, %c0_109] : memref<7x128x144xf32, #tpu.memory_space<vmem>>, vector<1x128x144xf32>
    %148 = vector.shape_cast %147 : vector<1x128x144xf32> to vector<128x144xf32>
    %cst_110 = arith.constant dense<0.000000e+00> : vector<12x144xf32>
    %149 = tpu.matmul %146, %148, %cst_110 {dimension_numbers = #tpu.dot_dimension_numbers<[1], [0], [0], [1], [0, 0, 1, 1], [], []>} : vector<12x128xf32>, vector<128x144xf32>, vector<12x144xf32> -> vector<12x144xf32>
    %150 = arith.addf %145, %149 : vector<12x144xf32>
    %c0_111 = arith.constant 0 : index
    %c0_112 = arith.constant 0 : index
    %151 = vector.load %arg13[%c0_111, %c0_112] : memref<1x144xf32, #tpu.memory_space<vmem>>, vector<1x144xf32>
    %152 = vector.broadcast %151 : vector<1x144xf32> to vector<12x144xf32>
    %153 = arith.addf %150, %152 : vector<12x144xf32>
    %cst_113 = arith.constant 0.000000e+00 : f32
    %154 = vector.broadcast %cst_113 : f32 to vector<12x144xf32>
    %155 = arith.maximumf %153, %154 : vector<12x144xf32>
    %cst_114 = arith.constant 0.000000e+00 : f32
    %156 = vector.broadcast %cst_114 : f32 to vector<2x144xf32>
    %157 = tpu.concatenate %156, %155, %156 in 0 : vector<2x144xf32>, vector<12x144xf32>, vector<2x144xf32> -> vector<16x144xf32>
    %c0_115 = arith.constant 0 : index
    %c0_116 = arith.constant 0 : index
    %c0_117 = arith.constant 0 : index
    %158 = vector.load %arg14[%c0_115, %c0_116, %c0_117] : memref<1x144x128xf32, #tpu.memory_space<vmem>>, vector<1x144x128xf32>
    %159 = vector.shape_cast %158 : vector<1x144x128xf32> to vector<144x128xf32>
    %cst_118 = arith.constant dense<0.000000e+00> : vector<16x128xf32>
    %160 = tpu.matmul %157, %159, %cst_118 {dimension_numbers = #tpu.dot_dimension_numbers<[1], [0], [0], [1], [0, 0, 1, 1], [], []>} : vector<16x144xf32>, vector<144x128xf32>, vector<16x128xf32> -> vector<16x128xf32>
    %c0_119 = arith.constant 0 : index
    %c0_120 = arith.constant 0 : index
    %161 = vector.load %arg15[%c0_119, %c0_120] : memref<1x128xf32, #tpu.memory_space<vmem>>, vector<1x128xf32>
    %162 = vector.broadcast %161 : vector<1x128xf32> to vector<16x128xf32>
    %163 = arith.addf %160, %162 : vector<16x128xf32>
    %cst_121 = arith.constant 0.000000e+00 : f32
    %164 = vector.broadcast %cst_121 : f32 to vector<16x128xf32>
    %165 = arith.maximumf %163, %164 : vector<16x128xf32>
    %166 = tpu.iota {dimensions = array<i32: 1>} : vector<16x64xi32>
    %c4_i32 = arith.constant 4 : i32
    %167 = vector.broadcast %c4_i32 : i32 to vector<16x64xi32>
    %168 = arith.cmpi slt, %166, %167 : vector<16x64xi32>
    %c0_122 = arith.constant 0 : index
    %c0_123 = arith.constant 0 : index
    %169 = vector.load %arg20[%c0_122, %c0_123] : memref<64x64xf32, #tpu.memory_space<vmem>>, vector<64x64xf32>
    %cst_124 = arith.constant dense<0.000000e+00> : vector<16x64xf32>
    %170 = tpu.matmul %1, %169, %cst_124 {dimension_numbers = #tpu.dot_dimension_numbers<[1], [0], [0], [1], [0, 0, 1, 1], [], []>} : vector<16x64xf32>, vector<64x64xf32>, vector<16x64xf32> -> vector<16x64xf32>
    %cst_125 = arith.constant 0xFF800000 : f32
    %171 = vector.broadcast %cst_125 : f32 to vector<16x64xf32>
    %172 = arith.select %168, %171, %170 : vector<16x64xi1>, vector<16x64xf32>
    %c60_i32 = arith.constant 60 : i32
    %173 = vector.broadcast %c60_i32 : i32 to vector<16x64xi32>
    %174 = arith.cmpi sge, %166, %173 : vector<16x64xi32>
    %c0_126 = arith.constant 0 : index
    %c0_127 = arith.constant 0 : index
    %175 = vector.load %arg21[%c0_126, %c0_127] : memref<64x64xf32, #tpu.memory_space<vmem>>, vector<64x64xf32>
    %cst_128 = arith.constant dense<0.000000e+00> : vector<16x64xf32>
    %176 = tpu.matmul %1, %175, %cst_128 {dimension_numbers = #tpu.dot_dimension_numbers<[1], [0], [0], [1], [0, 0, 1, 1], [], []>} : vector<16x64xf32>, vector<64x64xf32>, vector<16x64xf32> -> vector<16x64xf32>
    %cst_129 = arith.constant 0xFF800000 : f32
    %177 = vector.broadcast %cst_129 : f32 to vector<16x64xf32>
    %178 = arith.select %174, %177, %176 : vector<16x64xi1>, vector<16x64xf32>
    %179 = arith.maximumf %172, %178 : vector<16x64xf32>
    %180 = arith.maximumf %1, %179 : vector<16x64xf32>
    %cst_130 = arith.constant 0xFF800000 : f32
    %181 = vector.broadcast %cst_130 : f32 to vector<1x64xf32>
    %182 = tpu.concatenate %181, %180, %181 in 0 : vector<1x64xf32>, vector<16x64xf32>, vector<1x64xf32> -> vector<18x64xf32>
    %183 = vector.extract_strided_slice %182 {offsets = [0, 0], sizes = [16, 64], strides = [1, 1]} : vector<18x64xf32> to vector<16x64xf32>
    %184 = vector.extract_strided_slice %182 {offsets = [1, 0], sizes = [16, 64], strides = [1, 1]} : vector<18x64xf32> to vector<16x64xf32>
    %185 = arith.maximumf %183, %184 : vector<16x64xf32>
    %186 = vector.extract_strided_slice %182 {offsets = [2, 0], sizes = [16, 64], strides = [1, 1]} : vector<18x64xf32> to vector<16x64xf32>
    %187 = arith.maximumf %185, %186 : vector<16x64xf32>
    %c0_131 = arith.constant 0 : index
    %c0_132 = arith.constant 0 : index
    %c0_133 = arith.constant 0 : index
    %188 = vector.load %arg16[%c0_131, %c0_132, %c0_133] : memref<1x64x128xf32, #tpu.memory_space<vmem>>, vector<1x64x128xf32>
    %189 = vector.shape_cast %188 : vector<1x64x128xf32> to vector<64x128xf32>
    %cst_134 = arith.constant dense<0.000000e+00> : vector<16x128xf32>
    %190 = tpu.matmul %187, %189, %cst_134 {dimension_numbers = #tpu.dot_dimension_numbers<[1], [0], [0], [1], [0, 0, 1, 1], [], []>} : vector<16x64xf32>, vector<64x128xf32>, vector<16x128xf32> -> vector<16x128xf32>
    %c0_135 = arith.constant 0 : index
    %c0_136 = arith.constant 0 : index
    %191 = vector.load %arg17[%c0_135, %c0_136] : memref<1x128xf32, #tpu.memory_space<vmem>>, vector<1x128xf32>
    %192 = vector.broadcast %191 : vector<1x128xf32> to vector<16x128xf32>
    %193 = arith.addf %190, %192 : vector<16x128xf32>
    %cst_137 = arith.constant 0.000000e+00 : f32
    %194 = vector.broadcast %cst_137 : f32 to vector<16x128xf32>
    %195 = arith.maximumf %193, %194 : vector<16x128xf32>
    %cst_138 = arith.constant 0.000000e+00 : f32
    %196 = vector.broadcast %cst_138 : f32 to vector<1x512xf32>
    %c0_139 = arith.constant 0 : index
    %c0_140 = arith.constant 0 : index
    %197 = vector.load %arg23[%c0_139, %c0_140] : memref<18x512xf32, #tpu.memory_space<vmem>>, vector<1x512xf32>
    tpu.vector_store %arg23[%c0_139, %c0_140], %196 {strides = array<i32>} : memref<18x512xf32, #tpu.memory_space<vmem>>, vector<1x512xf32>,
    %c17 = arith.constant 17 : index
    %c0_141 = arith.constant 0 : index
    %198 = vector.load %arg23[%c17, %c0_141] : memref<18x512xf32, #tpu.memory_space<vmem>>, vector<1x512xf32>
    tpu.vector_store %arg23[%c17, %c0_141], %196 {strides = array<i32>} : memref<18x512xf32, #tpu.memory_space<vmem>>, vector<1x512xf32>,
    %c1_142 = arith.constant 1 : index
    %c0_143 = arith.constant 0 : index
    %199 = vector.load %arg23[%c1_142, %c0_143] : memref<18x512xf32, #tpu.memory_space<vmem>>, vector<16x128xf32>
    tpu.vector_store %arg23[%c1_142, %c0_143], %10 {strides = array<i32>} : memref<18x512xf32, #tpu.memory_space<vmem>>, vector<16x128xf32>,
    %c1_144 = arith.constant 1 : index
    %c128 = arith.constant 128 : index
    %200 = vector.load %arg23[%c1_144, %c128] : memref<18x512xf32, #tpu.memory_space<vmem>>, vector<16x128xf32>
    tpu.vector_store %arg23[%c1_144, %c128], %63 {strides = array<i32>} : memref<18x512xf32, #tpu.memory_space<vmem>>, vector<16x128xf32>,
    %c1_145 = arith.constant 1 : index
    %c256 = arith.constant 256 : index
    %201 = vector.load %arg23[%c1_145, %c256] : memref<18x512xf32, #tpu.memory_space<vmem>>, vector<16x128xf32>
    tpu.vector_store %arg23[%c1_145, %c256], %165 {strides = array<i32>} : memref<18x512xf32, #tpu.memory_space<vmem>>, vector<16x128xf32>,
    %c1_146 = arith.constant 1 : index
    %c384 = arith.constant 384 : index
    %202 = vector.load %arg23[%c1_146, %c384] : memref<18x512xf32, #tpu.memory_space<vmem>>, vector<16x128xf32>
    tpu.vector_store %arg23[%c1_146, %c384], %195 {strides = array<i32>} : memref<18x512xf32, #tpu.memory_space<vmem>>, vector<16x128xf32>,
    %c0_147 = arith.constant 0 : index
    %c0_148 = arith.constant 0 : index
    %203 = vector.load %arg23[%c0_147, %c0_148] : memref<18x512xf32, #tpu.memory_space<vmem>>, vector<16x512xf32>
    %c0_149 = arith.constant 0 : index
    %c0_150 = arith.constant 0 : index
    %c0_151 = arith.constant 0 : index
    %204 = vector.load %arg18[%c0_149, %c0_150, %c0_151] : memref<3x512x32xf32, #tpu.memory_space<vmem>>, vector<1x512x32xf32>
    %205 = vector.shape_cast %204 : vector<1x512x32xf32> to vector<512x32xf32>
    %cst_152 = arith.constant dense<0.000000e+00> : vector<16x32xf32>
    %206 = tpu.matmul %203, %205, %cst_152 {dimension_numbers = #tpu.dot_dimension_numbers<[1], [0], [0], [1], [0, 0, 1, 1], [], []>} : vector<16x512xf32>, vector<512x32xf32>, vector<16x32xf32> -> vector<16x32xf32>
    %c1_153 = arith.constant 1 : index
    %c0_154 = arith.constant 0 : index
    %207 = vector.load %arg23[%c1_153, %c0_154] : memref<18x512xf32, #tpu.memory_space<vmem>>, vector<16x512xf32>
    %c1_155 = arith.constant 1 : index
    %c0_156 = arith.constant 0 : index
    %c0_157 = arith.constant 0 : index
    %208 = vector.load %arg18[%c1_155, %c0_156, %c0_157] : memref<3x512x32xf32, #tpu.memory_space<vmem>>, vector<1x512x32xf32>
    %209 = vector.shape_cast %208 : vector<1x512x32xf32> to vector<512x32xf32>
    %cst_158 = arith.constant dense<0.000000e+00> : vector<16x32xf32>
    %210 = tpu.matmul %207, %209, %cst_158 {dimension_numbers = #tpu.dot_dimension_numbers<[1], [0], [0], [1], [0, 0, 1, 1], [], []>} : vector<16x512xf32>, vector<512x32xf32>, vector<16x32xf32> -> vector<16x32xf32>
    %211 = arith.addf %206, %210 : vector<16x32xf32>
    %c2_159 = arith.constant 2 : index
    %c0_160 = arith.constant 0 : index
    %212 = vector.load %arg23[%c2_159, %c0_160] : memref<18x512xf32, #tpu.memory_space<vmem>>, vector<16x512xf32>
    %c2_161 = arith.constant 2 : index
    %c0_162 = arith.constant 0 : index
    %c0_163 = arith.constant 0 : index
    %213 = vector.load %arg18[%c2_161, %c0_162, %c0_163] : memref<3x512x32xf32, #tpu.memory_space<vmem>>, vector<1x512x32xf32>
    %214 = vector.shape_cast %213 : vector<1x512x32xf32> to vector<512x32xf32>
    %cst_164 = arith.constant dense<0.000000e+00> : vector<16x32xf32>
    %215 = tpu.matmul %212, %214, %cst_164 {dimension_numbers = #tpu.dot_dimension_numbers<[1], [0], [0], [1], [0, 0, 1, 1], [], []>} : vector<16x512xf32>, vector<512x32xf32>, vector<16x32xf32> -> vector<16x32xf32>
    %216 = arith.addf %211, %215 : vector<16x32xf32>
    %c0_165 = arith.constant 0 : index
    %c0_166 = arith.constant 0 : index
    %217 = vector.load %arg19[%c0_165, %c0_166] : memref<1x32xf32, #tpu.memory_space<vmem>>, vector<1x32xf32>
    %218 = vector.broadcast %217 : vector<1x32xf32> to vector<16x32xf32>
    %219 = arith.addf %216, %218 : vector<16x32xf32>
    %c0_167 = arith.constant 0 : index
    %c0_168 = arith.constant 0 : index
    %c0_169 = arith.constant 0 : index
    %220 = vector.load %arg22[%c0_167, %c0_168, %c0_169] : memref<1x16x32xf32, #tpu.memory_space<vmem>>, vector<1x16x32xf32>
    %221 = vector.shape_cast %220 : vector<1x16x32xf32> to vector<16x32xf32>
    %222 = vector.shape_cast %219 : vector<16x32xf32> to vector<1x16x32xf32>
    tpu.vector_store %arg22[%c0_167, %c0_168, %c0_169], %222 {strides = array<i32>} : memref<1x16x32xf32, #tpu.memory_space<vmem>>, vector<1x16x32xf32>,
    return
  }
  func.func @transform_0(%arg0: i32) -> (i32, i32, i32) {
    %c0_i32 = arith.constant 0 : i32
    %c0_i32_0 = arith.constant 0 : i32
    %c0_i32_1 = arith.constant 0 : i32
    return %arg0, %c0_i32, %c0_i32_0 : i32, i32, i32
  }
  func.func @transform_1(%arg0: i32) -> (i32, i32, i32) {
    %c0_i32 = arith.constant 0 : i32
    %c0_i32_0 = arith.constant 0 : i32
    %c0_i32_1 = arith.constant 0 : i32
    %c0_i32_2 = arith.constant 0 : i32
    return %c0_i32, %c0_i32_0, %c0_i32_1 : i32, i32, i32
  }
  func.func @transform_2(%arg0: i32) -> (i32, i32) {
    %c0_i32 = arith.constant 0 : i32
    %c0_i32_0 = arith.constant 0 : i32
    %c0_i32_1 = arith.constant 0 : i32
    return %c0_i32, %c0_i32_0 : i32, i32
  }
  func.func @transform_3(%arg0: i32) -> (i32, i32, i32) {
    %c0_i32 = arith.constant 0 : i32
    %c0_i32_0 = arith.constant 0 : i32
    %c0_i32_1 = arith.constant 0 : i32
    %c0_i32_2 = arith.constant 0 : i32
    return %c0_i32, %c0_i32_0, %c0_i32_1 : i32, i32, i32
  }
  func.func @transform_4(%arg0: i32) -> (i32, i32) {
    %c0_i32 = arith.constant 0 : i32
    %c0_i32_0 = arith.constant 0 : i32
    %c0_i32_1 = arith.constant 0 : i32
    return %c0_i32, %c0_i32_0 : i32, i32
  }
  func.func @transform_5(%arg0: i32) -> (i32, i32, i32) {
    %c0_i32 = arith.constant 0 : i32
    %c0_i32_0 = arith.constant 0 : i32
    %c0_i32_1 = arith.constant 0 : i32
    %c0_i32_2 = arith.constant 0 : i32
    return %c0_i32, %c0_i32_0, %c0_i32_1 : i32, i32, i32
  }
  func.func @transform_6(%arg0: i32) -> (i32, i32) {
    %c0_i32 = arith.constant 0 : i32
    %c0_i32_0 = arith.constant 0 : i32
    %c0_i32_1 = arith.constant 0 : i32
    return %c0_i32, %c0_i32_0 : i32, i32
  }
  func.func @transform_7(%arg0: i32) -> (i32, i32, i32) {
    %c0_i32 = arith.constant 0 : i32
    %c0_i32_0 = arith.constant 0 : i32
    %c0_i32_1 = arith.constant 0 : i32
    %c0_i32_2 = arith.constant 0 : i32
    return %c0_i32, %c0_i32_0, %c0_i32_1 : i32, i32, i32
  }
  func.func @transform_8(%arg0: i32) -> (i32, i32) {
    %c0_i32 = arith.constant 0 : i32
    %c0_i32_0 = arith.constant 0 : i32
    %c0_i32_1 = arith.constant 0 : i32
    return %c0_i32, %c0_i32_0 : i32, i32
  }
  func.func @transform_9(%arg0: i32) -> (i32, i32, i32) {
    %c0_i32 = arith.constant 0 : i32
    %c0_i32_0 = arith.constant 0 : i32
    %c0_i32_1 = arith.constant 0 : i32
    %c0_i32_2 = arith.constant 0 : i32
    return %c0_i32, %c0_i32_0, %c0_i32_1 : i32, i32, i32
  }
  func.func @transform_10(%arg0: i32) -> (i32, i32) {
    %c0_i32 = arith.constant 0 : i32
    %c0_i32_0 = arith.constant 0 : i32
    %c0_i32_1 = arith.constant 0 : i32
    return %c0_i32, %c0_i32_0 : i32, i32
  }
  func.func @transform_11(%arg0: i32) -> (i32, i32, i32) {
    %c0_i32 = arith.constant 0 : i32
    %c0_i32_0 = arith.constant 0 : i32
    %c0_i32_1 = arith.constant 0 : i32
    %c0_i32_2 = arith.constant 0 : i32
    return %c0_i32, %c0_i32_0, %c0_i32_1 : i32, i32, i32
  }
  func.func @transform_12(%arg0: i32) -> (i32, i32) {
    %c0_i32 = arith.constant 0 : i32
    %c0_i32_0 = arith.constant 0 : i32
    %c0_i32_1 = arith.constant 0 : i32
    return %c0_i32, %c0_i32_0 : i32, i32
  }
  func.func @transform_13(%arg0: i32) -> (i32, i32, i32) {
    %c0_i32 = arith.constant 0 : i32
    %c0_i32_0 = arith.constant 0 : i32
    %c0_i32_1 = arith.constant 0 : i32
    %c0_i32_2 = arith.constant 0 : i32
    return %c0_i32, %c0_i32_0, %c0_i32_1 : i32, i32, i32
  }
  func.func @transform_14(%arg0: i32) -> (i32, i32) {
    %c0_i32 = arith.constant 0 : i32
    %c0_i32_0 = arith.constant 0 : i32
    %c0_i32_1 = arith.constant 0 : i32
    return %c0_i32, %c0_i32_0 : i32, i32
  }
  func.func @transform_15(%arg0: i32) -> (i32, i32, i32) {
    %c0_i32 = arith.constant 0 : i32
    %c0_i32_0 = arith.constant 0 : i32
    %c0_i32_1 = arith.constant 0 : i32
    %c0_i32_2 = arith.constant 0 : i32
    return %c0_i32, %c0_i32_0, %c0_i32_1 : i32, i32, i32
  }
  func.func @transform_16(%arg0: i32) -> (i32, i32) {
    %c0_i32 = arith.constant 0 : i32
    %c0_i32_0 = arith.constant 0 : i32
    %c0_i32_1 = arith.constant 0 : i32
    return %c0_i32, %c0_i32_0 : i32, i32
  }
  func.func @transform_17(%arg0: i32) -> (i32, i32, i32) {
    %c0_i32 = arith.constant 0 : i32
    %c0_i32_0 = arith.constant 0 : i32
    %c0_i32_1 = arith.constant 0 : i32
    %c0_i32_2 = arith.constant 0 : i32
    return %c0_i32, %c0_i32_0, %c0_i32_1 : i32, i32, i32
  }
  func.func @transform_18(%arg0: i32) -> (i32, i32) {
    %c0_i32 = arith.constant 0 : i32
    %c0_i32_0 = arith.constant 0 : i32
    %c0_i32_1 = arith.constant 0 : i32
    return %c0_i32, %c0_i32_0 : i32, i32
  }
  func.func @transform_19(%arg0: i32) -> (i32, i32) {
    %c0_i32 = arith.constant 0 : i32
    %c0_i32_0 = arith.constant 0 : i32
    %c0_i32_1 = arith.constant 0 : i32
    return %c0_i32, %c0_i32_0 : i32, i32
  }
  func.func @transform_20(%arg0: i32) -> (i32, i32) {
    %c0_i32 = arith.constant 0 : i32
    %c0_i32_0 = arith.constant 0 : i32
    %c0_i32_1 = arith.constant 0 : i32
    return %c0_i32, %c0_i32_0 : i32, i32
  }
  func.func @transform_21(%arg0: i32) -> (i32, i32, i32) {
    %c0_i32 = arith.constant 0 : i32
    %c0_i32_0 = arith.constant 0 : i32
    %c0_i32_1 = arith.constant 0 : i32
    return %arg0, %c0_i32, %c0_i32_0 : i32, i32, i32
  }
}

</mosaic_0001>

<bundles_post_ra>
// kernel: fused_forward.1
= control target key start
LH: loop header
LB: loop body
LE: loop exit
PB: predicated region body
PF: predicated region fallthrough
CT: control target
= control target key end

     0   :  { %s10244_s0 = inlined_call_operand.vmem [shape: f32[2,16,64], index: 0, kind: input, shape index: {}]   ;;  %s10245_s1 = inlined_call_operand.vmem [shape: f32[1,64,384], index: 1, kind: input, shape index: {}]   ;;  %s10246_s2 = inlined_call_operand.vmem [shape: f32[1,384], index: 2, kind: input, shape index: {}]   ;;  %s10247_s3 = inlined_call_operand.vmem [shape: f32[1,128,96], index: 3, kind: input, shape index: {}]   ;;  %s10248_s4 = inlined_call_operand.vmem [shape: f32[1,96], index: 4, kind: input, shape index: {}]   ;;  %s10249_s5 = inlined_call_operand.vmem [shape: f32[7,96,128], index: 5, kind: input, shape index: {}]   ;;  %s10250_s6 = inlined_call_operand.vmem [shape: f32[1,128], index: 6, kind: input, shape index: {}]   ;;  %s10251_s7 = inlined_call_operand.vmem [shape: f32[7,128,144], index: 7, kind: input, shape index: {}]   ;;  %s10252_s8 = inlined_call_operand.vmem [shape: f32[1,144], index: 8, kind: input, shape index: {}]   ;;  %s10253_s9 = inlined_call_operand.vmem [shape: f32[1,144,128], index: 9, kind: input, shape index: {}]   ;;  %s10254_s10 = inlined_call_operand.vmem [shape: f32[1,128], index: 10, kind: input, shape index: {}]   ;;  %s10255_s11 = inlined_call_operand.vmem [shape: f32[7,128,144], index: 11, kind: input, shape index: {}]   ;;  %s10256_s12 = inlined_call_operand.vmem [shape: f32[1,144], index: 12, kind: input, shape index: {}]   ;;  %s10257_s13 = inlined_call_operand.vmem [shape: f32[1,144,128], index: 13, kind: input, shape index: {}]   ;;  %s10258_s14 = inlined_call_operand.vmem [shape: f32[1,128], index: 14, kind: input, shape index: {}]   ;;  %s10259_s15 = inlined_call_operand.vmem [shape: f32[1,64,128], index: 15, kind: input, shape index: {}]   ;;  %s10260_s16 = inlined_call_operand.vmem [shape: f32[1,128], index: 16, kind: input, shape index: {}]   ;;  %s10261_s17 = inlined_call_operand.vmem [shape: f32[3,512,32], index: 17, kind: input, shape index: {}]   ;;  %s10262_s18 = inlined_call_operand.vmem [shape: f32[1,32], index: 18, kind: input, shape index: {}]   ;;  %s10263_s19 = inlined_call_operand.vmem [shape: f32[64,64], index: 19, kind: input, shape index: {}]   ;;  %s10264_s20 = inlined_call_operand.vmem [shape: f32[64,64], index: 20, kind: input, shape index: {}]   ;;  %s10265_s21 = inlined_call_operand.vmem [shape: f32[2,16,32], index: 21, kind: output, shape index: {}]  }
   0x1   :  { %10272 = sst [smem:[#allocation3_spill]] %s10244_s0 }
   0x2   :  { %10273 = sst [smem:[#allocation4_spill]] %s10245_s1 }
   0x3   :  { %10274 = sst [smem:[#allocation5_spill]] %s10246_s2  ;;  %s7327_s2 = smov 0  }
   0x4   :  { %10275 = sst [smem:[#allocation6_spill]] %s10247_s3 }
   0x5   :  { %10276 = sst [smem:[#allocation7_spill]] %s10248_s4 }
   0x6   :  { %10277 = sst [smem:[#allocation8_spill]] %s10249_s5 }
   0x7 LB: > { %s4832_s25 = sadd.s32 4294967295, %s7212_s2   ;;  %p4836_p0 = scmp.ge.s32.totalorder %s7212_s2, 1  ;;  %s7212_s2 = sphi %s7327_s2, %s31_s2  }
   0x8   : > { %p587_p1 = scmp.lt.s32.totalorder %s7212_s2, 3 }
   0xa   : > { %p588_p2 = pnand %p4836_p0, %p587_p1 }
   0xb   : > { %s10278_s3 = sld [smem:[#allocation4_spill]] (!%p588_p2)  ;;  %v7214_v7 = vmov (!%p588_p2), 0.0   ;;  %p647_p3 = scmp.lt.s32.totalorder (!%p588_p2), %s4832_s25, 1  ;;  %vm700_vm0 = vcmask (!%p588_p2), 523264   ;;  %v7215_v42 = vmov (!%p588_p2), 0.0|0.0   ;;  %v685_v61 = vlaneseq (!%p588_p2) }
   0xc   : > { %591 = sbr.rel (%p588_p2) target bundleno = 2124 (0x84c), region = 104  ;;  %771 = vmatprep.mubr.f32.mxu0 (!%p588_p2), %v7214_v7  ;;  %s10279_s29 = sld [smem:[#allocation3_spill]] (!%p588_p2)  ;;  %vm7216_vm2 = vmmov (!%p588_p2), 0   ;;  %vm867_vm3 = vcmask (!%p588_p2), 1040384   ;;  %vm1023_vm5 = vcmask (!%p588_p2), 1046528   ;;  %vm1201_vm6 = vcmask (!%p588_p2), 1045504  }
   0xd   : > { %s10280_s1 = sld [smem:[#allocation6_spill]] (!%p588_p2)  ;;  %vm3968_vm1 = vcmp.lt.s32.totalorder (!%p588_p2), %v685_v61, 512  ;;  %s10281_s24 = sld [smem:[#allocation5_spill]] (!%p588_p2)  ;;  %vm7519_vm4 = vmneg (!%p588_p2), %vm867_vm3  ;;  %vm1301_vm7 = vcmask (!%p588_p2), 1044480   ;;  %vm994_vm8 = vcmask (!%p588_p2), 1043456   ;;  %vm1500_vm9 = vcmask (!%p588_p2), 1042432  }
   0xe   : > { %3970 = vst.msk [vmem:[#allocation2] ss:$8 sm:$0xf] (!%p588_p2), %vm3968_vm1, %v7214_v7  ;;  %3973 = vst.msk [vmem:[#allocation2 + $0x41] ss:$8 sm:$0xf] (!%p588_p2), %vm3968_vm1, %v7214_v7 }
   0xf   : > { %vm985_vm10 = vcmask (!%p588_p2), 1041408   ;;  %vm1029_vm11 = vcmask (!%p588_p2), 785408   ;;  %vm2595_vm12 = vcmask (!%p588_p2), 130048  }
  0x10   : > { %vm8655_vm13 = vmneg (!%p588_p2), %vm985_vm10 }
  0x11   : > { %v660_v0 = vld [vmem:[%s10278_s3 + $0x8] sm:$0xff] (!%p588_p2)  ;;  %v663_v1 = vld [vmem:[%s10278_s3 + $0x20] sm:$0xff] (!%p588_p2)  ;;  %v662_v4 = vld [vmem:[%s10278_s3 + $0x18] sm:$0xff] (!%p588_p2) }
  0x12   : > { %v659_v2 = vld [vmem:[%s10278_s3] sm:$0xff] (!%p588_p2)  ;;  %v6167_v3 = vpack.c.bf16 (!%p588_p2), %v663_v1, %v660_v0  ;;  %v666_v5 = vld [vmem:[%s10278_s3 + $0x38] sm:$0xff] (!%p588_p2)  ;;  %v669_v6 = vld [vmem:[%s10278_s3 + $0x50] sm:$0xff] (!%p588_p2) }
  0x13   : > { %v6169_v8 = vpack.c.bf16 %v662_v4, %v659_v2  ;;  %v6171_v9 = vpack.c.bf16 %v669_v6, %v666_v5  ;;  %v665_v10 = vld [vmem:[%s10278_s3 + $0x30] sm:$0xff]  ;;  %v668_v11 = vld [vmem:[%s10278_s3 + $0x48] sm:$0xff]  ;;  %v675_v13 = vld [vmem:[%s10278_s3 + $0x80] sm:$0xff]  ;;  %s10290_s25 = smov (!%p647_p3, %s4832_s25), 1  ;;  %v686_v4 = vshrl.u32 %v685_v61, 7 }
  0x14   : > { %v672_v12 = vld [vmem:[%s10278_s3 + $0x68] sm:$0xff]  ;;  %6168 = vmatprep.subr.bf16.mxu0 %v6167_v3  ;;  %v6173_v14 = vpack.c.bf16 %v668_v11, %v665_v10  ;;  %v671_v16 = vld [vmem:[%s10278_s3 + $0x60] sm:$0xff]  ;;  %v674_v17 = vld [vmem:[%s10278_s3 + $0x78] sm:$0xff]  ;;  %s10269_s22 = sshll.u32 %s10290_s25, 4 }
  0x15   : > { %6170 = vmatpush1.bf16.msra.mxu0 %v6169_v8  ;;  %v6175_v15 = vpack.c.bf16 %v675_v13, %v672_v12  ;;  %v678_v18 = vld [vmem:[%s10278_s3 + $0x98] sm:$0xff]  ;;  %v681_v19 = vld [vmem:[%s10278_s3 + $0xb0] sm:$0xff]  ;;  %v6177_v20 = vpack.c.bf16 %v674_v17, %v671_v16  ;;  %v680_v23 = vld [vmem:[%s10278_s3 + $0xa8] sm:$0xff]  ;;  %s7402_s0 = scalar_lea.vmem %s10279_s29, %s10269_s22  ;;  %v7497_v5 = vsub.s32 0, %v686_v4  ;;  %v7502_v8 = vsub.s32 1, %v686_v4  ;;  %s10288_s22 = sshll.u32 %s10290_s25, 4 }
  0x16   : > { %6172 = vmatprep.subr.bf16.mxu0 %v6171_v9  ;;  %v6179_v21 = vpack.c.bf16 %v681_v19, %v678_v18  ;;  %v677_v22 = vld [vmem:[%s10278_s3 + $0x90] sm:$0xff]  ;;  %v664_v25 = vld [vmem:[%s10278_s3 + $0x28] sm:$0xff]  ;;  %v667_v28 = vld [vmem:[%s10278_s3 + $0x40] sm:$0xff] }
  0x17   : > { %v661_v24 = vld [vmem:[%s10278_s3 + $0x10] sm:$0xff]  ;;  %v6181_v26 = vpack.c.bf16 %v680_v23, %v677_v22  ;;  %v670_v29 = vld [vmem:[%s10278_s3 + $0x58] sm:$0xff]  ;;  %v657_v30 = vld [vmem:[%s7402_s0] sm:$0xff] }
  0x18   : > { %v6183_v27 = vpack.c.bf16 %v664_v25, %v661_v24  ;;  %v6187_v31 = vpack.c.bf16 %v670_v29, %v667_v28  ;;  %v673_v32 = vld [vmem:[%s10278_s3 + $0x70] sm:$0xff]  ;;  %v676_v33 = vld [vmem:[%s10278_s3 + $0x88] sm:$0xff]  ;;  %v679_v36 = vld [vmem:[%s10278_s3 + $0xa0] sm:$0xff] }
  0x19   : > { %6174 = vmatpush1.bf16.msra.mxu0 %v6173_v14  ;;  %v658_v34 = vld [vmem:[%s7402_s0 + $0x8] sm:$0xff]  ;;  %v6191_v35 = vpack.c.bf16 %v676_v33, %v673_v32  ;;  %v682_v37 = vld [vmem:[%s10278_s3 + $0xb8] sm:$0xff]  ;;  %v876_v39 = vld [vmem:[%s10280_s1] sm:$0xff]  ;;  %s10285_s3 = sld [smem:[#allocation7_spill]] }
  0x1a   : > { %6176 = vmatprep.subr.bf16.mxu0 %v6175_v15  ;;  %v6195_v38 = vpack.c.bf16 %v682_v37, %v679_v36  ;;  %v877_v40 = vld [vmem:[%s10280_s1 + $0x8] sm:$0xff]  ;;  %v878_v43 = vld [vmem:[%s10280_s1 + $0x10] sm:$0xff]  ;;  %v879_v44 = vld [vmem:[%s10280_s1 + $0x18] sm:$0xff] }
  0x1b   : > { %v6200_v41 = vpack.c.bf16 %v877_v40, %v876_v39  ;;  %v6203_v45 = vpack.c.bf16 %v879_v44, %v878_v43  ;;  %v880_v46 = vld [vmem:[%s10280_s1 + $0x20] sm:$0xff]  ;;  %v881_v47 = vld [vmem:[%s10280_s1 + $0x28] sm:$0xff]  ;;  %v882_v49 = vld [vmem:[%s10280_s1 + $0x30] sm:$0xff] }
  0x1c   : > { %v6206_v48 = vpack.c.bf16 %v881_v47, %v880_v46  ;;  %v883_v50 = vld [vmem:[%s10280_s1 + $0x38] sm:$0xff]  ;;  %v884_v52 = vld [vmem:[%s10280_s1 + $0x40] sm:$0xff]  ;;  %v885_v53 = vld [vmem:[%s10280_s1 + $0x48] sm:$0xff] }
  0x1d   : > { %6178 = vmatpush1.bf16.msra.mxu0 %v6177_v20  ;;  %v6209_v51 = vpack.c.bf16 %v883_v50, %v882_v49  ;;  %v6212_v54 = vpack.c.bf16 %v885_v53, %v884_v52  ;;  %v886_v55 = vld [vmem:[%s10280_s1 + $0x50] sm:$0xff]  ;;  %v887_v56 = vld [vmem:[%s10280_s1 + $0x58] sm:$0xff]  ;;  %v888_v58 = vld [vmem:[%s10280_s1 + $0x60] sm:$0xff] }
  0x1e   : > { %6180 = vmatprep.subr.bf16.mxu0 %v6179_v21  ;;  %v6215_v57 = vpack.c.bf16 %v887_v56, %v886_v55  ;;  %v889_v59 = vld [vmem:[%s10280_s1 + $0x68] sm:$0xff]  ;;  %v890_v62 = vld [vmem:[%s10280_s1 + $0x70] sm:$0xff]  ;;  %v891_v63 = vld [vmem:[%s10280_s1 + $0x78] sm:$0xff]  ;;  %s10284_s1 = sld [smem:[#allocation8_spill]] }
  0x1f   : > { %v6218_v60 = vpack.c.bf16 %v889_v59, %v888_v58  ;;  %v6221_v0 = vpack.c.bf16 %v891_v63, %v890_v62  ;;  %v4937_v1 = vld [vmem:[%s10251_s7 + $0x108] sm:$0xff]  ;;  %v4939_v2 = vld [vmem:[%s10251_s7 + $0x118] sm:$0xff]  ;;  %v683_v6 = vld [vmem:[%s10281_s24] sm:$0x7] }
  0x20   : > { %v6391_v3 = vpack.c.bf16 %v4939_v2, %v4937_v1  ;;  %v688_v9 = vrot.slane %v683_v6, %v7497_v5  ;;  %v692_v10 = vrot.slane %v683_v6, %v7502_v8  ;;  %v4936_v15 = vld [vmem:[%s10251_s7 + $0x100] sm:$0xff]  ;;  %v4938_v16 = vld [vmem:[%s10251_s7 + $0x110] sm:$0xff]  ;;  %v4941_v18 = vld [vmem:[%s10251_s7 + $0x128] sm:$0xff] }
  0x21   : > { %6182 = vmatpush1.bf16.msra.mxu0 %v6181_v26  ;;  %v4943_v19 = vld [vmem:[%s10251_s7 + $0x138] sm:$0xff]  ;;  %v6393_v26 = vpack.c.bf16 %v4938_v16, %v4936_v15  ;;  %v4945_v33 = vld [vmem:[%s10251_s7 + $0x148] sm:$0xff]  ;;  %v4946_v43 = vld [vmem:[%s10251_s7 + $0x150] sm:$0xff] }
  0x22   : > { %6184 = vmatprep.subr.bf16.mxu0 %v6183_v27  ;;  %v6395_v29 = vpack.c.bf16 %v4943_v19, %v4941_v18  ;;  %v4951_v46 = vld [vmem:[%s10251_s7 + $0x178] sm:$0xff]  ;;  %v4950_v52 = vld [vmem:[%s10251_s7 + $0x170] sm:$0xff]  ;;  %v4953_v53 = vld [vmem:[%s10251_s7 + $0x188] sm:$0xff] }
  0x23   : > { %v4954_v62 = vld [vmem:[%s10251_s7 + $0x190] sm:$0xff]  ;;  %v4957_v63 = vld [vmem:[%s10251_s7 + $0x1a8] sm:$0xff]  ;;  %v4959_v2 = vld [vmem:[%s10251_s7 + $0x1b8] sm:$0xff] }
  0x24   : > { %4841 = vmatmul.mubr.msk.f32.vlgmr.msra.gmra.mrb[0].mxu0 %vm700_vm0, %v657_v30  ;;  %v5185_v25 = vld [vmem:[%s10255_s11 + $0x278] sm:$0xff] }
  0x25   : > { %777 = vmatprep.mubr.f32.mxu0 %v7214_v7  ;;  %6186 = vmatpush3.bf16.msra.mxu0 %v6183_v27 }
  0x26   : > { %6188 = vmatprep.subr.bf16.mxu0 %v6187_v31 }
  0x28   : > { %4842 = vmatmul.mubr.msk.f32.gmra.mrb[2].mxu0 %vm700_vm0, %v658_v34 }
  0x29   : > { %6190 = vmatpush3.bf16.msra.mxu0 %v6187_v31  ;;  %5877 = vmatprep.mubr.msk.f32.mxu0 %vm700_vm0, %v657_v30  ;;  %v4940_v30 = vld [vmem:[%s10251_s7 + $0x120] sm:$0xff]  ;;  %v4942_v31 = vld [vmem:[%s10251_s7 + $0x130] sm:$0xff] }
  0x2a   : > { %6192 = vmatprep.subr.bf16.mxu0 %v6191_v35  ;;  %v6397_v37 = vpack.c.bf16 %v4942_v31, %v4940_v30 }
  0x2d   : > { %6194 = vmatpush3.bf16.msra.mxu0 %v6191_v35 }
  0x2e   : > { %6196 = vmatprep.subr.bf16.mxu0 %v6195_v38 }
  0x31   : > { %6198 = vmatpush3.bf16.msra.mxu0 %v6195_v38  ;;  %v695_v38 = vsub.s32 2, %v686_v4  ;;  %v4958_v4 = vld [vmem:[%s10251_s7 + $0x1b0] sm:$0xff] }
  0x32   : > { %6199 = vmatprep.subr.bf16.mxu0 %v7215_v42 }
  0x33   : > { %v696_v49 = vrot.slane %v683_v6, %v695_v38 }
  0x34   : > { %5878 = vmatmul.mubr.msk.f32.vlgmr.msra.gmra.mrb[4].mxu0 %vm700_vm0, %v658_v34  ;;  %v4947_v34 = vld [vmem:[%s10251_s7 + $0x158] sm:$0xff] }
  0x35   : > { %6201 = vmatpush3.bf16.msra.mxu0 %v6200_v41  ;;  %5912 = vmatprep.mubr.msk.f32.mxu0 %vm7216_vm2, %v7214_v7  ;;  %v6399_v40 = vpack.c.bf16 %v4947_v34, %v4945_v33  ;;  %v4944_v41 = vld [vmem:[%s10251_s7 + $0x140] sm:$0xff]  ;;  %v4967_v33 = vld [vmem:[%s10251_s7 + $0x1f8] sm:$0xff] }
  0x36   : > { %6202 = vmatprep.subr.bf16.mxu0 %v7215_v42 }
  0x39   : > { %6204 = vmatpush3.bf16.msra.mxu0 %v6203_v45  ;;  %v4949_v45 = vld [vmem:[%s10251_s7 + $0x168] sm:$0xff] }
  0x3a   : > { %6205 = vmatprep.subr.bf16.mxu0 %v7215_v42  ;;  %v6403_v50 = vpack.c.bf16 %v4951_v46, %v4949_v45  ;;  %v4964_v46 = vld [vmem:[%s10251_s7 + $0x1e0] sm:$0xff] }
  0x3d   : > { %6207 = vmatpush3.bf16.msra.mxu0 %v6206_v48  ;;  %v6401_v48 = vpack.c.bf16 %v4946_v43, %v4944_v41 }
  0x3e   : > { %6208 = vmatprep.subr.bf16.mxu0 %v7215_v42 }
  0x41   : > { %6210 = vmatpush3.bf16.msra.mxu0 %v6209_v51  ;;  %v4948_v51 = vld [vmem:[%s10251_s7 + $0x160] sm:$0xff] }
  0x42   : > { %6211 = vmatprep.subr.bf16.mxu0 %v7215_v42  ;;  %v6405_v56 = vpack.c.bf16 %v4950_v52, %v4948_v51  ;;  %v1710_v51 = vld [vmem:[%s10251_s7 + $0x18] sm:$0xff] }
  0x45   : > { %6213 = vmatpush3.bf16.msra.mxu0 %v6212_v54  ;;  %v4955_v54 = vld [vmem:[%s10251_s7 + $0x198] sm:$0xff] }
  0x46   : > { %6214 = vmatprep.subr.bf16.mxu0 %v7215_v42  ;;  %v6407_v59 = vpack.c.bf16 %v4955_v54, %v4953_v53 }
  0x49   : > { %6216 = vmatpush3.bf16.msra.mxu0 %v6215_v57 }
  0x4a   : > { %6217 = vmatprep.subr.bf16.mxu0 %v7215_v42 }
  0x4d   : > { %6219 = vmatpush3.bf16.msra.mxu0 %v6218_v60  ;;  %v4952_v60 = vld [vmem:[%s10251_s7 + $0x180] sm:$0xff] }
  0x4e   : > { %6220 = vmatprep.subr.bf16.mxu0 %v7215_v42 }
  0x51   : > { %6222 = vmatpush3.bf16.msra.mxu0 %v6221_v0 }
  0x52   : > { %6392 = vmatprep.subr.bf16.mxu0 %v6391_v3  ;;  %v4956_v3 = vld [vmem:[%s10251_s7 + $0x1a0] sm:$0xff] }
  0x53   : > { %v6413_v15 = vpack.c.bf16 %v4958_v4, %v4956_v3 }
  0xf7   : > { %v773_v11 = vpop.f32.mrb[0].mxu0 }
  0xf8   : > { %v774_v12 = vadd.f32 %v773_v11, %v688_v9  ;;  %v775_v13 = vpop.f32.mrb[1].mxu0  ;;  %v6409_v11 = vpack.c.bf16 %v4954_v62, %v4952_v60 }
  0xf9   : > { %v776_v14 = vadd.f32 %v775_v13, %v692_v10  ;;  %v6411_v13 = vpack.c.bf16 %v4959_v2, %v4957_v63  ;;  %v1711_v63 = vld [vmem:[%s10251_s7 + $0x20] sm:$0xff]  ;;  %v1718_v2 = vld [vmem:[%s10251_s7 + $0x58] sm:$0xff] }
  0xfa   : > { %v859_v17 = vmax.f32 %v774_v12, 0.0 }
  0xfb   : > { %v860_v20 = vmax.f32 %v776_v14, 0.0  ;;  %v779_v21 = vpop.f32.mrb[2].mxu0 }
  0xfc   : > { %v3977_v22 = vrot.slane %v859_v17, 7  ;;  %v780_v23 = vadd.f32 %v779_v21, %v688_v9  ;;  %v781_v24 = vpop.f32.mrb[3].mxu0  ;;  %v4961_v9 = vld [vmem:[%s10251_s7 + $0x1c8] sm:$0xff] }
  0xfd   : > { %v868_v27 = vrot.slane %v860_v20, 7  ;;  %v782_v28 = vadd.f32 %v781_v24, %v692_v10  ;;  %v4963_v10 = vld [vmem:[%s10251_s7 + $0x1d8] sm:$0xff] }
  0xfe   : > { %3983 = vst [vmem:[#allocation2] sm:$0xfe] %v3977_v22  ;;  %v862_v32 = vmax.f32 %v780_v23, 0.0  ;;  %v6415_v17 = vpack.c.bf16 %v4963_v10, %v4961_v9  ;;  %v1717_v9 = vld [vmem:[%s10251_s7 + $0x50] sm:$0xff]  ;;  %v1720_v10 = vld [vmem:[%s10251_s7 + $0x68] sm:$0xff] }
  0xff   : > { %v863_v35 = vmax.f32 %v782_v28, 0.0  ;;  %5913 = vmatmul.mubr.msk.f32.vlgmr.msra.gmra.mrb[6].mxu0 %vm7519_vm4, %v868_v27 }
 0x100   : > { %v3978_v36 = vrot.slane %v862_v32, 7  ;;  %6394 = vmatpush1.bf16.msra.mxu0 %v6393_v26  ;;  %5915 = vmatprep.mubr.msk.f32.mxu0 %vm7216_vm2, %v7214_v7  ;;  %v4960_v26 = vld [vmem:[%s10251_s7 + $0x1c0] sm:$0xff]  ;;  %v4965_v32 = vld [vmem:[%s10251_s7 + $0x1e8] sm:$0xff] }
 0x101   : > { %v869_v39 = vrot.slane %v863_v35, 7  ;;  %6396 = vmatprep.subr.bf16.mxu0 %v6395_v29  ;;  %v6419_v45 = vpack.c.bf16 %v4967_v33, %v4965_v32  ;;  %v1729_v32 = vld [vmem:[%s10251_s7 + $0xb0] sm:$0xff]  ;;  %v1732_v33 = vld [vmem:[%s10251_s7 + $0xc8] sm:$0xff] }
 0x102   : > { %v3979_v44 = vsel %vm867_vm3, %v3977_v22, %v3978_v36  ;;  %3985 = vst [vmem:[#allocation2 + $0x40] sm:$0x1] %v3978_v36 }
 0x103   : > { %3984 = vst [vmem:[#allocation2 + $0x20] sm:$0xff] %v3979_v44  ;;  %v870_v47 = vsel %vm867_vm3, %v868_v27, %v869_v39  ;;  %v4962_v27 = vld [vmem:[%s10251_s7 + $0x1d0] sm:$0xff] }
 0x104   : > { %6398 = vmatpush1.bf16.msra.mxu0 %v6397_v37  ;;  %v6417_v41 = vpack.c.bf16 %v4962_v27, %v4960_v26  ;;  %v1728_v26 = vld [vmem:[%s10251_s7 + $0xa8] sm:$0xff]  ;;  %v1730_v27 = vld [vmem:[%s10251_s7 + $0xb8] sm:$0xff] }
 0x105   : > { %5916 = vmatmul.mubr.f32.gmra.mrb[8].mxu0 %v870_v47  ;;  %6400 = vmatprep.subr.bf16.mxu0 %v6399_v40  ;;  %v4966_v47 = vld [vmem:[%s10251_s7 + $0x1f0] sm:$0xff] }
 0x106   : > { %5918 = vmatprep.mubr.msk.f32.mxu0 %vm7216_vm2, %v7214_v7  ;;  %v6421_v54 = vpack.c.bf16 %v4966_v47, %v4964_v46 }
 0x107   : > { %v5879_v55 = vpop.f32.mrb[4].mxu0 }
 0x108   : > { %6402 = vmatpush1.bf16.msra.mxu0 %v6401_v48  ;;  %v856_v57 = vadd.f32 %v5879_v55, %v696_v49  ;;  %v850_v58 = vpop.f32.mrb[5].mxu0 }
 0x109   : > { %5919 = vmatmul.mubr.msk.f32.gmra.mrb[10].mxu0 %vm867_vm3, %v869_v39  ;;  %6404 = vmatprep.subr.bf16.mxu0 %v6403_v50  ;;  %v851_v0 = vadd.f32 %v850_v58, %v696_v49  ;;  %v1708_v50 = vld [vmem:[%s10251_s7 + $0x8] sm:$0xff] }
 0x10a   : > { %v864_v1 = vmax.f32 %v856_v57, 0.0  ;;  %1842 = vmatprep.mubr.f32.mxu0 %v7214_v7  ;;  %v6423_v55 = vpack.c.bf16 %v1710_v51, %v1708_v50  ;;  %v1709_v57 = vld [vmem:[%s10251_s7 + $0x10] sm:$0xff]  ;;  %v1712_v58 = vld [vmem:[%s10251_s7 + $0x28] sm:$0xff]  ;;  %v1735_v50 = vld [vmem:[%s10251_s7 + $0xe0] sm:$0xff] }
 0x10b   : > { %v861_v6 = vmax.f32 %v851_v0, 0.0  ;;  %v1713_v0 = vld [vmem:[%s10251_s7 + $0x30] sm:$0xff] }
 0x10c   : > { %6406 = vmatpush1.bf16.msra.mxu0 %v6405_v56  ;;  %v1700_v12 = vrot.slane %v864_v1, 7  ;;  %v1707_v56 = vld [vmem:[%s10251_s7] sm:$0xff]  ;;  %v1716_v1 = vld [vmem:[%s10251_s7 + $0x48] sm:$0xff]  ;;  %v6429_v3 = vpack.c.bf16 %v1713_v0, %v1711_v63  ;;  %v1737_v51 = vld [vmem:[%s10251_s7 + $0xf0] sm:$0xff] }
 0x10d   : > { %6408 = vmatprep.subr.bf16.mxu0 %v6407_v59  ;;  %v7593_v14 = vrot.slane %v861_v6, 7  ;;  %v1714_v59 = vld [vmem:[%s10251_s7 + $0x38] sm:$0xff]  ;;  %v6425_v60 = vpack.c.bf16 %v1709_v57, %v1707_v56  ;;  %v6431_v4 = vpack.c.bf16 %v1718_v2, %v1716_v1  ;;  %v1715_v6 = vld [vmem:[%s10251_s7 + $0x40] sm:$0xff]  ;;  %v6453_v56 = vpack.c.bf16 %v1737_v51, %v1735_v50  ;;  %v4976_v2 = vld [vmem:[%s10251_s7 + $0x230] sm:$0xff] }
 0x10e   : > { %v1706_v16 = vsel %vm867_vm3, %v1700_v12, 0.0  ;;  %v6427_v62 = vpack.c.bf16 %v1714_v59, %v1712_v58  ;;  %v4970_v58 = vld [vmem:[%s10251_s7 + $0x200] sm:$0xff]  ;;  %v4972_v59 = vld [vmem:[%s10251_s7 + $0x210] sm:$0xff] }
 0x10f   : > { %v7598_v18 = vsel %vm867_vm3, %v7593_v14, %v1700_v12  ;;  %v1705_v19 = vsel %vm867_vm3, 0.0, %v7593_v14  ;;  %v2326_v24 = vrot.slane %v1706_v16, 5  ;;  %v2447_v31 = vrot.slane %v1706_v16, 6  ;;  %v1721_v16 = vld [vmem:[%s10251_s7 + $0x70] sm:$0xff]  ;;  %v4974_v1 = vld [vmem:[%s10251_s7 + $0x220] sm:$0xff] }
 0x110   : > { %6410 = vmatpush1.bf16.msra.mxu0 %v6409_v11  ;;  %v1773_v20 = vrot.slane %v1705_v19, 1  ;;  %v1774_v21 = vrot.slane %v7598_v18, 1  ;;  %v1965_v22 = vrot.slane %v1705_v19, 2  ;;  %v1966_v23 = vrot.slane %v7598_v18, 2  ;;  %v1722_v11 = vld [vmem:[%s10251_s7 + $0x78] sm:$0xff]  ;;  %v4994_v50 = vld [vmem:[%s10251_s7 + $0x2c0] sm:$0xff] }
 0x111   : > { %6412 = vmatprep.subr.bf16.mxu0 %v6411_v13  ;;  %v2084_v28 = vrot.slane %v1705_v19, 3  ;;  %v2085_v29 = vrot.slane %v7598_v18, 3  ;;  %v2203_v30 = vrot.slane %v1705_v19, 4  ;;  %v2204_v36 = vrot.slane %v7598_v18, 4  ;;  %v4996_v51 = vld [vmem:[%s10251_s7 + $0x2d0] sm:$0xff] }
 0x112   : > { %v1775_v34 = vsel %vm1023_vm5, %v1773_v20, %v1774_v21  ;;  %v7621_v35 = vsel %vm1201_vm6, %v1965_v22, %v1966_v23  ;;  %v2323_v38 = vrot.slane %v1705_v19, 5  ;;  %v2324_v39 = vrot.slane %v7598_v18, 5  ;;  %v1723_v22 = vld [vmem:[%s10251_s7 + $0x80] sm:$0xff] }
 0x113   : > { %v7627_v37 = vsel %vm1301_vm7, %v2084_v28, %v2085_v29  ;;  %v2444_v40 = vrot.slane %v1705_v19, 6  ;;  %v7633_v43 = vsel %vm994_vm8, %v2203_v30, %v2204_v36  ;;  %v2445_v44 = vrot.slane %v7598_v18, 6  ;;  %v1726_v19 = vld [vmem:[%s10251_s7 + $0x98] sm:$0xff] }
 0x114   : > { %6414 = vmatpush1.bf16.msra.mxu0 %v6413_v15  ;;  %v7643_v48 = vsel %vm1500_vm9, %v2323_v38, %v2324_v39  ;;  %v7646_v49 = vsel %vm1500_vm9, %v2324_v39, %v2326_v24  ;;  %v6433_v12 = vpack.c.bf16 %v1717_v9, %v1715_v6  ;;  %v6435_v13 = vpack.c.bf16 %v1722_v11, %v1720_v10  ;;  %v1719_v15 = vld [vmem:[%s10251_s7 + $0x60] sm:$0xff]  ;;  %v1725_v24 = vld [vmem:[%s10251_s7 + $0x90] sm:$0xff] }
 0x115   : > { %6416 = vmatprep.subr.bf16.mxu0 %v6415_v17  ;;  %v7655_v52 = vsel %vm985_vm10, %v2444_v40, %v2445_v44  ;;  %v7658_v53 = vsel %vm985_vm10, %v2445_v44, %v2447_v31  ;;  %v1724_v17 = vld [vmem:[%s10251_s7 + $0x88] sm:$0xff]  ;;  %v6437_v20 = vpack.c.bf16 %v1721_v16, %v1719_v15  ;;  %v6441_v28 = vpack.c.bf16 %v1725_v24, %v1723_v22  ;;  %v1727_v31 = vld [vmem:[%s10251_s7 + $0xa0] sm:$0xff]  ;;  %v4980_v11 = vld [vmem:[%s10251_s7 + $0x250] sm:$0xff] }
 0x116   : > { %v6443_v30 = vpack.c.bf16 %v1730_v27, %v1728_v26  ;;  %v6445_v38 = vpack.c.bf16 %v1729_v32, %v1727_v31  ;;  %v1731_v40 = vld [vmem:[%s10251_s7 + $0xc0] sm:$0xff]  ;;  %v1736_v44 = vld [vmem:[%s10251_s7 + $0xe8] sm:$0xff]  ;;  %v6457_v63 = vpack.c.bf16 %v4972_v59, %v4970_v58  ;;  %v6461_v6 = vpack.c.bf16 %v4976_v2, %v4974_v1  ;;  %v4988_v26 = vld [vmem:[%s10251_s7 + $0x290] sm:$0xff] }
 0x117   : > { %v4978_v10 = vld [vmem:[%s10251_s7 + $0x240] sm:$0xff]  ;;  %v4991_v27 = vld [vmem:[%s10251_s7 + $0x2a8] sm:$0xff]  ;;  %v5005_v2 = vld [vmem:[%s10251_s7 + $0x318] sm:$0xff] }
 0x118   : > { %6418 = vmatpush1.bf16.msra.mxu0 %v6417_v41  ;;  %v1733_v41 = vld [vmem:[%s10251_s7 + $0xd0] sm:$0xff]  ;;  %v4982_v16 = vld [vmem:[%s10251_s7 + $0x260] sm:$0xff]  ;;  %v4850_v32 = vld [vmem:[%s10284_s1 + $0x68] sm:$0xff] }
 0x119   : > { %6420 = vmatprep.subr.bf16.mxu0 %v6419_v45  ;;  %v1738_v45 = vld [vmem:[%s10251_s7 + $0xf8] sm:$0xff]  ;;  %v6449_v46 = vpack.c.bf16 %v1733_v41, %v1731_v40  ;;  %v4986_v24 = vld [vmem:[%s10251_s7 + $0x280] sm:$0xff]  ;;  %v4995_v40 = vld [vmem:[%s10251_s7 + $0x2c8] sm:$0xff] }
 0x11a   : > { %v6451_v47 = vpack.c.bf16 %v1738_v45, %v1736_v44  ;;  %v4849_v31 = vld [vmem:[%s10284_s1 + $0x60] sm:$0xff]  ;;  %v4997_v41 = vld [vmem:[%s10251_s7 + $0x2d8] sm:$0xff]  ;;  %v4851_v45 = vld [vmem:[%s10284_s1 + $0x70] sm:$0xff] }
 0x11b   : > { %v4853_v58 = vld [vmem:[%s10284_s1 + $0x80] sm:$0xff]  ;;  %v4854_v59 = vld [vmem:[%s10284_s1 + $0x88] sm:$0xff] }
 0x11c   : > { %6422 = vmatpush1.bf16.msra.mxu0 %v6421_v54  ;;  %v4971_v54 = vld [vmem:[%s10251_s7 + $0x208] sm:$0xff] }
 0x11d   : > { %6424 = vmatprep.subr.bf16.mxu0 %v6423_v55  ;;  %v4973_v55 = vld [vmem:[%s10251_s7 + $0x218] sm:$0xff]  ;;  %v5003_v1 = vld [vmem:[%s10251_s7 + $0x308] sm:$0xff] }
 0x11e   : > { %v6455_v57 = vpack.c.bf16 %v4973_v55, %v4971_v54  ;;  %v4999_v55 = vld [vmem:[%s10251_s7 + $0x2e8] sm:$0xff] }
 0x11f   : > { %1843 = vmatmul.mubr.f32.vlgmr.msra.gmra.mrb[12].mxu0 %v1775_v34  ;;  %v1734_v34 = vld [vmem:[%s10251_s7 + $0xd8] sm:$0xff] }
 0x120   : > { %6426 = vmatpush1.bf16.msra.mxu0 %v6425_v60  ;;  %1848 = vmatprep.mubr.f32.mxu0 %v7214_v7  ;;  %v6447_v39 = vpack.c.bf16 %v1734_v34, %v1732_v33  ;;  %v4975_v60 = vld [vmem:[%s10251_s7 + $0x228] sm:$0xff]  ;;  %v4990_v34 = vld [vmem:[%s10251_s7 + $0x2a0] sm:$0xff] }
 0x121   : > { %6428 = vmatprep.subr.bf16.mxu0 %v6427_v62  ;;  %v4977_v62 = vld [vmem:[%s10251_s7 + $0x238] sm:$0xff] }
 0x122   : > { %v6459_v0 = vpack.c.bf16 %v4977_v62, %v4975_v60  ;;  %v4998_v62 = vld [vmem:[%s10251_s7 + $0x2e0] sm:$0xff] }
 0x123   : > { %1849 = vmatmul.mubr.f32.gmra.mrb[14].mxu0 %v1774_v21  ;;  %v6439_v21 = vpack.c.bf16 %v1726_v19, %v1724_v17  ;;  %v4984_v17 = vld [vmem:[%s10251_s7 + $0x270] sm:$0xff]  ;;  %v4987_v19 = vld [vmem:[%s10251_s7 + $0x288] sm:$0xff] }
 0x124   : > { %6430 = vmatpush1.bf16.msra.mxu0 %v6429_v3  ;;  %1919 = vmatprep.mubr.f32.mxu0 %v7214_v7  ;;  %v4979_v3 = vld [vmem:[%s10251_s7 + $0x248] sm:$0xff] }
 0x125   : > { %6432 = vmatprep.subr.bf16.mxu0 %v6431_v4  ;;  %v4981_v4 = vld [vmem:[%s10251_s7 + $0x258] sm:$0xff] }
 0x126   : > { %v6463_v9 = vpack.c.bf16 %v4981_v4, %v4979_v3  ;;  %v4855_v4 = vld [vmem:[%s10284_s1 + $0x90] sm:$0xff] }
 0x128   : > { %6434 = vmatpush1.bf16.msra.mxu0 %v6433_v12  ;;  %v4983_v12 = vld [vmem:[%s10251_s7 + $0x268] sm:$0xff] }
 0x129   : > { %6436 = vmatprep.subr.bf16.mxu0 %v6435_v13  ;;  %v6465_v13 = vpack.c.bf16 %v4980_v11, %v4978_v10  ;;  %v5002_v10 = vld [vmem:[%s10251_s7 + $0x300] sm:$0xff]  ;;  %v5004_v11 = vld [vmem:[%s10251_s7 + $0x310] sm:$0xff] }
 0x12c   : > { %6438 = vmatpush1.bf16.msra.mxu0 %v6437_v20  ;;  %v4989_v20 = vld [vmem:[%s10251_s7 + $0x298] sm:$0xff] }
 0x12d   : > { %6440 = vmatprep.subr.bf16.mxu0 %v6439_v21  ;;  %v6469_v21 = vpack.c.bf16 %v4984_v17, %v4982_v16  ;;  %v6471_v22 = vpack.c.bf16 %v4989_v20, %v4987_v19  ;;  %v4857_v16 = vld [vmem:[%s10284_s1 + $0xa0] sm:$0xff]  ;;  %v4858_v17 = vld [vmem:[%s10284_s1 + $0xa8] sm:$0xff] }
 0x12e   : > { %v5006_v20 = vld [vmem:[%s10251_s7 + $0x320] sm:$0xff] }
 0x130   : > { %6442 = vmatpush1.bf16.msra.mxu0 %v6441_v28  ;;  %v4993_v28 = vld [vmem:[%s10251_s7 + $0x2b8] sm:$0xff] }
 0x131   : > { %6444 = vmatprep.subr.bf16.mxu0 %v6443_v30  ;;  %v6473_v30 = vpack.c.bf16 %v4988_v26, %v4986_v24  ;;  %v6475_v33 = vpack.c.bf16 %v4993_v28, %v4991_v27  ;;  %v5011_v24 = vld [vmem:[%s10251_s7 + $0x348] sm:$0xff]  ;;  %v5013_v26 = vld [vmem:[%s10251_s7 + $0x358] sm:$0xff]  ;;  %v4859_v28 = vld [vmem:[%s10284_s1 + $0xb0] sm:$0xff] }
 0x134   : > { %6446 = vmatpush1.bf16.msra.mxu0 %v6445_v38  ;;  %v4992_v38 = vld [vmem:[%s10251_s7 + $0x2b0] sm:$0xff] }
 0x135   : > { %6448 = vmatprep.subr.bf16.mxu0 %v6447_v39  ;;  %v6223_v39 = vpack.c.bf16 %v4850_v32, %v4849_v31  ;;  %v6477_v44 = vpack.c.bf16 %v4992_v38, %v4990_v34  ;;  %v6495_v31 = vpack.c.bf16 %v5013_v26, %v5011_v24  ;;  %v5010_v32 = vld [vmem:[%s10251_s7 + $0x340] sm:$0xff]  ;;  %v5015_v34 = vld [vmem:[%s10251_s7 + $0x368] sm:$0xff]  ;;  %v5017_v38 = vld [vmem:[%s10251_s7 + $0x378] sm:$0xff] }
 0x136   : > { %v5041_v24 = vld [vmem:[%s10251_s7 + $0x438] sm:$0xff] }
 0x137   : > { %6224 = vmatprep.subr.bf16.mxu1 %v6223_v39 }
 0x138   : > { %6450 = vmatpush1.bf16.msra.mxu0 %v6449_v46  ;;  %6226 = vmatpush3.bf16.msra.mxu1 %v6223_v39  ;;  %v4852_v46 = vld [vmem:[%s10284_s1 + $0x78] sm:$0xff] }
 0x139   : > { %6452 = vmatprep.subr.bf16.mxu0 %v6451_v47  ;;  %v6479_v47 = vpack.c.bf16 %v4997_v41, %v4995_v40  ;;  %v6227_v54 = vpack.c.bf16 %v4852_v46, %v4851_v45  ;;  %v996_v40 = vld [vmem:[%s10284_s1] sm:$0xff]  ;;  %v997_v41 = vld [vmem:[%s10284_s1 + $0x8] sm:$0xff] }
 0x13a   : > { %v5014_v45 = vld [vmem:[%s10251_s7 + $0x360] sm:$0xff]  ;;  %v7949_v46 = vpack.c.bf16 %v997_v41, %v996_v40 }
 0x13b   : > { %6228 = vmatprep.subr.bf16.mxu1 %v6227_v54 }
 0x13c   : > { %6454 = vmatpush1.bf16.msra.mxu0 %v6453_v56  ;;  %v5001_v56 = vld [vmem:[%s10251_s7 + $0x2f8] sm:$0xff]  ;;  %6230 = vmatpush3.bf16.msra.mxu1 %v6227_v54 }
 0x13d   : > { %6456 = vmatprep.subr.bf16.mxu0 %v6455_v57  ;;  %v6481_v57 = vpack.c.bf16 %v4996_v51, %v4994_v50  ;;  %v6483_v60 = vpack.c.bf16 %v5001_v56, %v4999_v55  ;;  %v5021_v50 = vld [vmem:[%s10251_s7 + $0x398] sm:$0xff]  ;;  %v5018_v55 = vld [vmem:[%s10251_s7 + $0x380] sm:$0xff]  ;;  %v5020_v56 = vld [vmem:[%s10251_s7 + $0x390] sm:$0xff] }
 0x13f   : > { %4969 = vmatmul.mubr.msk.f32.vlgmr.msra.gmra.mrb[12].mxu0 %vm7519_vm4, %v7593_v14  ;;  %v4985_v14 = vld [vmem:[%s10251_s7 + $0x278] sm:$0xff] }
 0x140   : > { %6458 = vmatpush1.bf16.msra.mxu0 %v6457_v63  ;;  %1925 = vmatprep.mubr.f32.mxu0 %v7214_v7  ;;  %v6467_v15 = vpack.c.bf16 %v4985_v14, %v4983_v12  ;;  %v5000_v63 = vld [vmem:[%s10251_s7 + $0x2f0] sm:$0xff]  ;;  %v5007_v14 = vld [vmem:[%s10251_s7 + $0x328] sm:$0xff] }
 0x141   : > { %6460 = vmatprep.subr.bf16.mxu0 %v6459_v0  ;;  %v6231_v0 = vpack.c.bf16 %v4854_v59, %v4853_v58  ;;  %v6485_v3 = vpack.c.bf16 %v5000_v63, %v4998_v62  ;;  %v5025_v58 = vld [vmem:[%s10251_s7 + $0x3b8] sm:$0xff]  ;;  %v6505_v59 = vpack.c.bf16 %v5020_v56, %v5018_v55  ;;  %v5022_v62 = vld [vmem:[%s10251_s7 + $0x3a0] sm:$0xff]  ;;  %v5024_v63 = vld [vmem:[%s10251_s7 + $0x3b0] sm:$0xff] }
 0x142   : > { %v5055_v55 = vld [vmem:[%s10251_s7 + $0x4a8] sm:$0xff]  ;;  %v5057_v56 = vld [vmem:[%s10251_s7 + $0x4b8] sm:$0xff] }
 0x143   : > { %1926 = vmatmul.mubr.f32.gmra.mrb[14].mxu0 %v7598_v18  ;;  %6232 = vmatprep.subr.bf16.mxu1 %v6231_v0  ;;  %v5085_v18 = vld [vmem:[%s10251_s7 + $0x598] sm:$0xff] }
 0x144   : > { %6462 = vmatpush1.bf16.msra.mxu0 %v6461_v6  ;;  %2034 = vmatprep.mubr.f32.mxu0 %v7214_v7  ;;  %v4856_v6 = vld [vmem:[%s10284_s1 + $0x98] sm:$0xff] }
 0x145   : > { %6464 = vmatprep.subr.bf16.mxu0 %v6463_v9  ;;  %6234 = vmatpush3.bf16.msra.mxu1 %v6231_v0  ;;  %v6487_v9 = vpack.c.bf16 %v5005_v2, %v5003_v1  ;;  %v6235_v12 = vpack.c.bf16 %v4856_v6, %v4855_v4  ;;  %v5027_v0 = vld [vmem:[%s10251_s7 + $0x3c8] sm:$0xff]  ;;  %v5029_v1 = vld [vmem:[%s10251_s7 + $0x3d8] sm:$0xff]  ;;  %v6509_v2 = vpack.c.bf16 %v5024_v63, %v5022_v62  ;;  %v5026_v4 = vld [vmem:[%s10251_s7 + $0x3c0] sm:$0xff] }
 0x146   : > { %v5028_v6 = vld [vmem:[%s10251_s7 + $0x3d0] sm:$0xff]  ;;  %v5059_v62 = vld [vmem:[%s10251_s7 + $0x4c8] sm:$0xff]  ;;  %v5061_v63 = vld [vmem:[%s10251_s7 + $0x4d8] sm:$0xff] }
 0x147   : > { %6236 = vmatprep.subr.bf16.mxu1 %v6235_v12 }
 0x148   : > { %6466 = vmatpush1.bf16.msra.mxu0 %v6465_v13  ;;  %v5009_v13 = vld [vmem:[%s10251_s7 + $0x338] sm:$0xff] }
 0x149   : > { %6468 = vmatprep.subr.bf16.mxu0 %v6467_v15  ;;  %v6489_v15 = vpack.c.bf16 %v5004_v11, %v5002_v10  ;;  %6238 = vmatpush3.bf16.msra.mxu1 %v6235_v12  ;;  %v6491_v19 = vpack.c.bf16 %v5009_v13, %v5007_v14  ;;  %v5033_v10 = vld [vmem:[%s10251_s7 + $0x3f8] sm:$0xff]  ;;  %v6513_v11 = vpack.c.bf16 %v5028_v6, %v5026_v4  ;;  %v5030_v14 = vld [vmem:[%s10251_s7 + $0x3e0] sm:$0xff]  ;;  %v5032_v13 = vld [vmem:[%s10251_s7 + $0x3f0] sm:$0xff] }
 0x14a   : > { %v5063_v4 = vld [vmem:[%s10251_s7 + $0x4e8] sm:$0xff]  ;;  %v5065_v6 = vld [vmem:[%s10251_s7 + $0x4f8] sm:$0xff] }
 0x14c   : > { %6470 = vmatpush1.bf16.msra.mxu0 %v6469_v21  ;;  %v5008_v21 = vld [vmem:[%s10251_s7 + $0x330] sm:$0xff] }
 0x14d   : > { %6472 = vmatprep.subr.bf16.mxu0 %v6471_v22  ;;  %v6239_v22 = vpack.c.bf16 %v4858_v17, %v4857_v16  ;;  %v6493_v27 = vpack.c.bf16 %v5008_v21, %v5006_v20  ;;  %v5037_v16 = vld [vmem:[%s10251_s7 + $0x418] sm:$0xff]  ;;  %v6517_v17 = vpack.c.bf16 %v5032_v13, %v5030_v14  ;;  %v5034_v20 = vld [vmem:[%s10251_s7 + $0x400] sm:$0xff]  ;;  %v5036_v21 = vld [vmem:[%s10251_s7 + $0x410] sm:$0xff] }
 0x14e   : > { %v6521_v26 = vpack.c.bf16 %v5036_v21, %v5034_v20  ;;  %v5067_v14 = vld [vmem:[%s10251_s7 + $0x508] sm:$0xff]  ;;  %v5069_v13 = vld [vmem:[%s10251_s7 + $0x518] sm:$0xff] }
 0x14f   : > { %6240 = vmatprep.subr.bf16.mxu1 %v6239_v22  ;;  %v5071_v20 = vld [vmem:[%s10251_s7 + $0x528] sm:$0xff]  ;;  %v5073_v21 = vld [vmem:[%s10251_s7 + $0x538] sm:$0xff] }
 0x150   : > { %6474 = vmatpush1.bf16.msra.mxu0 %v6473_v30  ;;  %v4860_v30 = vld [vmem:[%s10284_s1 + $0xb8] sm:$0xff]  ;;  %6242 = vmatpush3.bf16.msra.mxu1 %v6239_v22  ;;  %v5039_v22 = vld [vmem:[%s10251_s7 + $0x428] sm:$0xff] }
 0x151   : > { %6476 = vmatprep.subr.bf16.mxu0 %v6475_v33  ;;  %v6243_v33 = vpack.c.bf16 %v4860_v30, %v4859_v28  ;;  %v5038_v28 = vld [vmem:[%s10251_s7 + $0x420] sm:$0xff]  ;;  %v5040_v30 = vld [vmem:[%s10251_s7 + $0x430] sm:$0xff] }
 0x153   : > { %6244 = vmatprep.subr.bf16.mxu1 %v6243_v33 }
 0x154   : > { %6478 = vmatpush1.bf16.msra.mxu0 %v6477_v44  ;;  %v6499_v44 = vpack.c.bf16 %v5017_v38, %v5015_v34  ;;  %6246 = vmatpush3.bf16.msra.mxu1 %v6243_v33  ;;  %v5042_v34 = vld [vmem:[%s10251_s7 + $0x440] sm:$0xff]  ;;  %v5044_v38 = vld [vmem:[%s10251_s7 + $0x450] sm:$0xff] }
 0x155   : > { %6480 = vmatprep.subr.bf16.mxu0 %v6479_v47  ;;  %v5019_v47 = vld [vmem:[%s10251_s7 + $0x388] sm:$0xff]  ;;  %6248 = vmatprep.subr.bf16.mxu1 %v7949_v46  ;;  %v6529_v40 = vpack.c.bf16 %v5044_v38, %v5042_v34 }
 0x156   : > { %v6503_v54 = vpack.c.bf16 %v5021_v50, %v5019_v47  ;;  %v5079_v34 = vld [vmem:[%s10251_s7 + $0x568] sm:$0xff] }
 0x158   : > { %6482 = vmatpush1.bf16.msra.mxu0 %v6481_v57  ;;  %v5023_v57 = vld [vmem:[%s10251_s7 + $0x3a8] sm:$0xff] }
 0x159   : > { %6484 = vmatprep.subr.bf16.mxu0 %v6483_v60  ;;  %v6507_v60 = vpack.c.bf16 %v5025_v58, %v5023_v57  ;;  %v6539_v58 = vpack.c.bf16 %v5057_v56, %v5055_v55  ;;  %v5088_v55 = vld [vmem:[%s10251_s7 + $0x5b0] sm:$0xff]  ;;  %v5091_v56 = vld [vmem:[%s10251_s7 + $0x5c8] sm:$0xff] }
 0x15c   : > { %6486 = vmatpush1.bf16.msra.mxu0 %v6485_v3  ;;  %v6511_v3 = vpack.c.bf16 %v5029_v1, %v5027_v0  ;;  %v6543_v1 = vpack.c.bf16 %v5061_v63, %v5059_v62  ;;  %v5092_v62 = vld [vmem:[%s10251_s7 + $0x5d0] sm:$0xff]  ;;  %v5095_v63 = vld [vmem:[%s10251_s7 + $0x5e8] sm:$0xff] }
 0x15d   : > { %6488 = vmatprep.subr.bf16.mxu0 %v6487_v9  ;;  %v5031_v9 = vld [vmem:[%s10251_s7 + $0x3e8] sm:$0xff] }
 0x15e   : > { %v6515_v12 = vpack.c.bf16 %v5033_v10, %v5031_v9  ;;  %v6547_v10 = vpack.c.bf16 %v5065_v6, %v5063_v4  ;;  %v5096_v4 = vld [vmem:[%s10251_s7 + $0x5f0] sm:$0xff]  ;;  %v5099_v6 = vld [vmem:[%s10251_s7 + $0x608] sm:$0xff] }
 0x15f   : > { %2035 = vmatmul.mubr.f32.vlgmr.msra.gmra.mrb[12].mxu0 %v7621_v35  ;;  %v5012_v35 = vld [vmem:[%s10251_s7 + $0x350] sm:$0xff] }
 0x160   : > { %6490 = vmatpush1.bf16.msra.mxu0 %v6489_v15  ;;  %2040 = vmatprep.mubr.f32.mxu0 %v7214_v7  ;;  %v6497_v39 = vpack.c.bf16 %v5012_v35, %v5010_v32  ;;  %v5035_v15 = vld [vmem:[%s10251_s7 + $0x408] sm:$0xff]  ;;  %v5045_v32 = vld [vmem:[%s10251_s7 + $0x458] sm:$0xff]  ;;  %v6525_v35 = vpack.c.bf16 %v5040_v30, %v5038_v28 }
 0x161   : > { %6492 = vmatprep.subr.bf16.mxu0 %v6491_v19  ;;  %v6519_v19 = vpack.c.bf16 %v5037_v16, %v5035_v15  ;;  %v6551_v16 = vpack.c.bf16 %v5069_v13, %v5067_v14  ;;  %v5075_v28 = vld [vmem:[%s10251_s7 + $0x548] sm:$0xff]  ;;  %v5077_v30 = vld [vmem:[%s10251_s7 + $0x558] sm:$0xff]  ;;  %v5100_v14 = vld [vmem:[%s10251_s7 + $0x610] sm:$0xff] }
 0x162   : > { %v5103_v13 = vld [vmem:[%s10251_s7 + $0x628] sm:$0xff] }
 0x163   : > { %2041 = vmatmul.mubr.f32.gmra.mrb[14].mxu0 %v1966_v23  ;;  %v5016_v23 = vld [vmem:[%s10251_s7 + $0x370] sm:$0xff] }
 0x164   : > { %6494 = vmatpush1.bf16.msra.mxu0 %v6493_v27  ;;  %2153 = vmatprep.mubr.f32.mxu0 %v7214_v7  ;;  %v6501_v51 = vpack.c.bf16 %v5016_v23, %v5014_v45  ;;  %v6523_v27 = vpack.c.bf16 %v5041_v24, %v5039_v22  ;;  %v5048_v45 = vld [vmem:[%s10251_s7 + $0x470] sm:$0xff]  ;;  %v5051_v23 = vld [vmem:[%s10251_s7 + $0x488] sm:$0xff]  ;;  %v6555_v24 = vpack.c.bf16 %v5073_v21, %v5071_v20 }
 0x165   : > { %6496 = vmatprep.subr.bf16.mxu0 %v6495_v31  ;;  %v5043_v31 = vld [vmem:[%s10251_s7 + $0x448] sm:$0xff]  ;;  %v5104_v20 = vld [vmem:[%s10251_s7 + $0x630] sm:$0xff] }
 0x166   : > { %v6527_v33 = vpack.c.bf16 %v5045_v32, %v5043_v31  ;;  %v6559_v32 = vpack.c.bf16 %v5077_v30, %v5075_v28  ;;  %v5107_v21 = vld [vmem:[%s10251_s7 + $0x648] sm:$0xff]  ;;  %v5108_v28 = vld [vmem:[%s10251_s7 + $0x650] sm:$0xff] }
 0x167   : > { %v5111_v30 = vld [vmem:[%s10251_s7 + $0x668] sm:$0xff] }
 0x168   : > { %6498 = vmatpush1.bf16.msra.mxu0 %v6497_v39  ;;  %v5047_v39 = vld [vmem:[%s10251_s7 + $0x468] sm:$0xff] }
 0x169   : > { %6500 = vmatprep.subr.bf16.mxu0 %v6499_v44  ;;  %v5046_v44 = vld [vmem:[%s10251_s7 + $0x460] sm:$0xff] }
 0x16a   : > { %v6533_v47 = vpack.c.bf16 %v5048_v45, %v5046_v44  ;;  %v5082_v45 = vld [vmem:[%s10251_s7 + $0x580] sm:$0xff] }
 0x16c   : > { %6502 = vmatpush1.bf16.msra.mxu0 %v6501_v51  ;;  %v5050_v51 = vld [vmem:[%s10251_s7 + $0x480] sm:$0xff] }
 0x16d   : > { %6504 = vmatprep.subr.bf16.mxu0 %v6503_v54  ;;  %v5052_v54 = vld [vmem:[%s10251_s7 + $0x490] sm:$0xff] }
 0x16e   : > { %v6537_v57 = vpack.c.bf16 %v5052_v54, %v5050_v51  ;;  %v5086_v54 = vld [vmem:[%s10251_s7 + $0x5a0] sm:$0xff] }
 0x170   : > { %6506 = vmatpush1.bf16.msra.mxu0 %v6505_v59  ;;  %v5054_v59 = vld [vmem:[%s10251_s7 + $0x4a0] sm:$0xff] }
 0x171   : > { %6508 = vmatprep.subr.bf16.mxu0 %v6507_v60  ;;  %v5056_v60 = vld [vmem:[%s10251_s7 + $0x4b0] sm:$0xff] }
 0x172   : > { %v6541_v0 = vpack.c.bf16 %v5056_v60, %v5054_v59  ;;  %v5090_v60 = vld [vmem:[%s10251_s7 + $0x5c0] sm:$0xff] }
 0x174   : > { %6510 = vmatpush1.bf16.msra.mxu0 %v6509_v2  ;;  %v5058_v2 = vld [vmem:[%s10251_s7 + $0x4c0] sm:$0xff] }
 0x175   : > { %6512 = vmatprep.subr.bf16.mxu0 %v6511_v3  ;;  %v5060_v3 = vld [vmem:[%s10251_s7 + $0x4d0] sm:$0xff] }
 0x176   : > { %v6545_v9 = vpack.c.bf16 %v5060_v3, %v5058_v2  ;;  %v5094_v3 = vld [vmem:[%s10251_s7 + $0x5e0] sm:$0xff] }
 0x178   : > { %6514 = vmatpush1.bf16.msra.mxu0 %v6513_v11  ;;  %v5062_v11 = vld [vmem:[%s10251_s7 + $0x4e0] sm:$0xff] }
 0x179   : > { %6516 = vmatprep.subr.bf16.mxu0 %v6515_v12  ;;  %v5064_v12 = vld [vmem:[%s10251_s7 + $0x4f0] sm:$0xff] }
 0x17a   : > { %v6549_v15 = vpack.c.bf16 %v5064_v12, %v5062_v11  ;;  %v5098_v12 = vld [vmem:[%s10251_s7 + $0x600] sm:$0xff] }
 0x17c   : > { %6518 = vmatpush1.bf16.msra.mxu0 %v6517_v17  ;;  %v5066_v17 = vld [vmem:[%s10251_s7 + $0x500] sm:$0xff] }
 0x17d   : > { %6520 = vmatprep.subr.bf16.mxu0 %v6519_v19  ;;  %v5068_v19 = vld [vmem:[%s10251_s7 + $0x510] sm:$0xff] }
 0x17e   : > { %v6553_v22 = vpack.c.bf16 %v5068_v19, %v5066_v17  ;;  %v5102_v19 = vld [vmem:[%s10251_s7 + $0x620] sm:$0xff] }
 0x17f   : > { %2154 = vmatmul.mubr.f32.vlgmr.msra.gmra.mrb[12].mxu0 %v7627_v37  ;;  %v5049_v37 = vld [vmem:[%s10251_s7 + $0x478] sm:$0xff] }
 0x180   : > { %6522 = vmatpush1.bf16.msra.mxu0 %v6521_v26  ;;  %2159 = vmatprep.mubr.f32.mxu0 %v7214_v7  ;;  %v6531_v41 = vpack.c.bf16 %v5049_v37, %v5047_v39  ;;  %v5070_v26 = vld [vmem:[%s10251_s7 + $0x520] sm:$0xff] }
 0x181   : > { %6524 = vmatprep.subr.bf16.mxu0 %v6523_v27  ;;  %v5072_v27 = vld [vmem:[%s10251_s7 + $0x530] sm:$0xff]  ;;  %v5078_v37 = vld [vmem:[%s10251_s7 + $0x560] sm:$0xff] }
 0x182   : > { %v6557_v31 = vpack.c.bf16 %v5072_v27, %v5070_v26  ;;  %v5106_v27 = vld [vmem:[%s10251_s7 + $0x640] sm:$0xff] }
 0x183   : > { %2160 = vmatmul.mubr.f32.gmra.mrb[14].mxu0 %v2085_v29  ;;  %v5053_v29 = vld [vmem:[%s10251_s7 + $0x498] sm:$0xff] }
 0x184   : > { %6526 = vmatpush1.bf16.msra.mxu0 %v6525_v35  ;;  %2272 = vmatprep.mubr.f32.mxu0 %v7214_v7  ;;  %v6535_v50 = vpack.c.bf16 %v5053_v29, %v5051_v23  ;;  %v5074_v35 = vld [vmem:[%s10251_s7 + $0x540] sm:$0xff]  ;;  %v5084_v23 = vld [vmem:[%s10251_s7 + $0x590] sm:$0xff]  ;;  %v5087_v29 = vld [vmem:[%s10251_s7 + $0x5a8] sm:$0xff] }
 0x185   : > { %6528 = vmatprep.subr.bf16.mxu0 %v6527_v33  ;;  %v5076_v33 = vld [vmem:[%s10251_s7 + $0x550] sm:$0xff] }
 0x186   : > { %v6561_v38 = vpack.c.bf16 %v5076_v33, %v5074_v35  ;;  %v5110_v35 = vld [vmem:[%s10251_s7 + $0x660] sm:$0xff]  ;;  %v5112_v33 = vld [vmem:[%s10251_s7 + $0x670] sm:$0xff] }
 0x188   : > { %6530 = vmatpush1.bf16.msra.mxu0 %v6529_v40  ;;  %v5080_v40 = vld [vmem:[%s10251_s7 + $0x570] sm:$0xff] }
 0x189   : > { %6532 = vmatprep.subr.bf16.mxu0 %v6531_v41  ;;  %v5083_v41 = vld [vmem:[%s10251_s7 + $0x588] sm:$0xff] }
 0x18a   : > { %v6567_v44 = vpack.c.bf16 %v5085_v18, %v5083_v41  ;;  %v5121_v41 = vld [vmem:[%s10251_s7 + $0x6b8] sm:$0xff] }
 0x18c   : > { %6534 = vmatpush1.bf16.msra.mxu0 %v6533_v47  ;;  %v5089_v47 = vld [vmem:[%s10251_s7 + $0x5b8] sm:$0xff] }
 0x18d   : > { %6536 = vmatprep.subr.bf16.mxu0 %v6535_v50  ;;  %v6569_v50 = vpack.c.bf16 %v5084_v23, %v5082_v45  ;;  %v6571_v51 = vpack.c.bf16 %v5089_v47, %v5087_v29  ;;  %v5120_v45 = vld [vmem:[%s10251_s7 + $0x6b0] sm:$0xff]  ;;  %v5123_v23 = vld [vmem:[%s10251_s7 + $0x6c8] sm:$0xff]  ;;  %v5125_v29 = vld [vmem:[%s10251_s7 + $0x6d8] sm:$0xff] }
 0x18e   : > { %v4845_v47 = vld [vmem:[%s10285_s3] ss:$0 sm:$0xff]  ;;  %s656_s3 = scalar_lea.vmem %s10265_s21, %s10288_s22 }
 0x190   : > { %6538 = vmatpush1.bf16.msra.mxu0 %v6537_v57  ;;  %v5093_v57 = vld [vmem:[%s10251_s7 + $0x5d8] sm:$0xff] }
 0x191   : > { %6540 = vmatprep.subr.bf16.mxu0 %v6539_v58  ;;  %v6573_v58 = vpack.c.bf16 %v5088_v55, %v5086_v54  ;;  %v6575_v59 = vpack.c.bf16 %v5093_v57, %v5091_v56  ;;  %v5122_v54 = vld [vmem:[%s10251_s7 + $0x6c0] sm:$0xff]  ;;  %v5124_v55 = vld [vmem:[%s10251_s7 + $0x6d0] sm:$0xff]  ;;  %v5127_v57 = vld [vmem:[%s10251_s7 + $0x6e8] sm:$0xff] }
 0x194   : > { %6542 = vmatpush1.bf16.msra.mxu0 %v6541_v0  ;;  %v5097_v0 = vld [vmem:[%s10251_s7 + $0x5f8] sm:$0xff] }
 0x195   : > { %6544 = vmatprep.subr.bf16.mxu0 %v6543_v1  ;;  %v6577_v1 = vpack.c.bf16 %v5092_v62, %v5090_v60  ;;  %v6579_v2 = vpack.c.bf16 %v5097_v0, %v5095_v63  ;;  %v6609_v62 = vpack.c.bf16 %v5124_v55, %v5122_v54  ;;  %v1001_v54 = vld [vmem:[%s10284_s1 + $0x28] sm:$0xff] }
 0x198   : > { %6546 = vmatpush1.bf16.msra.mxu0 %v6545_v9  ;;  %v5101_v9 = vld [vmem:[%s10251_s7 + $0x618] sm:$0xff] }
 0x199   : > { %6548 = vmatprep.subr.bf16.mxu0 %v6547_v10  ;;  %v6581_v10 = vpack.c.bf16 %v5096_v4, %v5094_v3  ;;  %v6583_v11 = vpack.c.bf16 %v5101_v9, %v5099_v6 }
 0x19c   : > { %6550 = vmatpush1.bf16.msra.mxu0 %v6549_v15  ;;  %v5105_v15 = vld [vmem:[%s10251_s7 + $0x638] sm:$0xff] }
 0x19d   : > { %6552 = vmatprep.subr.bf16.mxu0 %v6551_v16  ;;  %v6585_v16 = vpack.c.bf16 %v5100_v14, %v5098_v12  ;;  %v6587_v17 = vpack.c.bf16 %v5105_v15, %v5103_v13 }
 0x19f   : > { %2273 = vmatmul.mubr.f32.vlgmr.msra.gmra.mrb[12].mxu0 %v7633_v43  ;;  %v5081_v43 = vld [vmem:[%s10251_s7 + $0x578] sm:$0xff] }
 0x1a0   : > { %6554 = vmatpush1.bf16.msra.mxu0 %v6553_v22  ;;  %2278 = vmatprep.mubr.f32.mxu0 %v7214_v7  ;;  %v6563_v39 = vpack.c.bf16 %v5081_v43, %v5079_v34  ;;  %v5109_v22 = vld [vmem:[%s10251_s7 + $0x658] sm:$0xff]  ;;  %v5115_v34 = vld [vmem:[%s10251_s7 + $0x688] sm:$0xff]  ;;  %v6597_v43 = vpack.c.bf16 %v5112_v33, %v5110_v35 }
 0x1a1   : > { %6556 = vmatprep.subr.bf16.mxu0 %v6555_v24  ;;  %v6589_v24 = vpack.c.bf16 %v5104_v20, %v5102_v19  ;;  %v6591_v26 = vpack.c.bf16 %v5109_v22, %v5107_v21 }
 0x1a3   : > { %2279 = vmatmul.mubr.f32.gmra.mrb[14].mxu0 %v2204_v36  ;;  %v6565_v36 = vpack.c.bf16 %v5080_v40, %v5078_v37  ;;  %v5116_v37 = vld [vmem:[%s10251_s7 + $0x690] sm:$0xff]  ;;  %v5119_v40 = vld [vmem:[%s10251_s7 + $0x6a8] sm:$0xff] }
 0x1a4   : > { %6558 = vmatpush1.bf16.msra.mxu0 %v6557_v31  ;;  %2394 = vmatprep.mubr.f32.mxu0 %v7214_v7  ;;  %v6593_v31 = vpack.c.bf16 %v5108_v28, %v5106_v27 }
 0x1a5   : > { %6560 = vmatprep.subr.bf16.mxu0 %v6559_v32 }
 0x1a8   : > { %6562 = vmatpush1.bf16.msra.mxu0 %v6561_v38 }
 0x1a9   : > { %6564 = vmatprep.subr.bf16.mxu0 %v6563_v39  ;;  %v5114_v39 = vld [vmem:[%s10251_s7 + $0x680] sm:$0xff] }
 0x1aa   : > { %v6601_v18 = vpack.c.bf16 %v5116_v37, %v5114_v39  ;;  %v998_v39 = vld [vmem:[%s10284_s1 + $0x10] sm:$0xff]  ;;  %v999_v37 = vld [vmem:[%s10284_s1 + $0x18] sm:$0xff] }
 0x1ac   : > { %6566 = vmatpush1.bf16.msra.mxu0 %v6565_v36  ;;  %v6603_v36 = vpack.c.bf16 %v5121_v41, %v5119_v40 }
 0x1ad   : > { %6568 = vmatprep.subr.bf16.mxu0 %v6567_v44  ;;  %v5118_v44 = vld [vmem:[%s10251_s7 + $0x6a0] sm:$0xff] }
 0x1b0   : > { %6570 = vmatpush1.bf16.msra.mxu0 %v6569_v50  ;;  %v6605_v50 = vpack.c.bf16 %v5120_v45, %v5118_v44 }
 0x1b1   : > { %6572 = vmatprep.subr.bf16.mxu0 %v6571_v51  ;;  %v6607_v51 = vpack.c.bf16 %v5125_v29, %v5123_v23  ;;  %v6251_v23 = vpack.c.bf16 %v999_v37, %v998_v39  ;;  %v4885_v37 = vld [vmem:[%s10284_s1 + $0x150] sm:$0xff] }
 0x1b4   : > { %6574 = vmatpush1.bf16.msra.mxu0 %v6573_v58  ;;  %v5129_v58 = vld [vmem:[%s10251_s7 + $0x6f8] sm:$0xff] }
 0x1b5   : > { %6576 = vmatprep.subr.bf16.mxu0 %v6575_v59  ;;  %v6611_v0 = vpack.c.bf16 %v5129_v58, %v5127_v57 }
 0x1b8   : > { %6578 = vmatpush1.bf16.msra.mxu0 %v6577_v1  ;;  %v5126_v1 = vld [vmem:[%s10251_s7 + $0x6e0] sm:$0xff] }
 0x1b9   : > { %6580 = vmatprep.subr.bf16.mxu0 %v6579_v2  ;;  %v5128_v2 = vld [vmem:[%s10251_s7 + $0x6f0] sm:$0xff] }
 0x1ba   : > { %v6613_v6 = vpack.c.bf16 %v5128_v2, %v5126_v1  ;;  %v1004_v1 = vld [vmem:[%s10284_s1 + $0x40] sm:$0xff] }
 0x1bc   : > { %6582 = vmatpush1.bf16.msra.mxu0 %v6581_v10 }
 0x1bd   : > { %6584 = vmatprep.subr.bf16.mxu0 %v6583_v11 }
 0x1bf   : > { %2395 = vmatmul.mubr.f32.vlgmr.msra.gmra.mrb[12].mxu0 %v7643_v48  ;;  %v5113_v48 = vld [vmem:[%s10251_s7 + $0x678] sm:$0xff] }
 0x1c0   : > { %6586 = vmatpush1.bf16.msra.mxu0 %v6585_v16  ;;  %2400 = vmatprep.mubr.f32.mxu0 %v7214_v7  ;;  %v6595_v32 = vpack.c.bf16 %v5113_v48, %v5111_v30 }
 0x1c1   : > { %6588 = vmatprep.subr.bf16.mxu0 %v6587_v17 }
 0x1c3   : > { %2401 = vmatmul.mubr.f32.gmra.mrb[14].mxu0 %v7646_v49  ;;  %v5117_v49 = vld [vmem:[%s10251_s7 + $0x698] sm:$0xff] }
 0x1c4   : > { %6590 = vmatpush1.bf16.msra.mxu0 %v6589_v24  ;;  %2515 = vmatprep.mubr.f32.mxu0 %v7214_v7  ;;  %v6599_v38 = vpack.c.bf16 %v5117_v49, %v5115_v34 }
 0x1c5   : > { %6592 = vmatprep.subr.bf16.mxu0 %v6591_v26 }
 0x1c8   : > { %6594 = vmatpush1.bf16.msra.mxu0 %v6593_v31 }
 0x1c9   : > { %6596 = vmatprep.subr.bf16.mxu0 %v6595_v32 }
 0x1cc   : > { %6598 = vmatpush1.bf16.msra.mxu0 %v6597_v43 }
 0x1cd   : > { %6600 = vmatprep.subr.bf16.mxu0 %v6599_v38 }
 0x1d0   : > { %6602 = vmatpush1.bf16.msra.mxu0 %v6601_v18 }
 0x1d1   : > { %6604 = vmatprep.subr.bf16.mxu0 %v6603_v36 }
 0x1d2   : > { %v965_v56 = vpop.f32.mrb[6].mxu0 }
 0x1d3   : > { %v966_v59 = vadd.f32 %v4845_v47, %v965_v56  ;;  %v5914_v60 = vpop.f32.mrb[7].mxu0 }
 0x1d4   : > { %6606 = vmatpush1.bf16.msra.mxu0 %v6605_v50 }
 0x1d5   : > { %v979_v63 = vmax.f32 %v966_v59, 0.0  ;;  %6608 = vmatprep.subr.bf16.mxu0 %v6607_v51  ;;  %v1000_v51 = vld [vmem:[%s10284_s1 + $0x20] sm:$0xff] }
 0x1d6   : > { %v6255_v60 = vpack.c.bf16 %v1001_v54, %v1000_v51  ;;  %v4895_v54 = vld [vmem:[%s10284_s1 + $0x190] sm:$0xff] }
 0x1d7   : > { %v986_v3 = vrot.slane %v979_v63, 6  ;;  %v1003_v63 = vld [vmem:[%s10284_s1 + $0x38] sm:$0xff] }
 0x1d8   : > { %v970_v4 = vpop.f32.mrb[8].mxu0  ;;  %6610 = vmatpush1.bf16.msra.mxu0 %v6609_v62  ;;  %v1002_v62 = vld [vmem:[%s10284_s1 + $0x30] sm:$0xff] }
 0x1d9   : > { %v971_v9 = vadd.f32 %v4845_v47, %v970_v4  ;;  %v5917_v10 = vpop.f32.mrb[9].mxu0  ;;  %6612 = vmatprep.subr.bf16.mxu0 %v6611_v0  ;;  %v993_v11 = vsel %vm985_vm10, 0.0, %v986_v3  ;;  %v6259_v0 = vpack.c.bf16 %v1003_v63, %v1002_v62  ;;  %v1007_v4 = vld [vmem:[%s10284_s1 + $0x58] sm:$0xff]  ;;  %v4897_v62 = vld [vmem:[%s10284_s1 + $0x1a0] sm:$0xff]  ;;  %v4898_v63 = vld [vmem:[%s10284_s1 + $0x1a8] sm:$0xff] }
 0x1da   : > { %v1024_v17 = vrot.slane %v993_v11, 1  ;;  %v1202_v19 = vrot.slane %v993_v11, 2  ;;  %v1302_v20 = vrot.slane %v993_v11, 3  ;;  %v1401_v24 = vrot.slane %v993_v11, 4  ;;  %v4866_v10 = vld [vmem:[%s10284_s1 + $0xc8] sm:$0xff] }
 0x1db   : > { %v980_v12 = vmax.f32 %v971_v9, 0.0  ;;  %v1501_v26 = vrot.slane %v993_v11, 5  ;;  %v1600_v35 = vrot.slane %v993_v11, 6  ;;  %v4865_v9 = vld [vmem:[%s10284_s1 + $0xc0] sm:$0xff] }
 0x1dc   : > { %v975_v14 = vpop.f32.mrb[10].mxu0  ;;  %6614 = vmatpush1.bf16.msra.mxu0 %v6613_v6 }
 0x1dd   : > { %v987_v13 = vrot.slane %v980_v12, 6  ;;  %v976_v15 = vadd.f32 %v4845_v47, %v975_v14  ;;  %v5920_v16 = vpop.f32.mrb[11].mxu0  ;;  %6866 = vmatprep.subr.bf16.mxu0 %v7215_v42  ;;  %v4867_v12 = vld [vmem:[%s10284_s1 + $0xd0] sm:$0xff]  ;;  %v4868_v14 = vld [vmem:[%s10284_s1 + $0xd8] sm:$0xff] }
 0x1de   : > { %v4870_v16 = vld [vmem:[%s10284_s1 + $0xe8] sm:$0xff] }
 0x1df   : > { %v8308_v21 = vsel %vm985_vm10, %v986_v3, %v987_v13  ;;  %v981_v22 = vmax.f32 %v976_v15, 0.0  ;;  %2516 = vmatmul.mubr.f32.vlgmr.msra.gmra.mrb[12].mxu0 %v7655_v52  ;;  %v1006_v3 = vld [vmem:[%s10284_s1 + $0x50] sm:$0xff]  ;;  %v4869_v15 = vld [vmem:[%s10284_s1 + $0xe0] sm:$0xff] }
 0x1e0   : > { %2521 = vmatprep.mubr.f32.mxu0 %v7214_v7  ;;  %v1025_v27 = vrot.slane %v8308_v21, 1  ;;  %v1203_v28 = vrot.slane %v8308_v21, 2  ;;  %v1303_v30 = vrot.slane %v8308_v21, 3  ;;  %v1402_v48 = vrot.slane %v8308_v21, 4 }
 0x1e1   : > { %v989_v31 = vrot.slane %v981_v22, 6  ;;  %v1502_v32 = vrot.slane %v8308_v21, 5  ;;  %v1601_v33 = vrot.slane %v8308_v21, 6  ;;  %v6267_v6 = vpack.c.bf16 %v1007_v4, %v1006_v3  ;;  %v4903_v4 = vld [vmem:[%s10284_s1 + $0x1d0] sm:$0xff] }
 0x1e2   : > { %v1026_v52 = vsel %vm1023_vm5, %v1024_v17, %v1025_v27  ;;  %v1204_v34 = vsel %vm1201_vm6, %v1202_v19, %v1203_v28  ;;  %v8321_v49 = vsel %vm1301_vm7, %v1302_v20, %v1303_v30  ;;  %v8324_v43 = vsel %vm994_vm8, %v1401_v24, %v1402_v48  ;;  %v4871_v19 = vld [vmem:[%s10284_s1 + $0xf0] sm:$0xff]  ;;  %v4872_v20 = vld [vmem:[%s10284_s1 + $0xf8] sm:$0xff]  ;;  %v4874_v24 = vld [vmem:[%s10284_s1 + $0x108] sm:$0xff] }
 0x1e3   : > { %v990_v38 = vsel %vm985_vm10, %v987_v13, %v989_v31  ;;  %5945 = vmatprep.mubr.msk.f32.mxu1 %vm1029_vm11, %v1026_v52  ;;  %2522 = vmatmul.mubr.f32.gmra.mrb[14].mxu0 %v7658_v53  ;;  %v8336_v40 = vsel %vm1500_vm9, %v1501_v26, %v1502_v32  ;;  %v8339_v41 = vsel %vm985_vm10, %v1600_v35, %v1601_v33  ;;  %v4880_v31 = vld [vmem:[%s10284_s1 + $0x128] sm:$0xff]  ;;  %v4881_v35 = vld [vmem:[%s10284_s1 + $0x130] sm:$0xff] }
 0x1e4   : > { %v995_v18 = vsel %vm994_vm8, %v990_v38, 0.0  ;;  %v6275_v13 = vpack.c.bf16 %v4868_v14, %v4867_v12  ;;  %v6279_v17 = vpack.c.bf16 %v4870_v16, %v4869_v15  ;;  %v6283_v22 = vpack.c.bf16 %v4872_v20, %v4871_v19  ;;  %v4884_v38 = vld [vmem:[%s10284_s1 + $0x148] sm:$0xff]  ;;  %v4909_v14 = vld [vmem:[%s10284_s1 + $0x1f0] sm:$0xff]  ;;  %v4911_v16 = vld [vmem:[%s10284_s1 + $0x200] sm:$0xff] }
 0x1e5   : > { %v1027_v36 = vrot.slane %v995_v18, 1  ;;  %v1205_v44 = vrot.slane %v995_v18, 2  ;;  %v1305_v45 = vrot.slane %v995_v18, 3  ;;  %v1404_v53 = vrot.slane %v995_v18, 4  ;;  %v4913_v20 = vld [vmem:[%s10284_s1 + $0x210] sm:$0xff] }
 0x1e6   : > { %v1504_v29 = vrot.slane %v995_v18, 5  ;;  %v1603_v47 = vrot.slane %v995_v18, 6  ;;  %v4886_v18 = vld [vmem:[%s10284_s1 + $0x158] sm:$0xff] }
 0x1e7   : > { %v1028_v50 = vsel %vm1023_vm5, %v1025_v27, %v1027_v36  ;;  %v8350_v55 = vsel %vm1201_vm6, %v1203_v28, %v1205_v44  ;;  %v8353_v56 = vsel %vm1301_vm7, %v1303_v30, %v1305_v45  ;;  %v8356_v57 = vsel %vm994_vm8, %v1402_v48, %v1404_v53  ;;  %v4875_v27 = vld [vmem:[%s10284_s1 + $0x110] sm:$0xff]  ;;  %v4876_v28 = vld [vmem:[%s10284_s1 + $0x118] sm:$0xff]  ;;  %v4879_v48 = vld [vmem:[%s10284_s1 + $0x120] sm:$0xff] }
 0x1e8   : > { %5946 = vmatmul.mubr.msk.f32.vlgmr.msra.gmra.mrb[0].mxu1 %vm1029_vm11, %v1028_v50  ;;  %v8360_v58 = vsel %vm1500_vm9, %v1502_v32, %v1504_v29  ;;  %v8363_v59 = vsel %vm985_vm10, %v1601_v33, %v1603_v47  ;;  %v6291_v30 = vpack.c.bf16 %v4876_v28, %v4875_v27  ;;  %v6295_v32 = vpack.c.bf16 %v4880_v31, %v4879_v48  ;;  %v4882_v33 = vld [vmem:[%s10284_s1 + $0x138] sm:$0xff]  ;;  %v4887_v44 = vld [vmem:[%s10284_s1 + $0x160] sm:$0xff]  ;;  %v4889_v53 = vld [vmem:[%s10284_s1 + $0x170] sm:$0xff] }
 0x1e9   : > { %6250 = vmatpush3.bf16.msra.mxu1 %v7949_v46  ;;  %5972 = vmatprep.mubr.msk.f32.mxu1 %vm1029_vm11, %v993_v11  ;;  %v1005_v46 = vld [vmem:[%s10284_s1 + $0x48] sm:$0xff]  ;;  %v6271_v11 = vpack.c.bf16 %v4866_v10, %v4865_v9  ;;  %v6299_v52 = vpack.c.bf16 %v4882_v33, %v4881_v35  ;;  %v6307_v36 = vpack.c.bf16 %v4886_v18, %v4885_v37  ;;  %v4893_v47 = vld [vmem:[%s10284_s1 + $0x180] sm:$0xff]  ;;  %v4918_v27 = vld [vmem:[%s10284_s1 + $0x238] sm:$0xff] }
 0x1ea   : > { %6252 = vmatprep.subr.bf16.mxu1 %v6251_v23  ;;  %v6263_v2 = vpack.c.bf16 %v1005_v46, %v1004_v1  ;;  %v4894_v50 = vld [vmem:[%s10284_s1 + $0x188] sm:$0xff]  ;;  %v4899_v1 = vld [vmem:[%s10284_s1 + $0x1b0] sm:$0xff]  ;;  %v4900_v46 = vld [vmem:[%s10284_s1 + $0x1b8] sm:$0xff] }
 0x1eb   : > { %v6319_v51 = vpack.c.bf16 %v4894_v50, %v4893_v47  ;;  %v4907_v10 = vld [vmem:[%s10284_s1 + $0x1e0] sm:$0xff]  ;;  %v4922_v48 = vld [vmem:[%s10284_s1 + $0x248] sm:$0xff]  ;;  %v4924_v35 = vld [vmem:[%s10284_s1 + $0x258] sm:$0xff] }
 0x1ec   : > { %v4928_v37 = vld [vmem:[%s10284_s1 + $0x278] sm:$0xff]  ;;  %v2572_v47 = vld [vmem:[%s10253_s9 + $0x10] sm:$0xff] }
 0x1ed   : > { %6254 = vmatpush3.bf16.msra.mxu1 %v6251_v23  ;;  %v4890_v23 = vld [vmem:[%s10284_s1 + $0x178] sm:$0xff] }
 0x1ee   : > { %6256 = vmatprep.subr.bf16.mxu1 %v6255_v60  ;;  %v6315_v29 = vpack.c.bf16 %v4890_v23, %v4889_v53  ;;  %v2570_v53 = vld [vmem:[%s10253_s9] sm:$0xff]  ;;  %v2571_v23 = vld [vmem:[%s10253_s9 + $0x8] sm:$0xff]  ;;  %v2573_v50 = vld [vmem:[%s10253_s9 + $0x18] sm:$0xff] }
 0x1f1   : > { %6258 = vmatpush3.bf16.msra.mxu1 %v6255_v60 }
 0x1f2   : > { %6260 = vmatprep.subr.bf16.mxu1 %v6259_v0 }
 0x1f5   : > { %6262 = vmatpush3.bf16.msra.mxu1 %v6259_v0  ;;  %v6327_v0 = vpack.c.bf16 %v4898_v63, %v4897_v62  ;;  %v2577_v62 = vld [vmem:[%s10253_s9 + $0x38] sm:$0xff] }
 0x1f6   : > { %6264 = vmatprep.subr.bf16.mxu1 %v6263_v2 }
 0x1f9   : > { %6266 = vmatpush3.bf16.msra.mxu1 %v6263_v2  ;;  %v6331_v2 = vpack.c.bf16 %v4900_v46, %v4899_v1  ;;  %v2579_v1 = vld [vmem:[%s10253_s9 + $0x48] sm:$0xff] }
 0x1fa   : > { %6268 = vmatprep.subr.bf16.mxu1 %v6267_v6 }
 0x1fd   : > { %6270 = vmatpush3.bf16.msra.mxu1 %v6267_v6  ;;  %v4904_v6 = vld [vmem:[%s10284_s1 + $0x1d8] sm:$0xff] }
 0x1fe   : > { %6272 = vmatprep.subr.bf16.mxu1 %v6271_v11  ;;  %v6339_v9 = vpack.c.bf16 %v4904_v6, %v4903_v4  ;;  %v2583_v4 = vld [vmem:[%s10253_s9 + $0x68] sm:$0xff] }
 0x200   : > { %5973 = vmatmul.mubr.msk.f32.vlgmr.msra.gmra.mrb[0].mxu1 %vm1029_vm11, %v8308_v21  ;;  %v4873_v21 = vld [vmem:[%s10284_s1 + $0x100] sm:$0xff] }
 0x201   : > { %6274 = vmatpush3.bf16.msra.mxu1 %v6271_v11  ;;  %5999 = vmatprep.mubr.msk.f32.mxu1 %vm1029_vm11, %v1204_v34  ;;  %v6287_v26 = vpack.c.bf16 %v4874_v24, %v4873_v21  ;;  %v4883_v34 = vld [vmem:[%s10284_s1 + $0x140] sm:$0xff]  ;;  %v4908_v11 = vld [vmem:[%s10284_s1 + $0x1e8] sm:$0xff] }
 0x202   : > { %6276 = vmatprep.subr.bf16.mxu1 %v6275_v13  ;;  %v6303_v39 = vpack.c.bf16 %v4884_v38, %v4883_v34  ;;  %v6343_v12 = vpack.c.bf16 %v4908_v11, %v4907_v10  ;;  %v4926_v34 = vld [vmem:[%s10284_s1 + $0x268] sm:$0xff]  ;;  %v2585_v10 = vld [vmem:[%s10253_s9 + $0x78] sm:$0xff] }
 0x205   : > { %6278 = vmatpush3.bf16.msra.mxu1 %v6275_v13  ;;  %v4910_v13 = vld [vmem:[%s10284_s1 + $0x1f8] sm:$0xff] }
 0x206   : > { %6280 = vmatprep.subr.bf16.mxu1 %v6279_v17  ;;  %v6347_v15 = vpack.c.bf16 %v4910_v13, %v4909_v14  ;;  %v2587_v14 = vld [vmem:[%s10253_s9 + $0x88] sm:$0xff] }
 0x209   : > { %6282 = vmatpush3.bf16.msra.mxu1 %v6279_v17  ;;  %v4912_v17 = vld [vmem:[%s10284_s1 + $0x208] sm:$0xff] }
 0x20a   : > { %6284 = vmatprep.subr.bf16.mxu1 %v6283_v22  ;;  %v6351_v19 = vpack.c.bf16 %v4912_v17, %v4911_v16 }
 0x20d   : > { %6286 = vmatpush3.bf16.msra.mxu1 %v6283_v22  ;;  %v4914_v22 = vld [vmem:[%s10284_s1 + $0x218] sm:$0xff] }
 0x20e   : > { %6288 = vmatprep.subr.bf16.mxu1 %v6287_v26  ;;  %v6355_v21 = vpack.c.bf16 %v4914_v22, %v4913_v20 }
 0x211   : > { %6290 = vmatpush3.bf16.msra.mxu1 %v6287_v26  ;;  %v4917_v26 = vld [vmem:[%s10284_s1 + $0x230] sm:$0xff] }
 0x212   : > { %6292 = vmatprep.subr.bf16.mxu1 %v6291_v30  ;;  %v6363_v28 = vpack.c.bf16 %v4918_v27, %v4917_v26 }
 0x215   : > { %6294 = vmatpush3.bf16.msra.mxu1 %v6291_v30  ;;  %v4921_v30 = vld [vmem:[%s10284_s1 + $0x240] sm:$0xff] }
 0x216   : > { %6296 = vmatprep.subr.bf16.mxu1 %v6295_v32  ;;  %v6367_v31 = vpack.c.bf16 %v4922_v48, %v4921_v30 }
 0x218   : > { %6000 = vmatmul.mubr.msk.f32.vlgmr.msra.gmra.mrb[0].mxu1 %vm1029_vm11, %v8350_v55  ;;  %v4896_v55 = vld [vmem:[%s10284_s1 + $0x198] sm:$0xff] }
 0x219   : > { %6298 = vmatpush3.bf16.msra.mxu1 %v6295_v32  ;;  %6026 = vmatprep.mubr.msk.f32.mxu1 %vm1029_vm11, %v8321_v49  ;;  %v4888_v49 = vld [vmem:[%s10284_s1 + $0x168] sm:$0xff]  ;;  %v6323_v60 = vpack.c.bf16 %v4896_v55, %v4895_v54  ;;  %v4923_v32 = vld [vmem:[%s10284_s1 + $0x250] sm:$0xff]  ;;  %v2574_v54 = vld [vmem:[%s10253_s9 + $0x20] sm:$0xff] }
 0x21a   : > { %6300 = vmatprep.subr.bf16.mxu1 %v6299_v52  ;;  %v6311_v45 = vpack.c.bf16 %v4888_v49, %v4887_v44  ;;  %v6371_v33 = vpack.c.bf16 %v4924_v35, %v4923_v32  ;;  %v4931_v44 = vld [vmem:[%s10284_s1 + $0x290] sm:$0xff]  ;;  %v4932_v49 = vld [vmem:[%s10284_s1 + $0x298] sm:$0xff]  ;;  %v2575_v55 = vld [vmem:[%s10253_s9 + $0x28] sm:$0xff] }
 0x21d   : > { %6302 = vmatpush3.bf16.msra.mxu1 %v6299_v52  ;;  %v4925_v52 = vld [vmem:[%s10284_s1 + $0x260] sm:$0xff] }
 0x21e   : > { %6304 = vmatprep.subr.bf16.mxu1 %v6303_v39  ;;  %v6375_v38 = vpack.c.bf16 %v4926_v34, %v4925_v52 }
 0x221   : > { %6306 = vmatpush3.bf16.msra.mxu1 %v6303_v39  ;;  %v4927_v39 = vld [vmem:[%s10284_s1 + $0x270] sm:$0xff] }
 0x222   : > { %6308 = vmatprep.subr.bf16.mxu1 %v6307_v36  ;;  %v6379_v18 = vpack.c.bf16 %v4928_v37, %v4927_v39 }
 0x225   : > { %6310 = vmatpush3.bf16.msra.mxu1 %v6307_v36 }
 0x226   : > { %6312 = vmatprep.subr.bf16.mxu1 %v6311_v45 }
 0x229   : > { %6314 = vmatpush3.bf16.msra.mxu1 %v6311_v45  ;;  %v6387_v45 = vpack.c.bf16 %v4932_v49, %v4931_v44  ;;  %v5138_v44 = vld [vmem:[%s10255_s11 + $0x110] sm:$0xff]  ;;  %v5141_v49 = vld [vmem:[%s10255_s11 + $0x128] sm:$0xff] }
 0x22a   : > { %6316 = vmatprep.subr.bf16.mxu1 %v6315_v29 }
 0x22d   : > { %6318 = vmatpush3.bf16.msra.mxu1 %v6315_v29  ;;  %v6616_v29 = vpack.c.bf16 %v2571_v23, %v2570_v53 }
 0x22e   : > { %6320 = vmatprep.subr.bf16.mxu1 %v6319_v51 }
 0x230   : > { %6027 = vmatmul.mubr.msk.f32.vlgmr.msra.gmra.mrb[0].mxu1 %vm1029_vm11, %v8353_v56  ;;  %v4901_v56 = vld [vmem:[%s10284_s1 + $0x1c0] sm:$0xff] }
 0x231   : > { %6322 = vmatpush3.bf16.msra.mxu1 %v6319_v51  ;;  %6053 = vmatprep.mubr.msk.f32.mxu1 %vm1029_vm11, %v8324_v43  ;;  %v4902_v43 = vld [vmem:[%s10284_s1 + $0x1c8] sm:$0xff]  ;;  %v6619_v51 = vpack.c.bf16 %v2573_v50, %v2572_v47  ;;  %v5142_v47 = vld [vmem:[%s10255_s11 + $0x130] sm:$0xff] }
 0x232   : > { %6324 = vmatprep.subr.bf16.mxu1 %v6323_v60  ;;  %v6335_v3 = vpack.c.bf16 %v4902_v43, %v4901_v56  ;;  %v2581_v56 = vld [vmem:[%s10253_s9 + $0x58] sm:$0xff]  ;;  %v5145_v50 = vld [vmem:[%s10255_s11 + $0x148] sm:$0xff] }
 0x235   : > { %6326 = vmatpush3.bf16.msra.mxu1 %v6323_v60  ;;  %v6622_v60 = vpack.c.bf16 %v2575_v55, %v2574_v54 }
 0x236   : > { %6328 = vmatprep.subr.bf16.mxu1 %v6327_v0 }
 0x239   : > { %6330 = vmatpush3.bf16.msra.mxu1 %v6327_v0  ;;  %v2578_v0 = vld [vmem:[%s10253_s9 + $0x40] sm:$0xff] }
 0x23a   : > { %6332 = vmatprep.subr.bf16.mxu1 %v6331_v2  ;;  %v6628_v46 = vpack.c.bf16 %v2579_v1, %v2578_v0 }
 0x23d   : > { %6334 = vmatpush3.bf16.msra.mxu1 %v6331_v2  ;;  %v2580_v2 = vld [vmem:[%s10253_s9 + $0x50] sm:$0xff] }
 0x23e   : > { %6336 = vmatprep.subr.bf16.mxu1 %v6335_v3  ;;  %v6631_v43 = vpack.c.bf16 %v2581_v56, %v2580_v2  ;;  %v5150_v2 = vld [vmem:[%s10255_s11 + $0x170] sm:$0xff]  ;;  %v5153_v56 = vld [vmem:[%s10255_s11 + $0x188] sm:$0xff] }
 0x241   : > { %6338 = vmatpush3.bf16.msra.mxu1 %v6335_v3  ;;  %v2582_v3 = vld [vmem:[%s10253_s9 + $0x60] sm:$0xff] }
 0x242   : > { %6340 = vmatprep.subr.bf16.mxu1 %v6339_v9  ;;  %v6634_v6 = vpack.c.bf16 %v2583_v4, %v2582_v3 }
 0x245   : > { %6342 = vmatpush3.bf16.msra.mxu1 %v6339_v9  ;;  %v2584_v9 = vld [vmem:[%s10253_s9 + $0x70] sm:$0xff] }
 0x246   : > { %6344 = vmatprep.subr.bf16.mxu1 %v6343_v12  ;;  %v6637_v11 = vpack.c.bf16 %v2585_v10, %v2584_v9  ;;  %v5154_v9 = vld [vmem:[%s10255_s11 + $0x190] sm:$0xff] }
 0x248   : > { %6054 = vmatmul.mubr.msk.f32.vlgmr.msra.gmra.mrb[0].mxu1 %vm1029_vm11, %v8356_v57  ;;  %v4915_v57 = vld [vmem:[%s10284_s1 + $0x220] sm:$0xff] }
 0x249   : > { %6346 = vmatpush3.bf16.msra.mxu1 %v6343_v12  ;;  %6080 = vmatprep.mubr.msk.f32.mxu1 %vm1029_vm11, %v8336_v40  ;;  %v4916_v40 = vld [vmem:[%s10284_s1 + $0x228] sm:$0xff]  ;;  %v2586_v12 = vld [vmem:[%s10253_s9 + $0x80] sm:$0xff] }
 0x24a   : > { %6348 = vmatprep.subr.bf16.mxu1 %v6347_v15  ;;  %v6359_v24 = vpack.c.bf16 %v4916_v40, %v4915_v57  ;;  %v6640_v13 = vpack.c.bf16 %v2587_v14, %v2586_v12  ;;  %v5159_v12 = vld [vmem:[%s10255_s11 + $0x1b8] sm:$0xff] }
 0x24d   : > { %6350 = vmatpush3.bf16.msra.mxu1 %v6347_v15  ;;  %v2532_v15 = vld [vmem:[%s10252_s8] sm:$0x3] }
 0x24e   : > { %6352 = vmatprep.subr.bf16.mxu1 %v6351_v19  ;;  %v2537_v16 = vrot.slane %v2532_v15, %v7497_v5  ;;  %v2541_v17 = vrot.slane %v2532_v15, %v7502_v8  ;;  %v5158_v15 = vld [vmem:[%s10255_s11 + $0x1b0] sm:$0xff] }
 0x251   : > { %6354 = vmatpush3.bf16.msra.mxu1 %v6351_v19 }
 0x252   : > { %6356 = vmatprep.subr.bf16.mxu1 %v6355_v21 }
 0x255   : > { %6358 = vmatpush3.bf16.msra.mxu1 %v6355_v21 }
 0x256   : > { %6360 = vmatprep.subr.bf16.mxu1 %v6359_v24 }
 0x259   : > { %6362 = vmatpush3.bf16.msra.mxu1 %v6359_v24 }
 0x25a   : > { %6364 = vmatprep.subr.bf16.mxu1 %v6363_v28 }
 0x25d   : > { %6366 = vmatpush3.bf16.msra.mxu1 %v6363_v28 }
 0x25e   : > { %6368 = vmatprep.subr.bf16.mxu1 %v6367_v31 }
 0x260   : > { %6081 = vmatmul.mubr.msk.f32.vlgmr.msra.gmra.mrb[0].mxu1 %vm1029_vm11, %v8360_v58  ;;  %v4929_v58 = vld [vmem:[%s10284_s1 + $0x280] sm:$0xff] }
 0x261   : > { %6370 = vmatpush3.bf16.msra.mxu1 %v6367_v31  ;;  %6107 = vmatprep.mubr.msk.f32.mxu1 %vm1029_vm11, %v8339_v41  ;;  %v4930_v41 = vld [vmem:[%s10284_s1 + $0x288] sm:$0xff] }
 0x262   : > { %6372 = vmatprep.subr.bf16.mxu1 %v6371_v33  ;;  %v6383_v36 = vpack.c.bf16 %v4930_v41, %v4929_v58  ;;  %v5139_v58 = vld [vmem:[%s10255_s11 + $0x118] sm:$0xff]  ;;  %v5136_v41 = vld [vmem:[%s10255_s11 + $0x100] sm:$0xff] }
 0x263   : > { %v6644_v53 = vpack.c.bf16 %v5138_v44, %v5136_v41  ;;  %v5130_v44 = vld [vmem:[%s10254_s10] ss:$0 sm:$0xff] }
 0x265   : > { %6374 = vmatpush3.bf16.msra.mxu1 %v6371_v33 }
 0x266   : > { %6376 = vmatprep.subr.bf16.mxu1 %v6375_v38 }
 0x269   : > { %6378 = vmatpush3.bf16.msra.mxu1 %v6375_v38 }
 0x26a   : > { %6380 = vmatprep.subr.bf16.mxu1 %v6379_v18 }
 0x26d   : > { %6382 = vmatpush3.bf16.msra.mxu1 %v6379_v18  ;;  %v5137_v18 = vld [vmem:[%s10255_s11 + $0x108] sm:$0xff] }
 0x26e   : > { %6384 = vmatprep.subr.bf16.mxu1 %v6383_v36 }
 0x271   : > { %6386 = vmatpush3.bf16.msra.mxu1 %v6383_v36  ;;  %v6642_v36 = vpack.c.bf16 %v5139_v58, %v5137_v18 }
 0x272   : > { %6388 = vmatprep.subr.bf16.mxu1 %v6387_v45 }
 0x275   : > { %6390 = vmatpush3.bf16.msra.mxu1 %v6387_v45  ;;  %v5143_v45 = vld [vmem:[%s10255_s11 + $0x138] sm:$0xff] }
 0x276   : > { %6615 = vmatprep.subr.bf16.mxu1 %v7215_v42  ;;  %v6646_v23 = vpack.c.bf16 %v5143_v45, %v5141_v49 }
 0x278   : > { %6108 = vmatmul.mubr.msk.f32.vlgmr.msra.gmra.mrb[0].mxu1 %vm1029_vm11, %v8363_v59  ;;  %v2576_v59 = vld [vmem:[%s10253_s9 + $0x30] sm:$0xff] }
 0x279   : > { %6617 = vmatpush1.bf16.msra.mxu1 %v6616_v29  ;;  %v6625_v63 = vpack.c.bf16 %v2577_v62, %v2576_v59  ;;  %v5140_v29 = vld [vmem:[%s10255_s11 + $0x120] sm:$0xff]  ;;  %v5146_v59 = vld [vmem:[%s10255_s11 + $0x150] sm:$0xff]  ;;  %v5149_v62 = vld [vmem:[%s10255_s11 + $0x168] sm:$0xff] }
 0x27a   : > { %6618 = vmatprep.subr.bf16.mxu1 %v7215_v42  ;;  %v6648_v54 = vpack.c.bf16 %v5142_v47, %v5140_v29 }
 0x27d   : > { %6620 = vmatpush1.bf16.msra.mxu1 %v6619_v51  ;;  %v5147_v51 = vld [vmem:[%s10255_s11 + $0x158] sm:$0xff] }
 0x27e   : > { %6621 = vmatprep.subr.bf16.mxu1 %v7215_v42  ;;  %v6650_v55 = vpack.c.bf16 %v5147_v51, %v5145_v50 }
 0x281   : > { %6623 = vmatpush1.bf16.msra.mxu1 %v6622_v60  ;;  %v5144_v60 = vld [vmem:[%s10255_s11 + $0x140] sm:$0xff] }
 0x282   : > { %6624 = vmatprep.subr.bf16.mxu1 %v7215_v42  ;;  %v6652_v0 = vpack.c.bf16 %v5146_v59, %v5144_v60  ;;  %v2691_v59 = vld [vmem:[%s10255_s11 + $0x10] sm:$0xff] }
 0x285   : > { %6626 = vmatpush1.bf16.msra.mxu1 %v6625_v63  ;;  %v5151_v63 = vld [vmem:[%s10255_s11 + $0x178] sm:$0xff] }
 0x286   : > { %6627 = vmatprep.subr.bf16.mxu1 %v7215_v42  ;;  %v6654_v1 = vpack.c.bf16 %v5151_v63, %v5149_v62  ;;  %v2694_v62 = vld [vmem:[%s10255_s11 + $0x28] sm:$0xff]  ;;  %v2696_v63 = vld [vmem:[%s10255_s11 + $0x38] sm:$0xff] }
 0x289   : > { %6629 = vmatpush1.bf16.msra.mxu1 %v6628_v46  ;;  %v5148_v46 = vld [vmem:[%s10255_s11 + $0x160] sm:$0xff] }
 0x28a   : > { %6630 = vmatprep.subr.bf16.mxu1 %v7215_v42  ;;  %v6656_v3 = vpack.c.bf16 %v5150_v2, %v5148_v46  ;;  %v6678_v2 = vpack.c.bf16 %v2696_v63, %v2694_v62  ;;  %v2716_v62 = vld [vmem:[%s10255_s11 + $0xd8] sm:$0xff] }
 0x28d   : > { %6632 = vmatpush1.bf16.msra.mxu1 %v6631_v43  ;;  %v5155_v43 = vld [vmem:[%s10255_s11 + $0x198] sm:$0xff] }
 0x28e   : > { %6633 = vmatprep.subr.bf16.mxu1 %v7215_v42  ;;  %v6658_v4 = vpack.c.bf16 %v5155_v43, %v5153_v56 }
 0x291   : > { %6635 = vmatpush1.bf16.msra.mxu1 %v6634_v6  ;;  %v5152_v6 = vld [vmem:[%s10255_s11 + $0x180] sm:$0xff] }
 0x292   : > { %6636 = vmatprep.subr.bf16.mxu1 %v7215_v42  ;;  %v6660_v10 = vpack.c.bf16 %v5154_v9, %v5152_v6 }
 0x295   : > { %6638 = vmatpush1.bf16.msra.mxu1 %v6637_v11  ;;  %v5157_v11 = vld [vmem:[%s10255_s11 + $0x1a8] sm:$0xff] }
 0x296   : > { %6639 = vmatprep.subr.bf16.mxu1 %v7215_v42  ;;  %v6662_v14 = vpack.c.bf16 %v5159_v12, %v5157_v11 }
 0x299   : > { %6641 = vmatpush1.bf16.msra.mxu1 %v6640_v13  ;;  %v5156_v13 = vld [vmem:[%s10255_s11 + $0x1a0] sm:$0xff] }
 0x29a   : > { %6643 = vmatprep.subr.bf16.mxu1 %v6642_v36 }
 0x2b2   : > { %v2517_v19 = vpop.f32.mrb[12].mxu0 }
 0x2b3   : > { %v2544_v20 = vadd.f32 %v2537_v16, %v2517_v19  ;;  %v2519_v22 = vpop.f32.mrb[13].mxu0  ;;  %v5163_v19 = vld [vmem:[%s10255_s11 + $0x1d8] sm:$0xff] }
 0x2b4   : > { %v2545_v21 = vadd.f32 %v2541_v17, %v2519_v22  ;;  %v5160_v22 = vld [vmem:[%s10255_s11 + $0x1c0] sm:$0xff] }
 0x2b5   : > { %v2548_v57 = vmax.f32 %v2544_v20, 0.0 }
 0x2b6   : > { %v2549_v40 = vmax.f32 %v2545_v21, 0.0  ;;  %v2523_v24 = vpop.f32.mrb[14].mxu0  ;;  %v5162_v21 = vld [vmem:[%s10255_s11 + $0x1d0] sm:$0xff] }
 0x2b7   : > { %v2546_v26 = vadd.f32 %v2537_v16, %v2523_v24  ;;  %v2525_v27 = vpop.f32.mrb[15].mxu0  ;;  %v2556_v32 = vrot.slane %v2548_v57, 6  ;;  %v6664_v16 = vpack.c.bf16 %v5158_v15, %v5156_v13  ;;  %v6668_v57 = vpack.c.bf16 %v5162_v21, %v5160_v22  ;;  %v5167_v24 = vld [vmem:[%s10255_s11 + $0x1f8] sm:$0xff]  ;;  %v2695_v13 = vld [vmem:[%s10255_s11 + $0x30] sm:$0xff]  ;;  %v2698_v22 = vld [vmem:[%s10255_s11 + $0x48] sm:$0xff] }
 0x2b8   : > { %v2557_v28 = vrot.slane %v2549_v40, 6  ;;  %v2547_v30 = vadd.f32 %v2541_v17, %v2525_v27  ;;  %v5161_v17 = vld [vmem:[%s10255_s11 + $0x1c8] sm:$0xff]  ;;  %v5164_v27 = vld [vmem:[%s10255_s11 + $0x1e0] sm:$0xff]  ;;  %v2700_v21 = vld [vmem:[%s10255_s11 + $0x58] sm:$0xff] }
 0x2b9   : > { %v2550_v48 = vmax.f32 %v2546_v26, 0.0  ;;  %v6666_v20 = vpack.c.bf16 %v5163_v19, %v5161_v17  ;;  %v5165_v40 = vld [vmem:[%s10255_s11 + $0x1e8] sm:$0xff] }
 0x2ba   : > { %v2551_v35 = vmax.f32 %v2547_v30, 0.0  ;;  %v2567_v33 = vsel %vm985_vm10, 0.0, %v2557_v28  ;;  %v6670_v26 = vpack.c.bf16 %v5167_v24, %v5165_v40 }
 0x2bb   : > { %v2558_v52 = vrot.slane %v2550_v48, 6  ;;  %5131 = vmatprep.mubr.msk.f32.mxu1 %vm2595_vm12, %v2567_v33  ;;  %v2690_v48 = vld [vmem:[%s10255_s11 + $0x8] sm:$0xff]  ;;  %v4935_v33 = vld [vmem:[%s10250_s6] ss:$0 sm:$0xff] }
 0x2bc   : > { %v2560_v34 = vrot.slane %v2551_v35, 6  ;;  %5133 = vmatmul.mubr.msk.f32.vlgmr.msra.gmra.mrb[2].mxu1 %vm8655_vm13, %v2556_v32 }
 0x2bd   : > { %v2559_v38 = vsel %vm985_vm10, %v2556_v32, %v2558_v52  ;;  %6645 = vmatpush1.bf16.msra.mxu1 %v6644_v53  ;;  %v2692_v32 = vld [vmem:[%s10255_s11 + $0x18] sm:$0xff] }
 0x2be   : > { %v2561_v39 = vsel %vm985_vm10, %v2557_v28, %v2560_v34  ;;  %6647 = vmatprep.subr.bf16.mxu1 %v6646_v23  ;;  %v5166_v28 = vld [vmem:[%s10255_s11 + $0x1f0] sm:$0xff]  ;;  %v6674_v35 = vpack.c.bf16 %v2692_v32, %v2690_v48 }
 0x2bf   : > { %v2569_v37 = vsel %vm1201_vm6, %v2561_v39, 0.0  ;;  %v6672_v30 = vpack.c.bf16 %v5166_v28, %v5164_v27 }
 0x2c0   : > { %5134 = vmatprep.mubr.msk.f32.mxu1 %vm2595_vm12, %v2569_v37 }
 0x2c1   : > { %5135 = vmatmul.mubr.msk.f32.gmra.mrb[4].mxu1 %vm1201_vm6, %v2559_v38 }
 0x2c2   : > { %2824 = vmatprep.mubr.f32.mxu1 %v7214_v7  ;;  %6649 = vmatpush1.bf16.msra.mxu1 %v6648_v54  ;;  %v2689_v54 = vld [vmem:[%s10255_s11] sm:$0xff] }
 0x2c3   : > { %6651 = vmatprep.subr.bf16.mxu1 %v6650_v55  ;;  %v6676_v46 = vpack.c.bf16 %v2691_v59, %v2689_v54  ;;  %v2714_v59 = vld [vmem:[%s10255_s11 + $0xc8] sm:$0xff] }
 0x2c6   : > { %6653 = vmatpush1.bf16.msra.mxu1 %v6652_v0 }
 0x2c7   : > { %6655 = vmatprep.subr.bf16.mxu1 %v6654_v1 }
 0x2ca   : > { %6657 = vmatpush1.bf16.msra.mxu1 %v6656_v3 }
 0x2cb   : > { %6659 = vmatprep.subr.bf16.mxu1 %v6658_v4 }
 0x2ce   : > { %6661 = vmatpush1.bf16.msra.mxu1 %v6660_v10 }
 0x2cf   : > { %6663 = vmatprep.subr.bf16.mxu1 %v6662_v14  ;;  %v2693_v14 = vld [vmem:[%s10255_s11 + $0x20] sm:$0xff] }
 0x2d0   : > { %v6680_v48 = vpack.c.bf16 %v2695_v13, %v2693_v14 }
 0x2d2   : > { %6665 = vmatpush1.bf16.msra.mxu1 %v6664_v16 }
 0x2d3   : > { %6667 = vmatprep.subr.bf16.mxu1 %v6666_v20 }
 0x2d6   : > { %6669 = vmatpush1.bf16.msra.mxu1 %v6668_v57 }
 0x2d7   : > { %6671 = vmatprep.subr.bf16.mxu1 %v6670_v26 }
 0x2da   : > { %6673 = vmatpush1.bf16.msra.mxu1 %v6672_v30 }
 0x2db   : > { %6675 = vmatprep.subr.bf16.mxu1 %v6674_v35 }
 0x34b   : > { %v6109_v52 = vpop.f32.mrb[0].mxu1 }
 0x34c   : > { %v1694_v34 = vadd.f32 %v6109_v52, %v4935_v33  ;;  %v1675_v38 = vpop.f32.mrb[1].mxu1  ;;  %v2697_v52 = vld [vmem:[%s10255_s11 + $0x40] sm:$0xff] }
 0x34d   : > { %v1693_v39 = vadd.f32 %v4935_v33, %v1675_v38  ;;  %v6682_v33 = vpack.c.bf16 %v2700_v21, %v2698_v22  ;;  %v2702_v38 = vld [vmem:[%s10255_s11 + $0x68] sm:$0xff]  ;;  %v5177_v22 = vld [vmem:[%s10255_s11 + $0x238] sm:$0xff] }
 0x34e   : > { %v1696_v37 = vmax.f32 %v1694_v34, 0.0  ;;  %v2699_v34 = vld [vmem:[%s10255_s11 + $0x50] sm:$0xff] }
 0x34f   : > { %v1695_v18 = vmax.f32 %v1693_v39, 0.0  ;;  %v2704_v39 = vld [vmem:[%s10255_s11 + $0x78] sm:$0xff] }
 0x350   : > { %v3989_v58 = vrot.slane %v1696_v37, 7  ;;  %v6684_v37 = vpack.c.bf16 %v2699_v34, %v2697_v52  ;;  %v5181_v52 = vld [vmem:[%s10255_s11 + $0x258] sm:$0xff] }
 0x351   : > { %v3988_v41 = vrot.slane %v1695_v18, 7  ;;  %v6686_v18 = vpack.c.bf16 %v2704_v39, %v2702_v38  ;;  %v5178_v39 = vld [vmem:[%s10255_s11 + $0x240] sm:$0xff] }
 0x352   : > { %3996 = vst [vmem:[#allocation2 + $0x48] sm:$0x1] %v3989_v58 }
 0x353   : > { %v3990_v36 = vsel %vm867_vm3, %v3988_v41, %v3989_v58  ;;  %3994 = vst [vmem:[#allocation2 + $0x8] sm:$0xfe] %v3988_v41  ;;  %v2701_v58 = vld [vmem:[%s10255_s11 + $0x60] sm:$0xff]  ;;  %v2703_v41 = vld [vmem:[%s10255_s11 + $0x70] sm:$0xff] }
 0x354   : > { %3995 = vst [vmem:[#allocation2 + $0x28] sm:$0xff] %v3990_v36  ;;  %v2706_v36 = vld [vmem:[%s10255_s11 + $0x88] sm:$0xff] }
 0x38f   : > { %v2668_v49 = vpop.f32.mrb[2].mxu1 }
 0x390   : > { %v2669_v45 = vadd.f32 %v5130_v44, %v2668_v49  ;;  %v2670_v53 = vpop.f32.mrb[3].mxu1  ;;  %v6688_v49 = vpack.c.bf16 %v2703_v41, %v2701_v58  ;;  %v5182_v41 = vld [vmem:[%s10255_s11 + $0x260] sm:$0xff] }
 0x391   : > { %v2705_v53 = vld [vmem:[%s10255_s11 + $0x80] sm:$0xff] }
 0x392   : > { %v2677_v23 = vmax.f32 %v2669_v45, 0.0 }
 0x394   : > { %v8778_v29 = vrot.slane %v2677_v23, 7  ;;  %v2673_v47 = vpop.f32.mrb[4].mxu1  ;;  %v2707_v23 = vld [vmem:[%s10255_s11 + $0x90] sm:$0xff] }
 0x395   : > { %v2674_v50 = vadd.f32 %v5130_v44, %v2673_v47  ;;  %v2675_v51 = vpop.f32.mrb[5].mxu1  ;;  %v2708_v44 = vld [vmem:[%s10255_s11 + $0x98] sm:$0xff]  ;;  %v2710_v47 = vld [vmem:[%s10255_s11 + $0xa8] sm:$0xff] }
 0x396   : > { %v2687_v55 = vsel %vm867_vm3, 0.0, %v8778_v29  ;;  %v6690_v45 = vpack.c.bf16 %v2708_v44, %v2706_v36  ;;  %v6692_v51 = vpack.c.bf16 %v2707_v23, %v2705_v53  ;;  %v5184_v36 = vld [vmem:[%s10255_s11 + $0x270] sm:$0xff]  ;;  %v5187_v44 = vld [vmem:[%s10255_s11 + $0x288] sm:$0xff]  ;;  %v5186_v23 = vld [vmem:[%s10255_s11 + $0x280] sm:$0xff] }
 0x397   : > { %v2678_v60 = vmax.f32 %v2674_v50, 0.0  ;;  %v2755_v1 = vrot.slane %v2687_v55, 1  ;;  %v2947_v56 = vrot.slane %v2687_v55, 2  ;;  %v3066_v4 = vrot.slane %v2687_v55, 3  ;;  %v2712_v50 = vld [vmem:[%s10255_s11 + $0xb8] sm:$0xff] }
 0x398   : > { %v3185_v6 = vrot.slane %v2687_v55, 4  ;;  %v3305_v17 = vrot.slane %v2687_v55, 5  ;;  %v3426_v40 = vrot.slane %v2687_v55, 6  ;;  %v6694_v54 = vpack.c.bf16 %v2712_v50, %v2710_v47  ;;  %v2709_v55 = vld [vmem:[%s10255_s11 + $0xa0] sm:$0xff]  ;;  %v5188_v47 = vld [vmem:[%s10255_s11 + $0x290] sm:$0xff]  ;;  %v5191_v50 = vld [vmem:[%s10255_s11 + $0x2a8] sm:$0xff] }
 0x399   : > { %v2682_v0 = vrot.slane %v2678_v60, 7  ;;  %v2711_v60 = vld [vmem:[%s10255_s11 + $0xb0] sm:$0xff] }
 0x39a   : > { %v6696_v63 = vpack.c.bf16 %v2711_v60, %v2709_v55  ;;  %v5190_v60 = vld [vmem:[%s10255_s11 + $0x2a0] sm:$0xff] }
 0x39b   : > { %v8796_v43 = vsel %vm867_vm3, %v8778_v29, %v2682_v0  ;;  %v2688_v3 = vsel %vm867_vm3, %v2682_v0, 0.0  ;;  %v6698_v0 = vpack.c.bf16 %v2716_v62, %v2714_v59  ;;  %v5192_v59 = vld [vmem:[%s10255_s11 + $0x2b0] sm:$0xff]  ;;  %v5195_v62 = vld [vmem:[%s10255_s11 + $0x2c8] sm:$0xff] }
 0x39c   : > { %v3308_v9 = vrot.slane %v2688_v3, 5  ;;  %v3429_v10 = vrot.slane %v2688_v3, 6  ;;  %v2756_v11 = vrot.slane %v8796_v43, 1  ;;  %v2948_v12 = vrot.slane %v8796_v43, 2 }
 0x39d   : > { %v3067_v15 = vrot.slane %v8796_v43, 3  ;;  %v3186_v16 = vrot.slane %v8796_v43, 4  ;;  %v3306_v19 = vrot.slane %v8796_v43, 5  ;;  %v3427_v24 = vrot.slane %v8796_v43, 6 }
 0x39e   : > { %v2757_v20 = vsel %vm1023_vm5, %v2755_v1, %v2756_v11  ;;  %v8820_v57 = vsel %vm1201_vm6, %v2947_v56, %v2948_v12  ;;  %v2713_v1 = vld [vmem:[%s10255_s11 + $0xc0] sm:$0xff]  ;;  %v2720_v56 = vld [vmem:[%s10255_s11 + $0xf8] sm:$0xff] }
 0x39f   : > { %2825 = vmatmul.mubr.f32.vlgmr.msra.gmra.mrb[6].mxu1 %v2757_v20  ;;  %v8826_v26 = vsel %vm1301_vm7, %v3066_v4, %v3067_v15  ;;  %v8831_v27 = vsel %vm994_vm8, %v3185_v6, %v3186_v16  ;;  %v8834_v28 = vsel %vm1500_vm9, %v3305_v17, %v3306_v19  ;;  %v8837_v30 = vsel %vm1500_vm9, %v3306_v19, %v3308_v9  ;;  %v2717_v6 = vld [vmem:[%s10255_s11 + $0xe0] sm:$0xff]  ;;  %v2719_v9 = vld [vmem:[%s10255_s11 + $0xf0] sm:$0xff]  ;;  %v5175_v20 = vld [vmem:[%s10255_s11 + $0x228] sm:$0xff] }
 0x3a0   : > { %6677 = vmatpush1.bf16.msra.mxu1 %v6676_v46  ;;  %2830 = vmatprep.mubr.f32.mxu1 %v7214_v7  ;;  %v8841_v32 = vsel %vm985_vm10, %v3426_v40, %v3427_v24  ;;  %v8844_v35 = vsel %vm985_vm10, %v3427_v24, %v3429_v10  ;;  %v2715_v46 = vld [vmem:[%s10255_s11 + $0xd0] sm:$0xff]  ;;  %v5171_v10 = vld [vmem:[%s10255_s11 + $0x208] sm:$0xff]  ;;  %v6704_v14 = vpack.c.bf16 %v2719_v9, %v2717_v6  ;;  %v5170_v17 = vld [vmem:[%s10255_s11 + $0x200] sm:$0xff] }
 0x3a1   : > { %6679 = vmatprep.subr.bf16.mxu1 %v6678_v2  ;;  %v2718_v2 = vld [vmem:[%s10255_s11 + $0xe8] sm:$0xff]  ;;  %v6700_v3 = vpack.c.bf16 %v2715_v46, %v2713_v1  ;;  %v5172_v19 = vld [vmem:[%s10255_s11 + $0x210] sm:$0xff]  ;;  %v6710_v40 = vpack.c.bf16 %v5177_v22, %v5175_v20  ;;  %v5174_v24 = vld [vmem:[%s10255_s11 + $0x220] sm:$0xff] }
 0x3a2   : > { %v6702_v4 = vpack.c.bf16 %v2720_v56, %v2718_v2  ;;  %v6708_v21 = vpack.c.bf16 %v5172_v19, %v5170_v17  ;;  %v5194_v46 = vld [vmem:[%s10255_s11 + $0x2c0] sm:$0xff]  ;;  %v5196_v2 = vld [vmem:[%s10255_s11 + $0x2d0] sm:$0xff]  ;;  %v5199_v56 = vld [vmem:[%s10255_s11 + $0x2e8] sm:$0xff] }
 0x3a3   : > { %2831 = vmatmul.mubr.f32.gmra.mrb[8].mxu1 %v2756_v11  ;;  %v5173_v11 = vld [vmem:[%s10255_s11 + $0x218] sm:$0xff]  ;;  %v5198_v9 = vld [vmem:[%s10255_s11 + $0x2e0] sm:$0xff]  ;;  %v5204_v20 = vld [vmem:[%s10255_s11 + $0x310] sm:$0xff] }
 0x3a4   : > { %6681 = vmatpush1.bf16.msra.mxu1 %v6680_v48  ;;  %2901 = vmatprep.mubr.f32.mxu1 %v7214_v7  ;;  %v6706_v13 = vpack.c.bf16 %v5173_v11, %v5171_v10  ;;  %v5176_v48 = vld [vmem:[%s10255_s11 + $0x230] sm:$0xff]  ;;  %v5203_v11 = vld [vmem:[%s10255_s11 + $0x308] sm:$0xff]  ;;  %v5202_v19 = vld [vmem:[%s10255_s11 + $0x300] sm:$0xff] }
 0x3a5   : > { %6683 = vmatprep.subr.bf16.mxu1 %v6682_v33  ;;  %v5179_v33 = vld [vmem:[%s10255_s11 + $0x248] sm:$0xff]  ;;  %v6712_v34 = vpack.c.bf16 %v5176_v48, %v5174_v24  ;;  %v5200_v10 = vld [vmem:[%s10255_s11 + $0x2f0] sm:$0xff]  ;;  %v5206_v48 = vld [vmem:[%s10255_s11 + $0x320] sm:$0xff] }
 0x3a6   : > { %v6714_v38 = vpack.c.bf16 %v5181_v52, %v5179_v33  ;;  %v5207_v22 = vld [vmem:[%s10255_s11 + $0x328] sm:$0xff]  ;;  %v5208_v33 = vld [vmem:[%s10255_s11 + $0x330] sm:$0xff] }
 0x3a7   : > { %v5211_v52 = vld [vmem:[%s10255_s11 + $0x348] sm:$0xff] }
 0x3a8   : > { %6685 = vmatpush1.bf16.msra.mxu1 %v6684_v37  ;;  %v5180_v37 = vld [vmem:[%s10255_s11 + $0x250] sm:$0xff] }
 0x3a9   : > { %6687 = vmatprep.subr.bf16.mxu1 %v6686_v18  ;;  %v5183_v18 = vld [vmem:[%s10255_s11 + $0x268] sm:$0xff] }
 0x3aa   : > { %v6718_v58 = vpack.c.bf16 %v5185_v25, %v5183_v18  ;;  %v5212_v18 = vld [vmem:[%s10255_s11 + $0x350] sm:$0xff]  ;;  %v5215_v25 = vld [vmem:[%s10255_s11 + $0x368] sm:$0xff] }
 0x3ac   : > { %6689 = vmatpush1.bf16.msra.mxu1 %v6688_v49  ;;  %v5189_v49 = vld [vmem:[%s10255_s11 + $0x298] sm:$0xff] }
 0x3ad   : > { %6691 = vmatprep.subr.bf16.mxu1 %v6690_v45  ;;  %v6720_v45 = vpack.c.bf16 %v5184_v36, %v5182_v41  ;;  %v6722_v53 = vpack.c.bf16 %v5189_v49, %v5187_v44  ;;  %v3554_v41 = vld [vmem:[%s10257_s13 + $0x10] sm:$0xff] }
 0x3b0   : > { %6693 = vmatpush1.bf16.msra.mxu1 %v6692_v51  ;;  %v5193_v51 = vld [vmem:[%s10255_s11 + $0x2b8] sm:$0xff] }
 0x3b1   : > { %6695 = vmatprep.subr.bf16.mxu1 %v6694_v54  ;;  %v6724_v54 = vpack.c.bf16 %v5188_v47, %v5186_v23  ;;  %v6726_v55 = vpack.c.bf16 %v5193_v51, %v5191_v50  ;;  %v5219_v23 = vld [vmem:[%s10255_s11 + $0x388] sm:$0xff]  ;;  %v5221_v47 = vld [vmem:[%s10255_s11 + $0x398] sm:$0xff]  ;;  %v3556_v51 = vld [vmem:[%s10257_s13 + $0x20] sm:$0xff] }
 0x3b4   : > { %6697 = vmatpush1.bf16.msra.mxu1 %v6696_v63  ;;  %v5197_v63 = vld [vmem:[%s10255_s11 + $0x2d8] sm:$0xff] }
 0x3b5   : > { %6699 = vmatprep.subr.bf16.mxu1 %v6698_v0  ;;  %v6728_v0 = vpack.c.bf16 %v5192_v59, %v5190_v60  ;;  %v6730_v1 = vpack.c.bf16 %v5197_v63, %v5195_v62  ;;  %v6754_v60 = vpack.c.bf16 %v5221_v47, %v5219_v23  ;;  %v5218_v59 = vld [vmem:[%s10255_s11 + $0x380] sm:$0xff]  ;;  %v5220_v62 = vld [vmem:[%s10255_s11 + $0x390] sm:$0xff]  ;;  %v5223_v63 = vld [vmem:[%s10255_s11 + $0x3a8] sm:$0xff] }
 0x3b6   : > { %v5238_v47 = vld [vmem:[%s10255_s11 + $0x420] sm:$0xff] }
 0x3b8   : > { %6701 = vmatpush1.bf16.msra.mxu1 %v6700_v3  ;;  %v5201_v3 = vld [vmem:[%s10255_s11 + $0x2f8] sm:$0xff] }
 0x3b9   : > { %6703 = vmatprep.subr.bf16.mxu1 %v6702_v4  ;;  %v6732_v4 = vpack.c.bf16 %v5196_v2, %v5194_v46  ;;  %v6734_v6 = vpack.c.bf16 %v5201_v3, %v5199_v56  ;;  %v3558_v46 = vld [vmem:[%s10257_s13 + $0x30] sm:$0xff]  ;;  %v3559_v2 = vld [vmem:[%s10257_s13 + $0x38] sm:$0xff]  ;;  %v6756_v56 = vpack.c.bf16 %v5220_v62, %v5218_v59  ;;  %v5242_v59 = vld [vmem:[%s10255_s11 + $0x440] sm:$0xff] }
 0x3ba   : > { %v5244_v62 = vld [vmem:[%s10255_s11 + $0x450] sm:$0xff] }
 0x3bc   : > { %6705 = vmatpush1.bf16.msra.mxu1 %v6704_v14  ;;  %v5205_v14 = vld [vmem:[%s10255_s11 + $0x318] sm:$0xff] }
 0x3bd   : > { %6707 = vmatprep.subr.bf16.mxu1 %v6706_v13  ;;  %v6736_v13 = vpack.c.bf16 %v5200_v10, %v5198_v9  ;;  %v6738_v17 = vpack.c.bf16 %v5205_v14, %v5203_v11  ;;  %v5227_v9 = vld [vmem:[%s10255_s11 + $0x3c8] sm:$0xff]  ;;  %v5229_v10 = vld [vmem:[%s10255_s11 + $0x3d8] sm:$0xff]  ;;  %v6876_v11 = vpack.c.bf16 %v3559_v2, %v3558_v46  ;;  %v3560_v14 = vld [vmem:[%s10257_s13 + $0x40] sm:$0xff] }
 0x3be   : > { %v5246_v46 = vld [vmem:[%s10255_s11 + $0x460] sm:$0xff]  ;;  %v5248_v2 = vld [vmem:[%s10255_s11 + $0x470] sm:$0xff] }
 0x3bf   : > { %5169 = vmatmul.mubr.msk.f32.vlgmr.msra.gmra.mrb[6].mxu1 %vm7519_vm4, %v8778_v29  ;;  %v6716_v29 = vpack.c.bf16 %v5180_v37, %v5178_v39  ;;  %v5210_v37 = vld [vmem:[%s10255_s11 + $0x340] sm:$0xff] }
 0x3c0   : > { %6709 = vmatpush1.bf16.msra.mxu1 %v6708_v21  ;;  %2907 = vmatprep.mubr.f32.mxu1 %v7214_v7  ;;  %v5209_v21 = vld [vmem:[%s10255_s11 + $0x338] sm:$0xff]  ;;  %v6748_v36 = vpack.c.bf16 %v5212_v18, %v5210_v37  ;;  %v5235_v37 = vld [vmem:[%s10255_s11 + $0x408] sm:$0xff] }
 0x3c1   : > { %6711 = vmatprep.subr.bf16.mxu1 %v6710_v40  ;;  %v6740_v40 = vpack.c.bf16 %v5204_v20, %v5202_v19  ;;  %v6742_v24 = vpack.c.bf16 %v5209_v21, %v5207_v22  ;;  %v6762_v19 = vpack.c.bf16 %v5229_v10, %v5227_v9  ;;  %v5226_v20 = vld [vmem:[%s10255_s11 + $0x3c0] sm:$0xff]  ;;  %v5228_v22 = vld [vmem:[%s10255_s11 + $0x3d0] sm:$0xff]  ;;  %v5231_v21 = vld [vmem:[%s10255_s11 + $0x3e8] sm:$0xff] }
 0x3c2   : > { %v5237_v18 = vld [vmem:[%s10255_s11 + $0x418] sm:$0xff]  ;;  %v5252_v9 = vld [vmem:[%s10255_s11 + $0x490] sm:$0xff]  ;;  %v5255_v10 = vld [vmem:[%s10255_s11 + $0x4a8] sm:$0xff] }
 0x3c3   : > { %2908 = vmatmul.mubr.f32.gmra.mrb[8].mxu1 %v8796_v43  ;;  %v5285_v43 = vld [vmem:[%s10255_s11 + $0x598] sm:$0xff] }
 0x3c4   : > { %6713 = vmatpush1.bf16.msra.mxu1 %v6712_v34  ;;  %3016 = vmatprep.mubr.f32.mxu1 %v7214_v7  ;;  %v5213_v34 = vld [vmem:[%s10255_s11 + $0x358] sm:$0xff] }
 0x3c5   : > { %6715 = vmatprep.subr.bf16.mxu1 %v6714_v38  ;;  %v6744_v38 = vpack.c.bf16 %v5208_v33, %v5206_v48  ;;  %v6746_v39 = vpack.c.bf16 %v5213_v34, %v5211_v52  ;;  %v3562_v48 = vld [vmem:[%s10257_s13 + $0x50] sm:$0xff]  ;;  %v3563_v33 = vld [vmem:[%s10257_s13 + $0x58] sm:$0xff]  ;;  %v6764_v52 = vpack.c.bf16 %v5228_v22, %v5226_v20  ;;  %v5259_v20 = vld [vmem:[%s10255_s11 + $0x4c8] sm:$0xff] }
 0x3c6   : > { %v5261_v22 = vld [vmem:[%s10255_s11 + $0x4d8] sm:$0xff] }
 0x3c8   : > { %6717 = vmatpush1.bf16.msra.mxu1 %v6716_v29  ;;  %v3552_v29 = vld [vmem:[%s10257_s13] sm:$0xff] }
 0x3c9   : > { %6719 = vmatprep.subr.bf16.mxu1 %v6718_v58  ;;  %v3553_v58 = vld [vmem:[%s10257_s13 + $0x8] sm:$0xff] }
 0x3ca   : > { %v6867_v44 = vpack.c.bf16 %v3553_v58, %v3552_v29  ;;  %v3565_v29 = vld [vmem:[%s10257_s13 + $0x68] sm:$0xff] }
 0x3cc   : > { %6721 = vmatpush1.bf16.msra.mxu1 %v6720_v45  ;;  %v5214_v45 = vld [vmem:[%s10255_s11 + $0x360] sm:$0xff]  ;;  %6868 = vmatpush1.bf16.msra.mxu0 %v6867_v44  ;;  %v5236_v44 = vld [vmem:[%s10255_s11 + $0x410] sm:$0xff] }
 0x3cd   : > { %6723 = vmatprep.subr.bf16.mxu1 %v6722_v53  ;;  %v5216_v53 = vld [vmem:[%s10255_s11 + $0x370] sm:$0xff]  ;;  %6869 = vmatprep.subr.bf16.mxu0 %v7215_v42 }
 0x3d0   : > { %6725 = vmatpush1.bf16.msra.mxu1 %v6724_v54  ;;  %v3557_v54 = vld [vmem:[%s10257_s13 + $0x28] sm:$0xff] }
 0x3d1   : > { %6727 = vmatprep.subr.bf16.mxu1 %v6726_v55  ;;  %v6752_v55 = vpack.c.bf16 %v5216_v53, %v5214_v45 }
 0x3d4   : > { %6729 = vmatpush1.bf16.msra.mxu1 %v6728_v0  ;;  %v5225_v0 = vld [vmem:[%s10255_s11 + $0x3b8] sm:$0xff] }
 0x3d5   : > { %6731 = vmatprep.subr.bf16.mxu1 %v6730_v1  ;;  %v6873_v1 = vpack.c.bf16 %v3557_v54, %v3556_v51  ;;  %v6758_v3 = vpack.c.bf16 %v5225_v0, %v5223_v63  ;;  %v5243_v51 = vld [vmem:[%s10255_s11 + $0x448] sm:$0xff]  ;;  %v5245_v54 = vld [vmem:[%s10255_s11 + $0x458] sm:$0xff]  ;;  %v6780_v0 = vpack.c.bf16 %v5244_v62, %v5242_v59 }
 0x3d6   : > { %v5249_v63 = vld [vmem:[%s10255_s11 + $0x478] sm:$0xff] }
 0x3d8   : > { %6733 = vmatpush1.bf16.msra.mxu1 %v6732_v4  ;;  %v5222_v4 = vld [vmem:[%s10255_s11 + $0x3a0] sm:$0xff] }
 0x3d9   : > { %6735 = vmatprep.subr.bf16.mxu1 %v6734_v6  ;;  %v5224_v6 = vld [vmem:[%s10255_s11 + $0x3b0] sm:$0xff] }
 0x3dc   : > { %6737 = vmatpush1.bf16.msra.mxu1 %v6736_v13  ;;  %v3561_v13 = vld [vmem:[%s10257_s13 + $0x48] sm:$0xff] }
 0x3dd   : > { %6739 = vmatprep.subr.bf16.mxu1 %v6738_v17  ;;  %v6760_v17 = vpack.c.bf16 %v5224_v6, %v5222_v4  ;;  %v5250_v6 = vld [vmem:[%s10255_s11 + $0x480] sm:$0xff] }
 0x3df   : > { %3017 = vmatmul.mubr.f32.vlgmr.msra.gmra.mrb[6].mxu1 %v8820_v57  ;;  %v5217_v57 = vld [vmem:[%s10255_s11 + $0x378] sm:$0xff] }
 0x3e0   : > { %6741 = vmatpush1.bf16.msra.mxu1 %v6740_v40  ;;  %3022 = vmatprep.mubr.f32.mxu1 %v7214_v7  ;;  %v6750_v49 = vpack.c.bf16 %v5217_v57, %v5215_v25  ;;  %v5233_v40 = vld [vmem:[%s10255_s11 + $0x3f8] sm:$0xff]  ;;  %v6882_v25 = vpack.c.bf16 %v3563_v33, %v3562_v48  ;;  %v3564_v57 = vld [vmem:[%s10257_s13 + $0x60] sm:$0xff]  ;;  %v5260_v48 = vld [vmem:[%s10255_s11 + $0x4d0] sm:$0xff] }
 0x3e1   : > { %6743 = vmatprep.subr.bf16.mxu1 %v6742_v24  ;;  %v6879_v24 = vpack.c.bf16 %v3561_v13, %v3560_v14  ;;  %v6766_v34 = vpack.c.bf16 %v5233_v40, %v5231_v21  ;;  %v6885_v45 = vpack.c.bf16 %v3565_v29, %v3564_v57  ;;  %v6788_v14 = vpack.c.bf16 %v5252_v9, %v5250_v6  ;;  %v5263_v33 = vld [vmem:[%s10255_s11 + $0x4e8] sm:$0xff]  ;;  %v5286_v6 = vld [vmem:[%s10255_s11 + $0x5a0] sm:$0xff]  ;;  %v5288_v9 = vld [vmem:[%s10255_s11 + $0x5b0] sm:$0xff] }
 0x3e2   : > { %v6794_v40 = vpack.c.bf16 %v5261_v22, %v5259_v20  ;;  %v5295_v20 = vld [vmem:[%s10255_s11 + $0x5e8] sm:$0xff]  ;;  %v5297_v22 = vld [vmem:[%s10255_s11 + $0x5f8] sm:$0xff] }
 0x3e3   : > { %3023 = vmatmul.mubr.f32.gmra.mrb[8].mxu1 %v2948_v12  ;;  %v3555_v12 = vld [vmem:[%s10257_s13 + $0x18] sm:$0xff] }
 0x3e4   : > { %6745 = vmatpush1.bf16.msra.mxu1 %v6744_v38  ;;  %3135 = vmatprep.mubr.f32.mxu1 %v7214_v7  ;;  %v6870_v50 = vpack.c.bf16 %v3555_v12, %v3554_v41  ;;  %v5230_v38 = vld [vmem:[%s10255_s11 + $0x3e0] sm:$0xff]  ;;  %v6770_v41 = vpack.c.bf16 %v5237_v18, %v5235_v37  ;;  %v5239_v12 = vld [vmem:[%s10255_s11 + $0x428] sm:$0xff]  ;;  %v5264_v37 = vld [vmem:[%s10255_s11 + $0x4f0] sm:$0xff] }
 0x3e5   : > { %6747 = vmatprep.subr.bf16.mxu1 %v6746_v39  ;;  %v5232_v39 = vld [vmem:[%s10255_s11 + $0x3f0] sm:$0xff]  ;;  %v5267_v18 = vld [vmem:[%s10255_s11 + $0x508] sm:$0xff] }
 0x3e6   : > { %6871 = vmatpush1.bf16.msra.mxu0 %v6870_v50  ;;  %v6768_v58 = vpack.c.bf16 %v5232_v39, %v5230_v38  ;;  %v5240_v50 = vld [vmem:[%s10255_s11 + $0x430] sm:$0xff]  ;;  %v5262_v39 = vld [vmem:[%s10255_s11 + $0x4e0] sm:$0xff] }
 0x3e7   : > { %6872 = vmatprep.subr.bf16.mxu0 %v7215_v42  ;;  %v6800_v57 = vpack.c.bf16 %v5264_v37, %v5262_v39  ;;  %v5298_v39 = vld [vmem:[%s10255_s11 + $0x600] sm:$0xff]  ;;  %v5300_v37 = vld [vmem:[%s10255_s11 + $0x610] sm:$0xff] }
 0x3e8   : > { %6749 = vmatpush1.bf16.msra.mxu1 %v6748_v36  ;;  %v5234_v36 = vld [vmem:[%s10255_s11 + $0x400] sm:$0xff] }
 0x3e9   : > { %6751 = vmatprep.subr.bf16.mxu1 %v6750_v49  ;;  %v5241_v49 = vld [vmem:[%s10255_s11 + $0x438] sm:$0xff]  ;;  %v6772_v53 = vpack.c.bf16 %v5236_v44, %v5234_v36  ;;  %v5271_v36 = vld [vmem:[%s10255_s11 + $0x528] sm:$0xff] }
 0x3ea   : > { %6874 = vmatpush1.bf16.msra.mxu0 %v6873_v1  ;;  %v6774_v23 = vpack.c.bf16 %v5241_v49, %v5239_v12  ;;  %v5273_v44 = vld [vmem:[%s10255_s11 + $0x538] sm:$0xff] }
 0x3eb   : > { %6875 = vmatprep.subr.bf16.mxu0 %v7215_v42  ;;  %v6806_v49 = vpack.c.bf16 %v5273_v44, %v5271_v36  ;;  %v5307_v36 = vld [vmem:[%s10255_s11 + $0x648] sm:$0xff]  ;;  %v5309_v44 = vld [vmem:[%s10255_s11 + $0x658] sm:$0xff] }
 0x3ec   : > { %6753 = vmatpush1.bf16.msra.mxu1 %v6752_v55  ;;  %v6776_v55 = vpack.c.bf16 %v5240_v50, %v5238_v47  ;;  %v5277_v47 = vld [vmem:[%s10255_s11 + $0x558] sm:$0xff] }
 0x3ed   : > { %6755 = vmatprep.subr.bf16.mxu1 %v6754_v60  ;;  %v6778_v60 = vpack.c.bf16 %v5245_v54, %v5243_v51  ;;  %v5274_v54 = vld [vmem:[%s10255_s11 + $0x540] sm:$0xff] }
 0x3ee   : > { %6877 = vmatpush1.bf16.msra.mxu0 %v6876_v11  ;;  %v5257_v11 = vld [vmem:[%s10255_s11 + $0x4b8] sm:$0xff] }
 0x3ef   : > { %6878 = vmatprep.subr.bf16.mxu0 %v7215_v42  ;;  %v6790_v13 = vpack.c.bf16 %v5257_v11, %v5255_v10  ;;  %v5291_v10 = vld [vmem:[%s10255_s11 + $0x5c8] sm:$0xff]  ;;  %v5293_v11 = vld [vmem:[%s10255_s11 + $0x5d8] sm:$0xff] }
 0x3f0   : > { %6757 = vmatpush1.bf16.msra.mxu1 %v6756_v56  ;;  %v5251_v56 = vld [vmem:[%s10255_s11 + $0x488] sm:$0xff] }
 0x3f1   : > { %6759 = vmatprep.subr.bf16.mxu1 %v6758_v3  ;;  %v6784_v3 = vpack.c.bf16 %v5248_v2, %v5246_v46  ;;  %v5282_v46 = vld [vmem:[%s10255_s11 + $0x580] sm:$0xff]  ;;  %v5284_v2 = vld [vmem:[%s10255_s11 + $0x590] sm:$0xff] }
 0x3f2   : > { %6880 = vmatpush1.bf16.msra.mxu0 %v6879_v24  ;;  %v5258_v24 = vld [vmem:[%s10255_s11 + $0x4c0] sm:$0xff] }
 0x3f3   : > { %6881 = vmatprep.subr.bf16.mxu0 %v7215_v42 }
 0x3f4   : > { %6761 = vmatpush1.bf16.msra.mxu1 %v6760_v17  ;;  %v5254_v17 = vld [vmem:[%s10255_s11 + $0x4a0] sm:$0xff] }
 0x3f5   : > { %6763 = vmatprep.subr.bf16.mxu1 %v6762_v19  ;;  %v5256_v19 = vld [vmem:[%s10255_s11 + $0x4b0] sm:$0xff] }
 0x3f6   : > { %6883 = vmatpush1.bf16.msra.mxu0 %v6882_v25  ;;  %v6792_v21 = vpack.c.bf16 %v5256_v19, %v5254_v17  ;;  %v5269_v25 = vld [vmem:[%s10255_s11 + $0x518] sm:$0xff]  ;;  %v5290_v17 = vld [vmem:[%s10255_s11 + $0x5c0] sm:$0xff]  ;;  %v5292_v19 = vld [vmem:[%s10255_s11 + $0x5d0] sm:$0xff] }
 0x3f7   : > { %6884 = vmatprep.subr.bf16.mxu0 %v7215_v42  ;;  %v6802_v29 = vpack.c.bf16 %v5269_v25, %v5267_v18  ;;  %v5303_v18 = vld [vmem:[%s10255_s11 + $0x628] sm:$0xff]  ;;  %v5305_v25 = vld [vmem:[%s10255_s11 + $0x638] sm:$0xff] }
 0x3f8   : > { %6765 = vmatpush1.bf16.msra.mxu1 %v6764_v52  ;;  %v5265_v52 = vld [vmem:[%s10255_s11 + $0x4f8] sm:$0xff] }
 0x3f9   : > { %6767 = vmatprep.subr.bf16.mxu1 %v6766_v34  ;;  %v6796_v34 = vpack.c.bf16 %v5260_v48, %v5258_v24  ;;  %v6798_v38 = vpack.c.bf16 %v5265_v52, %v5263_v33  ;;  %v5294_v24 = vld [vmem:[%s10255_s11 + $0x5e0] sm:$0xff]  ;;  %v5296_v48 = vld [vmem:[%s10255_s11 + $0x5f0] sm:$0xff]  ;;  %v5299_v33 = vld [vmem:[%s10255_s11 + $0x608] sm:$0xff] }
 0x3fa   : > { %6886 = vmatpush1.bf16.msra.mxu0 %v6885_v45  ;;  %v5270_v45 = vld [vmem:[%s10255_s11 + $0x520] sm:$0xff]  ;;  %v5301_v52 = vld [vmem:[%s10255_s11 + $0x618] sm:$0xff] }
 0x3fb   : > { %6887 = vmatprep.subr.bf16.mxu0 %v7215_v42 }
 0x3fc   : > { %6769 = vmatpush1.bf16.msra.mxu1 %v6768_v58  ;;  %v5266_v58 = vld [vmem:[%s10255_s11 + $0x500] sm:$0xff] }
 0x3fd   : > { %6771 = vmatprep.subr.bf16.mxu1 %v6770_v41  ;;  %v5268_v41 = vld [vmem:[%s10255_s11 + $0x510] sm:$0xff] }
 0x3fe   : > { %v6804_v12 = vpack.c.bf16 %v5268_v41, %v5266_v58  ;;  %v5302_v58 = vld [vmem:[%s10255_s11 + $0x620] sm:$0xff]  ;;  %v5304_v41 = vld [vmem:[%s10255_s11 + $0x630] sm:$0xff] }
 0x3ff   : > { %3136 = vmatmul.mubr.f32.vlgmr.msra.gmra.mrb[6].mxu1 %v8826_v26  ;;  %v5247_v26 = vld [vmem:[%s10255_s11 + $0x468] sm:$0xff] }
 0x400   : > { %6773 = vmatpush1.bf16.msra.mxu1 %v6772_v53  ;;  %3141 = vmatprep.mubr.f32.mxu1 %v7214_v7  ;;  %v6782_v1 = vpack.c.bf16 %v5249_v63, %v5247_v26  ;;  %v5272_v53 = vld [vmem:[%s10255_s11 + $0x530] sm:$0xff]  ;;  %v5278_v26 = vld [vmem:[%s10255_s11 + $0x560] sm:$0xff] }
 0x401   : > { %6775 = vmatprep.subr.bf16.mxu1 %v6774_v23  ;;  %v5275_v23 = vld [vmem:[%s10255_s11 + $0x548] sm:$0xff]  ;;  %v6808_v50 = vpack.c.bf16 %v5272_v53, %v5270_v45  ;;  %v5280_v63 = vld [vmem:[%s10255_s11 + $0x570] sm:$0xff]  ;;  %v5306_v45 = vld [vmem:[%s10255_s11 + $0x640] sm:$0xff] }
 0x402   : > { %v6810_v51 = vpack.c.bf16 %v5277_v47, %v5275_v23  ;;  %v5308_v53 = vld [vmem:[%s10255_s11 + $0x650] sm:$0xff]  ;;  %v5311_v23 = vld [vmem:[%s10255_s11 + $0x668] sm:$0xff] }
 0x403   : > { %3142 = vmatmul.mubr.f32.gmra.mrb[8].mxu1 %v3067_v15  ;;  %v5253_v15 = vld [vmem:[%s10255_s11 + $0x498] sm:$0xff]  ;;  %v6844_v47 = vpack.c.bf16 %v5308_v53, %v5306_v45 }
 0x404   : > { %6777 = vmatpush1.bf16.msra.mxu1 %v6776_v55  ;;  %3254 = vmatprep.mubr.f32.mxu1 %v7214_v7  ;;  %v6786_v4 = vpack.c.bf16 %v5253_v15, %v5251_v56  ;;  %v5276_v55 = vld [vmem:[%s10255_s11 + $0x550] sm:$0xff]  ;;  %v5287_v56 = vld [vmem:[%s10255_s11 + $0x5a8] sm:$0xff]  ;;  %v5289_v15 = vld [vmem:[%s10255_s11 + $0x5b8] sm:$0xff] }
 0x405   : > { %6779 = vmatprep.subr.bf16.mxu1 %v6778_v60  ;;  %v5279_v60 = vld [vmem:[%s10255_s11 + $0x568] sm:$0xff]  ;;  %v6812_v59 = vpack.c.bf16 %v5276_v55, %v5274_v54  ;;  %v5312_v54 = vld [vmem:[%s10255_s11 + $0x670] sm:$0xff] }
 0x406   : > { %v5315_v55 = vld [vmem:[%s10255_s11 + $0x688] sm:$0xff] }
 0x408   : > { %6781 = vmatpush1.bf16.msra.mxu1 %v6780_v0  ;;  %v5283_v0 = vld [vmem:[%s10255_s11 + $0x588] sm:$0xff] }
 0x409   : > { %6783 = vmatprep.subr.bf16.mxu1 %v6782_v1  ;;  %v6818_v1 = vpack.c.bf16 %v5285_v43, %v5283_v0 }
 0x40c   : > { %6785 = vmatpush1.bf16.msra.mxu1 %v6784_v3  ;;  %v6820_v3 = vpack.c.bf16 %v5284_v2, %v5282_v46  ;;  %v5323_v46 = vld [vmem:[%s10255_s11 + $0x6c8] sm:$0xff]  ;;  %v5325_v2 = vld [vmem:[%s10255_s11 + $0x6d8] sm:$0xff] }
 0x40d   : > { %6787 = vmatprep.subr.bf16.mxu1 %v6786_v4  ;;  %v6822_v4 = vpack.c.bf16 %v5289_v15, %v5287_v56  ;;  %v6858_v15 = vpack.c.bf16 %v5325_v2, %v5323_v46  ;;  %v9545_v46 = vld [vmem:[%s7402_s0 + $0x8] sm:$0xff] }
 0x410   : > { %6789 = vmatpush1.bf16.msra.mxu1 %v6788_v14  ;;  %v6824_v14 = vpack.c.bf16 %v5288_v9, %v5286_v6  ;;  %v5327_v6 = vld [vmem:[%s10255_s11 + $0x6e8] sm:$0xff]  ;;  %v5329_v9 = vld [vmem:[%s10255_s11 + $0x6f8] sm:$0xff] }
 0x411   : > { %6791 = vmatprep.subr.bf16.mxu1 %v6790_v13  ;;  %v6826_v13 = vpack.c.bf16 %v5293_v11, %v5291_v10  ;;  %v6862_v11 = vpack.c.bf16 %v5329_v9, %v5327_v6  ;;  %v3869_v6 = vld [vmem:[%s10259_s15 + $0x8] sm:$0xff] }
 0x414   : > { %6793 = vmatpush1.bf16.msra.mxu1 %v6792_v21  ;;  %v6828_v21 = vpack.c.bf16 %v5292_v19, %v5290_v17  ;;  %v3566_v19 = vld [vmem:[%s10257_s13 + $0x70] sm:$0xff] }
 0x415   : > { %6795 = vmatprep.subr.bf16.mxu1 %v6794_v40  ;;  %v6830_v40 = vpack.c.bf16 %v5297_v22, %v5295_v20  ;;  %v3567_v20 = vld [vmem:[%s10257_s13 + $0x78] sm:$0xff] }
 0x416   : > { %v6888_v22 = vpack.c.bf16 %v3567_v20, %v3566_v19  ;;  %v3874_v20 = vld [vmem:[%s10259_s15 + $0x30] sm:$0xff] }
 0x418   : > { %6797 = vmatpush1.bf16.msra.mxu1 %v6796_v34  ;;  %v6832_v34 = vpack.c.bf16 %v5296_v48, %v5294_v24  ;;  %6889 = vmatpush1.bf16.msra.mxu0 %v6888_v22  ;;  %v3875_v22 = vld [vmem:[%s10259_s15 + $0x38] sm:$0xff] }
 0x419   : > { %6799 = vmatprep.subr.bf16.mxu1 %v6798_v38  ;;  %v6834_v38 = vpack.c.bf16 %v5301_v52, %v5299_v33  ;;  %6890 = vmatprep.subr.bf16.mxu0 %v7215_v42  ;;  %v3514_v42 = vld [vmem:[%s10256_s12] sm:$0x3] }
 0x41a   : > { %v3519_v48 = vrot.slane %v3514_v42, %v7497_v5  ;;  %v3523_v33 = vrot.slane %v3514_v42, %v7502_v8  ;;  %v4059_v42 = vld [vmem:[%s10261_s17 + $0x100] sm:$0xff] }
 0x41c   : > { %6801 = vmatpush1.bf16.msra.mxu1 %v6800_v57  ;;  %v6836_v57 = vpack.c.bf16 %v5300_v37, %v5298_v39 }
 0x41d   : > { %6803 = vmatprep.subr.bf16.mxu1 %v6802_v29  ;;  %v6838_v29 = vpack.c.bf16 %v5305_v25, %v5303_v18 }
 0x41f   : > { %3255 = vmatmul.mubr.f32.vlgmr.msra.gmra.mrb[6].mxu1 %v8831_v27  ;;  %v5281_v27 = vld [vmem:[%s10255_s11 + $0x578] sm:$0xff] }
 0x420   : > { %6805 = vmatpush1.bf16.msra.mxu1 %v6804_v12  ;;  %3260 = vmatprep.mubr.f32.mxu1 %v7214_v7  ;;  %v6814_v62 = vpack.c.bf16 %v5281_v27, %v5279_v60  ;;  %v6840_v12 = vpack.c.bf16 %v5304_v41, %v5302_v58  ;;  %v3665_v58 = vld [vmem:[%s10263_s19 + $0x10] sm:$0xff]  ;;  %v3666_v41 = vld [vmem:[%s10263_s19 + $0x18] sm:$0xff] }
 0x421   : > { %6807 = vmatprep.subr.bf16.mxu1 %v6806_v49  ;;  %v6842_v49 = vpack.c.bf16 %v5309_v44, %v5307_v36  ;;  %v6897_v45 = vpack.c.bf16 %v3666_v41, %v3665_v58  ;;  %v4063_v41 = vld [vmem:[%s10261_s17 + $0x120] sm:$0xff] }
 0x423   : > { %3261 = vmatmul.mubr.f32.gmra.mrb[8].mxu1 %v3186_v16  ;;  %v6816_v16 = vpack.c.bf16 %v5280_v63, %v5278_v26  ;;  %v5319_v26 = vld [vmem:[%s10255_s11 + $0x6a8] sm:$0xff]  ;;  %v5321_v63 = vld [vmem:[%s10255_s11 + $0x6b8] sm:$0xff] }
 0x424   : > { %6809 = vmatpush1.bf16.msra.mxu1 %v6808_v50  ;;  %3376 = vmatprep.mubr.f32.mxu1 %v7214_v7  ;;  %v6854_v43 = vpack.c.bf16 %v5321_v63, %v5319_v26  ;;  %v3751_v63 = vld [vmem:[%s10264_s20 + $0x10] sm:$0xff] }
 0x425   : > { %6811 = vmatprep.subr.bf16.mxu1 %v6810_v51  ;;  %v5310_v51 = vld [vmem:[%s10255_s11 + $0x660] sm:$0xff] }
 0x426   : > { %v6848_v60 = vpack.c.bf16 %v5312_v54, %v5310_v51 }
 0x428   : > { %6813 = vmatpush1.bf16.msra.mxu1 %v6812_v59  ;;  %v5314_v59 = vld [vmem:[%s10255_s11 + $0x680] sm:$0xff] }
 0x429   : > { %6815 = vmatprep.subr.bf16.mxu1 %v6814_v62  ;;  %v5316_v62 = vld [vmem:[%s10255_s11 + $0x690] sm:$0xff] }
 0x42a   : > { %v6852_v0 = vpack.c.bf16 %v5316_v62, %v5314_v59  ;;  %v3749_v59 = vld [vmem:[%s10264_s20] sm:$0xff]  ;;  %v3750_v62 = vld [vmem:[%s10264_s20 + $0x8] sm:$0xff] }
 0x42b   : > { %v6909_v26 = vpack.c.bf16 %v3750_v62, %v3749_v59 }
 0x42c   : > { %6817 = vmatpush1.bf16.msra.mxu1 %v6816_v16  ;;  %v5318_v16 = vld [vmem:[%s10255_s11 + $0x6a0] sm:$0xff] }
 0x42d   : > { %6819 = vmatprep.subr.bf16.mxu1 %v6818_v1  ;;  %v5320_v1 = vld [vmem:[%s10255_s11 + $0x6b0] sm:$0xff] }
 0x42e   : > { %v6856_v56 = vpack.c.bf16 %v5320_v1, %v5318_v16  ;;  %v3753_v16 = vld [vmem:[%s10264_s20 + $0x20] sm:$0xff]  ;;  %v3754_v1 = vld [vmem:[%s10264_s20 + $0x28] sm:$0xff] }
 0x42f   : > { %v6917_v2 = vpack.c.bf16 %v3754_v1, %v3753_v16 }
 0x430   : > { %6821 = vmatpush1.bf16.msra.mxu1 %v6820_v3  ;;  %v5322_v3 = vld [vmem:[%s10255_s11 + $0x6c0] sm:$0xff] }
 0x431   : > { %6823 = vmatprep.subr.bf16.mxu1 %v6822_v4  ;;  %v5324_v4 = vld [vmem:[%s10255_s11 + $0x6d0] sm:$0xff] }
 0x432   : > { %v6860_v10 = vpack.c.bf16 %v5324_v4, %v5322_v3  ;;  %v3868_v4 = vld [vmem:[%s10259_s15] sm:$0xff] }
 0x433   : > { %v6925_v9 = vpack.c.bf16 %v3869_v6, %v3868_v4 }
 0x434   : > { %6825 = vmatpush1.bf16.msra.mxu1 %v6824_v14  ;;  %v5326_v14 = vld [vmem:[%s10255_s11 + $0x6e0] sm:$0xff] }
 0x435   : > { %6827 = vmatprep.subr.bf16.mxu1 %v6826_v13  ;;  %v5328_v13 = vld [vmem:[%s10255_s11 + $0x6f0] sm:$0xff] }
 0x436   : > { %v6864_v17 = vpack.c.bf16 %v5328_v13, %v5326_v14  ;;  %v3872_v13 = vld [vmem:[%s10259_s15 + $0x20] sm:$0xff] }
 0x438   : > { %6829 = vmatpush1.bf16.msra.mxu1 %v6828_v21  ;;  %v3663_v21 = vld [vmem:[%s10263_s19] sm:$0xff] }
 0x439   : > { %6831 = vmatprep.subr.bf16.mxu1 %v6830_v40  ;;  %v3664_v40 = vld [vmem:[%s10263_s19 + $0x8] sm:$0xff] }
 0x43a   : > { %v6893_v24 = vpack.c.bf16 %v3664_v40, %v3663_v21  ;;  %v4075_v40 = vld [vmem:[%s10261_s17 + $0x180] sm:$0xff] }
 0x43c   : > { %6833 = vmatpush1.bf16.msra.mxu1 %v6832_v34 }
 0x43d   : > { %6835 = vmatprep.subr.bf16.mxu1 %v6834_v38 }
 0x43f   : > { %3377 = vmatmul.mubr.f32.vlgmr.msra.gmra.mrb[6].mxu1 %v8834_v28  ;;  %v5313_v28 = vld [vmem:[%s10255_s11 + $0x678] sm:$0xff] }
 0x440   : > { %6837 = vmatpush1.bf16.msra.mxu1 %v6836_v57  ;;  %3382 = vmatprep.mubr.f32.mxu1 %v7214_v7  ;;  %v6846_v50 = vpack.c.bf16 %v5313_v28, %v5311_v23  ;;  %v3667_v23 = vld [vmem:[%s10263_s19 + $0x20] sm:$0xff]  ;;  %v3668_v28 = vld [vmem:[%s10263_s19 + $0x28] sm:$0xff] }
 0x441   : > { %6839 = vmatprep.subr.bf16.mxu1 %v6838_v29  ;;  %v6901_v54 = vpack.c.bf16 %v3668_v28, %v3667_v23  ;;  %v5330_v23 = vld [vmem:[%s10258_s14] ss:$0 sm:$0xff] }
 0x443   : > { %3383 = vmatmul.mubr.f32.gmra.mrb[8].mxu1 %v8837_v30  ;;  %v5317_v30 = vld [vmem:[%s10255_s11 + $0x698] sm:$0xff] }
 0x444   : > { %6841 = vmatpush1.bf16.msra.mxu1 %v6840_v12  ;;  %3497 = vmatprep.mubr.f32.mxu1 %v7214_v7  ;;  %v6850_v27 = vpack.c.bf16 %v5317_v30, %v5315_v55  ;;  %v3669_v30 = vld [vmem:[%s10263_s19 + $0x30] sm:$0xff] }
 0x445   : > { %6843 = vmatprep.subr.bf16.mxu1 %v6842_v49 }
 0x448   : > { %6845 = vmatpush1.bf16.msra.mxu1 %v6844_v47 }
 0x449   : > { %6847 = vmatprep.subr.bf16.mxu1 %v6846_v50 }
 0x44c   : > { %6849 = vmatpush1.bf16.msra.mxu1 %v6848_v60  ;;  %v3670_v60 = vld [vmem:[%s10263_s19 + $0x38] sm:$0xff] }
 0x44d   : > { %6851 = vmatprep.subr.bf16.mxu1 %v6850_v27  ;;  %v6905_v31 = vpack.c.bf16 %v3670_v60, %v3669_v30  ;;  %v9522_v27 = vld [vmem:[%s7402_s0] sm:$0xff] }
 0x450   : > { %6853 = vmatpush1.bf16.msra.mxu1 %v6852_v0  ;;  %v3752_v0 = vld [vmem:[%s10264_s20 + $0x18] sm:$0xff] }
 0x451   : > { %6855 = vmatprep.subr.bf16.mxu1 %v6854_v43  ;;  %v6913_v43 = vpack.c.bf16 %v3752_v0, %v3751_v63  ;;  %v3661_v0 = vand.u32 127, %v685_v61 }
 0x453   : > { %vm3662_vm14 = vcmp.lt.s32.totalorder %v3661_v0, 4  ;;  %vm3748_vm15 = vcmp.ge.s32.totalorder %v3661_v0, 60 }
 0x454   : > { %6857 = vmatpush1.bf16.msra.mxu1 %v6856_v56  ;;  %v3755_v56 = vld [vmem:[%s10264_s20 + $0x30] sm:$0xff] }
 0x455   : > { %6859 = vmatprep.subr.bf16.mxu1 %v6858_v15  ;;  %v3756_v15 = vld [vmem:[%s10264_s20 + $0x38] sm:$0xff] }
 0x456   : > { %v6921_v3 = vpack.c.bf16 %v3756_v15, %v3755_v56 }
 0x458   : > { %6861 = vmatpush1.bf16.msra.mxu1 %v6860_v10  ;;  %v3870_v10 = vld [vmem:[%s10259_s15 + $0x10] sm:$0xff] }
 0x459   : > { %6863 = vmatprep.subr.bf16.mxu1 %v6862_v11  ;;  %v3871_v11 = vld [vmem:[%s10259_s15 + $0x18] sm:$0xff] }
 0x45a   : > { %v6929_v14 = vpack.c.bf16 %v3871_v11, %v3870_v10 }
 0x45c   : > { %6865 = vmatpush1.bf16.msra.mxu1 %v6864_v17  ;;  %v3873_v17 = vld [vmem:[%s10259_s15 + $0x28] sm:$0xff] }
 0x45d   : > { %v6933_v19 = vpack.c.bf16 %v3873_v17, %v3872_v13 }
 0x45f   : > { %3498 = vmatmul.mubr.f32.vlgmr.msra.gmra.mrb[6].mxu1 %v8841_v32  ;;  %v3568_v32 = vld [vmem:[%s10257_s13 + $0x80] sm:$0xff] }
 0x460   : > { %3503 = vmatprep.mubr.f32.mxu1 %v7214_v7  ;;  %v3569_v7 = vld [vmem:[%s10257_s13 + $0x88] sm:$0xff] }
 0x463   : > { %3504 = vmatmul.mubr.f32.gmra.mrb[8].mxu1 %v8844_v35  ;;  %v6891_v35 = vpack.c.bf16 %v3569_v7, %v3568_v32  ;;  %v6937_v32 = vpack.c.bf16 %v3875_v22, %v3874_v20  ;;  %v5359_v7 = vld [vmem:[%s10261_s17 + $0x280] sm:$0xff] }
 0x465   : > { %6892 = vmatpush1.bf16.msra.mxu0 %v6891_v35  ;;  %v5360_v35 = vld [vmem:[%s10261_s17 + $0x288] sm:$0xff] }
 0x466   : > { %6894 = vmatprep.subr.bf16.mxu0 %v6893_v24  ;;  %v6941_v21 = vpack.c.bf16 %v5360_v35, %v5359_v7  ;;  %v9649_v35 = vld [vmem:[#allocation2 + $0x28] sm:$0xff] }
 0x532   : > { %v3499_v52 = vpop.f32.mrb[6].mxu1 }
 0x533   : > { %v3526_v34 = vadd.f32 %v3519_v48, %v3499_v52  ;;  %v3501_v38 = vpop.f32.mrb[7].mxu1 }
 0x534   : > { %v3527_v39 = vadd.f32 %v3523_v33, %v3501_v38  ;;  %v4078_v38 = vld [vmem:[%s10261_s17 + $0x198] sm:$0xff] }
 0x535   : > { %v3530_v37 = vmax.f32 %v3526_v34, 0.0  ;;  %v4077_v34 = vld [vmem:[%s10261_s17 + $0x190] sm:$0xff] }
 0x536   : > { %v3531_v18 = vmax.f32 %v3527_v39, 0.0  ;;  %v3505_v25 = vpop.f32.mrb[8].mxu1  ;;  %v7041_v39 = vpack.c.bf16 %v4078_v38, %v4077_v34  ;;  %v5361_v34 = vld [vmem:[%s10261_s17 + $0x290] sm:$0xff]  ;;  %v5362_v38 = vld [vmem:[%s10261_s17 + $0x298] sm:$0xff] }
 0x537   : > { %v3528_v57 = vadd.f32 %v3519_v48, %v3505_v25  ;;  %v3507_v29 = vpop.f32.mrb[9].mxu1  ;;  %v3538_v44 = vrot.slane %v3530_v37, 6  ;;  %v4061_v37 = vld [vmem:[%s10261_s17 + $0x110] sm:$0xff] }
 0x538   : > { %v3539_v5 = vrot.slane %v3531_v18, 6  ;;  %v3529_v36 = vadd.f32 %v3523_v33, %v3507_v29  ;;  %v4060_v33 = vld [vmem:[%s10261_s17 + $0x108] sm:$0xff]  ;;  %v4062_v18 = vld [vmem:[%s10261_s17 + $0x118] sm:$0xff] }
 0x539   : > { %v3532_v8 = vmax.f32 %v3528_v57, 0.0  ;;  %v7039_v52 = vpack.c.bf16 %v4060_v33, %v4059_v42  ;;  %v7043_v25 = vpack.c.bf16 %v4062_v18, %v4061_v37  ;;  %v4079_v57 = vld [vmem:[%s10261_s17 + $0x1a0] sm:$0xff]  ;;  %v4080_v29 = vld [vmem:[%s10261_s17 + $0x1a8] sm:$0xff]  ;;  %v4180_v37 = vrot.slane %v9649_v35, 1 }
 0x53a   : > { %v3533_v12 = vmax.f32 %v3529_v36, 0.0  ;;  %v3549_v49 = vsel %vm985_vm10, 0.0, %v3539_v5  ;;  %v7045_v58 = vpack.c.bf16 %v4080_v29, %v4079_v57  ;;  %v4081_v36 = vld [vmem:[%s10261_s17 + $0x1b0] sm:$0xff]  ;;  %v5343_v42 = vld [vmem:[%s10261_s17 + $0x200] sm:$0xff]  ;;  %v6945_v29 = vpack.c.bf16 %v5362_v38, %v5361_v34 }
 0x53b   : > { %v3540_v53 = vrot.slane %v3532_v8, 6  ;;  %5331 = vmatprep.mubr.msk.f32.mxu0 %vm2595_vm12, %v3549_v49  ;;  %v4082_v8 = vld [vmem:[%s10261_s17 + $0x1b8] sm:$0xff]  ;;  %v4065_v49 = vld [vmem:[%s10261_s17 + $0x130] sm:$0xff] }
 0x53c   : > { %v3542_v47 = vrot.slane %v3533_v12, 6  ;;  %5333 = vmatmul.mubr.msk.f32.vlgmr.msra.gmra.mrb[16].mxu0 %vm8655_vm13, %v3538_v44  ;;  %v7049_v12 = vpack.c.bf16 %v4082_v8, %v4081_v36  ;;  %v5364_v36 = vld [vmem:[%s10261_s17 + $0x2a8] sm:$0xff] }
 0x53d   : > { %6896 = vmatpush3.bf16.msra.mxu0 %v6893_v24  ;;  %v3541_v50 = vsel %vm985_vm10, %v3538_v44, %v3540_v53  ;;  %v4076_v24 = vld [vmem:[%s10261_s17 + $0x188] sm:$0xff] }
 0x53e   : > { %6898 = vmatprep.subr.bf16.mxu0 %v6897_v45  ;;  %v3543_v51 = vsel %vm985_vm10, %v3539_v5, %v3542_v47  ;;  %v7037_v48 = vpack.c.bf16 %v4076_v24, %v4075_v40  ;;  %v4064_v5 = vld [vmem:[%s10261_s17 + $0x128] sm:$0xff] }
 0x53f   : > { %v3551_v55 = vsel %vm1201_vm6, %v3543_v51, 0.0  ;;  %v7047_v44 = vpack.c.bf16 %v4064_v5, %v4063_v41  ;;  %v5346_v41 = vld [vmem:[%s10261_s17 + $0x218] sm:$0xff]  ;;  %v5363_v5 = vld [vmem:[%s10261_s17 + $0x2a0] sm:$0xff] }
 0x540   : > { %5334 = vmatprep.mubr.msk.f32.mxu0 %vm2595_vm12, %v3551_v55  ;;  %7038 = vmatprep.subr.bf16.mxu1 %v7037_v48  ;;  %v5344_v48 = vld [vmem:[%s10261_s17 + $0x208] sm:$0xff] }
 0x541   : > { %6900 = vmatpush3.bf16.msra.mxu0 %v6897_v45  ;;  %7040 = vmatpush3.bf16.msra.mxu1 %v7039_v52  ;;  %v4066_v45 = vld [vmem:[%s10261_s17 + $0x138] sm:$0xff]  ;;  %v6943_v57 = vpack.c.bf16 %v5344_v48, %v5343_v42  ;;  %v4095_v48 = vld [vmem:[#allocation2 + $0x40] sm:$0x1] }
 0x542   : > { %5335 = vmatmul.mubr.msk.f32.gmra.mrb[18].mxu0 %vm1201_vm6, %v3541_v50  ;;  %6902 = vmatprep.subr.bf16.mxu0 %v6901_v54  ;;  %v7051_v53 = vpack.c.bf16 %v4066_v45, %v4065_v49  ;;  %v5347_v49 = vld [vmem:[%s10261_s17 + $0x220] sm:$0xff]  ;;  %v5348_v45 = vld [vmem:[%s10261_s17 + $0x228] sm:$0xff]  ;;  %v5394_v42 = vld [vmem:[%s10261_s17 + $0x398] sm:$0xff] }
 0x543   : > { %6126 = vmatprep.mubr.msk.f32.mxu0 %vm700_vm0, %v9522_v27  ;;  %7042 = vmatprep.subr.bf16.mxu1 %v7041_v39 }
 0x545   : > { %6904 = vmatpush3.bf16.msra.mxu0 %v6901_v54  ;;  %7044 = vmatpush3.bf16.msra.mxu1 %v7043_v25 }
 0x546   : > { %6906 = vmatprep.subr.bf16.mxu0 %v6905_v31  ;;  %7046 = vmatprep.subr.bf16.mxu1 %v7045_v58  ;;  %v5345_v58 = vld [vmem:[%s10261_s17 + $0x210] sm:$0xff] }
 0x549   : > { %6908 = vmatpush3.bf16.msra.mxu0 %v6905_v31  ;;  %7048 = vmatpush3.bf16.msra.mxu1 %v7047_v44  ;;  %v6947_v44 = vpack.c.bf16 %v5346_v41, %v5345_v58  ;;  %v5396_v58 = vld [vmem:[%s10261_s17 + $0x3a8] sm:$0xff] }
 0x54a   : > { %6910 = vmatprep.subr.bf16.mxu0 %v6909_v26  ;;  %7050 = vmatprep.subr.bf16.mxu1 %v7049_v12  ;;  %v6949_v12 = vpack.c.bf16 %v5364_v36, %v5363_v5 }
 0x54c   : > { %6127 = vmatmul.mubr.msk.f32.vlgmr.msra.gmra.mrb[20].mxu0 %vm700_vm0, %v9545_v46 }
 0x54d   : > { %6912 = vmatpush3.bf16.msra.mxu0 %v6909_v26  ;;  %6145 = vmatprep.mubr.msk.f32.mxu0 %vm700_vm0, %v9522_v27 }
 0x54e   : > { %6914 = vmatprep.subr.bf16.mxu0 %v6913_v43  ;;  %7052 = vmatpush3.bf16.msra.mxu1 %v7051_v53  ;;  %v5365_v53 = vld [vmem:[%s10261_s17 + $0x2b0] sm:$0xff] }
 0x551   : > { %6916 = vmatpush3.bf16.msra.mxu0 %v6913_v43 }
 0x552   : > { %6918 = vmatprep.subr.bf16.mxu0 %v6917_v2 }
 0x555   : > { %6920 = vmatpush3.bf16.msra.mxu0 %v6917_v2 }
 0x556   : > { %6922 = vmatprep.subr.bf16.mxu0 %v6921_v3 }
 0x559   : > { %6924 = vmatpush3.bf16.msra.mxu0 %v6921_v3 }
 0x55a   : > { %6926 = vmatprep.subr.bf16.mxu0 %v6925_v9 }
 0x55c   : > { %6146 = vmatmul.mubr.msk.f32.vlgmr.msra.gmra.mrb[22].mxu0 %vm700_vm0, %v9545_v46 }
 0x55d   : > { %6928 = vmatpush3.bf16.msra.mxu0 %v6925_v9 }
 0x55e   : > { %6930 = vmatprep.subr.bf16.mxu0 %v6929_v14 }
 0x561   : > { %6932 = vmatpush3.bf16.msra.mxu0 %v6929_v14 }
 0x562   : > { %6934 = vmatprep.subr.bf16.mxu0 %v6933_v19 }
 0x565   : > { %6936 = vmatpush3.bf16.msra.mxu0 %v6933_v19 }
 0x566   : > { %6938 = vmatprep.subr.bf16.mxu0 %v6937_v32 }
 0x569   : > { %6940 = vmatpush3.bf16.msra.mxu0 %v6937_v32 }
 0x56a   : > { %6942 = vmatprep.subr.bf16.mxu0 %v6941_v21  ;;  %v4092_v21 = vld [vmem:[#allocation2 + $0x8] sm:$0xfe] }
 0x56b   : > { %v4179_v39 = vrot.slane %v4092_v21, 1  ;;  %v5375_v21 = vld [vmem:[%s10261_s17 + $0x300] sm:$0xff] }
 0x56d   : > { %v4181_v8 = vsel %vm1023_vm5, %v4179_v39, %v4180_v37  ;;  %v5377_v39 = vld [vmem:[%s10261_s17 + $0x310] sm:$0xff] }
 0x60f   : > { %v3649_v28 = vpop.f32.mrb[16].mxu0 }
 0x610   : > { %v3650_v47 = vadd.f32 %v5330_v23, %v3649_v28  ;;  %v3651_v50 = vpop.f32.mrb[17].mxu0  ;;  %v6951_v28 = vpack.c.bf16 %v5348_v45, %v5347_v49  ;;  %v5398_v45 = vld [vmem:[%s10261_s17 + $0x3b8] sm:$0xff] }
 0x611   : > { %v5349_v50 = vld [vmem:[%s10261_s17 + $0x230] sm:$0xff] }
 0x612   : > { %v3658_v51 = vmax.f32 %v3650_v47, 0.0 }
 0x614   : > { %v3999_v54 = vrot.slane %v3658_v51, 7  ;;  %v5350_v51 = vld [vmem:[%s10261_s17 + $0x238] sm:$0xff] }
 0x615   : > { %v3654_v55 = vpop.f32.mrb[18].mxu0 }
 0x616   : > { %4005 = vst [vmem:[#allocation2 + $0x10] sm:$0xfe] %v3999_v54  ;;  %v3655_v30 = vadd.f32 %v5330_v23, %v3654_v55  ;;  %v3656_v60 = vpop.f32.mrb[19].mxu0  ;;  %v5366_v23 = vld [vmem:[%s10261_s17 + $0x2b8] sm:$0xff]  ;;  %v5368_v55 = vld [vmem:[%s10261_s17 + $0x2c8] sm:$0xff] }
 0x617   : > { %v6953_v47 = vpack.c.bf16 %v5366_v23, %v5365_v53  ;;  %v4083_v23 = vld [vmem:[%s10261_s17 + $0x1c0] sm:$0xff] }
 0x618   : > { %v3659_v31 = vmax.f32 %v3655_v30, 0.0  ;;  %v6955_v30 = vpack.c.bf16 %v5350_v51, %v5349_v50  ;;  %v5382_v51 = vld [vmem:[%s10261_s17 + $0x338] sm:$0xff] }
 0x61a   : > { %v4000_v59 = vrot.slane %v3659_v31, 7  ;;  %v5351_v31 = vld [vmem:[%s10261_s17 + $0x240] sm:$0xff] }
 0x61c   : > { %v9641_v62 = vsel %vm867_vm3, %v3999_v54, %v4000_v59  ;;  %4007 = vst [vmem:[#allocation2 + $0x50] sm:$0x1] %v4000_v59  ;;  %v5367_v54 = vld [vmem:[%s10261_s17 + $0x2c0] sm:$0xff]  ;;  %v5352_v59 = vld [vmem:[%s10261_s17 + $0x248] sm:$0xff] }
 0x61d   : > { %v6957_v60 = vpack.c.bf16 %v5368_v55, %v5367_v54  ;;  %v6959_v0 = vpack.c.bf16 %v5352_v59, %v5351_v31  ;;  %v4067_v54 = vld [vmem:[%s10261_s17 + $0x140] sm:$0xff]  ;;  %v4068_v55 = vld [vmem:[%s10261_s17 + $0x148] sm:$0xff] }
 0x61e   : > { %v5399_v31 = vld [vmem:[%s10261_s17 + $0x3c0] sm:$0xff]  ;;  %v5400_v59 = vld [vmem:[%s10261_s17 + $0x3c8] sm:$0xff] }
 0x61f   : > { %v6128_v26 = vpop.f32.mrb[20].mxu0 }
 0x620   : > { %v3737_v63 = vpop.f32.mrb[21].mxu0  ;;  %v3747_v16 = vsel %vm3662_vm14, -inf, %v6128_v26  ;;  %v5369_v26 = vld [vmem:[%s10261_s17 + $0x2d0] sm:$0xff] }
 0x621   : > { %v3746_v56 = vsel %vm3662_vm14, -inf, %v3737_v63  ;;  %v5370_v63 = vld [vmem:[%s10261_s17 + $0x2d8] sm:$0xff] }
 0x62f   : > { %v6147_v43 = vpop.f32.mrb[22].mxu0 }
 0x630   : > { %v3833_v1 = vsel %vm3748_vm15, -inf, %v6147_v43  ;;  %v3823_v2 = vpop.f32.mrb[23].mxu0  ;;  %v6961_v43 = vpack.c.bf16 %v5370_v63, %v5369_v26  ;;  %v6989_v26 = vpack.c.bf16 %v5400_v59, %v5399_v31  ;;  %v4085_v63 = vld [vmem:[%s10261_s17 + $0x1d0] sm:$0xff]  ;;  %v5458_v31 = vld [vmem:[%s10261_s17 + $0x598] sm:$0xff] }
 0x631   : > { %v3835_v15 = vmax.f32 %v3747_v16, %v3833_v1  ;;  %v3832_v3 = vsel %vm3748_vm15, -inf, %v3823_v2  ;;  %v5353_v16 = vld [vmem:[%s10261_s17 + $0x250] sm:$0xff]  ;;  %v5354_v1 = vld [vmem:[%s10261_s17 + $0x258] sm:$0xff]  ;;  %v5371_v2 = vld [vmem:[%s10261_s17 + $0x2e0] sm:$0xff] }
 0x632   : > { %v3834_v4 = vmax.f32 %v3746_v56, %v3832_v3  ;;  %v5372_v56 = vld [vmem:[%s10261_s17 + $0x2e8] sm:$0xff]  ;;  %v4093_v59 = vld [vmem:[#allocation2 + $0x10] sm:$0xfe] }
 0x633   : > { %v3837_v6 = vmax.f32 %v9545_v46, %v3835_v15  ;;  %v6963_v15 = vpack.c.bf16 %v5354_v1, %v5353_v16  ;;  %v6965_v3 = vpack.c.bf16 %v5372_v56, %v5371_v2  ;;  %v5384_v1 = vld [vmem:[%s10261_s17 + $0x348] sm:$0xff]  ;;  %v4069_v2 = vld [vmem:[%s10261_s17 + $0x150] sm:$0xff]  ;;  %v4070_v56 = vld [vmem:[%s10261_s17 + $0x158] sm:$0xff] }
 0x634   : > { %v3836_v9 = vmax.f32 %v9522_v27, %v3834_v4  ;;  %v5355_v4 = vld [vmem:[%s10261_s17 + $0x260] sm:$0xff] }
 0x635   : > { %v3841_v10 = vrot.slane %v3837_v6, 7  ;;  %v5356_v6 = vld [vmem:[%s10261_s17 + $0x268] sm:$0xff] }
 0x636   : > { %v3840_v11 = vrot.slane %v3836_v9, 7  ;;  %v5373_v9 = vld [vmem:[%s10261_s17 + $0x2f0] sm:$0xff] }
 0x637   : > { %v3847_v14 = vsel %vm867_vm3, %v3841_v10, -inf }
 0x638   : > { %v3853_v13 = vrot.slane %v3847_v14, 1  ;;  %v3862_v61 = vrot.slane %v3847_v14, 2  ;;  %v3842_v17 = vsel %vm867_vm3, %v3840_v11, %v3841_v10  ;;  %v3846_v19 = vsel %vm867_vm3, -inf, %v3840_v11  ;;  %v5374_v10 = vld [vmem:[%s10261_s17 + $0x2f8] sm:$0xff] }
 0x639   : > { %v3850_v20 = vrot.slane %v3846_v19, 1  ;;  %v3851_v22 = vrot.slane %v3842_v17, 1  ;;  %v3859_v32 = vrot.slane %v3846_v19, 2  ;;  %v3860_v7 = vrot.slane %v3842_v17, 2 }
 0x63a   : > { %v6967_v11 = vpack.c.bf16 %v5356_v6, %v5355_v4  ;;  %v6969_v14 = vpack.c.bf16 %v5374_v10, %v5373_v9  ;;  %v5401_v4 = vld [vmem:[%s10261_s17 + $0x3d0] sm:$0xff]  ;;  %v5402_v6 = vld [vmem:[%s10261_s17 + $0x3d8] sm:$0xff]  ;;  %v4087_v10 = vld [vmem:[%s10261_s17 + $0x1e0] sm:$0xff] }
 0x63b   : > { %v3852_v46 = vsel %vm1023_vm5, %v3850_v20, %v3851_v22  ;;  %v3854_v27 = vsel %vm1023_vm5, %v3851_v22, %v3853_v13  ;;  %v3861_v40 = vsel %vm1201_vm6, %v3859_v32, %v3860_v7  ;;  %v3863_v24 = vsel %vm1201_vm6, %v3860_v7, %v3862_v61  ;;  %v5357_v13 = vld [vmem:[%s10261_s17 + $0x270] sm:$0xff]  ;;  %v5358_v61 = vld [vmem:[%s10261_s17 + $0x278] sm:$0xff]  ;;  %v9757_v20 = vld [vmem:[#allocation2 + $0x20] sm:$0xff] }
 0x63c   : > { %v3857_v33 = vmax.f32 %v3846_v19, %v3852_v46  ;;  %v3858_v52 = vmax.f32 %v3842_v17, %v3854_v27  ;;  %v5391_v17 = vld [vmem:[%s10261_s17 + $0x380] sm:$0xff]  ;;  %v5392_v19 = vld [vmem:[%s10261_s17 + $0x388] sm:$0xff]  ;;  %v6971_v22 = vpack.c.bf16 %v5358_v61, %v5357_v13  ;;  %v4177_v27 = vrot.slane %v9757_v20, 1  ;;  %v5386_v61 = vld [vmem:[%s10261_s17 + $0x358] sm:$0xff] }
 0x63d   : > { %v4091_v32 = vld [vmem:[#allocation2] sm:$0xfe]  ;;  %v6973_v7 = vpack.c.bf16 %v5392_v19, %v5391_v17  ;;  %v5376_v46 = vld [vmem:[%s10261_s17 + $0x308] sm:$0xff]  ;;  %v6993_v9 = vpack.c.bf16 %v5402_v6, %v5401_v4  ;;  %v4182_v4 = vrot.slane %v4093_v59, 1 }
 0x63e   : > { %v3866_v18 = vmax.f32 %v3857_v33, %v3861_v40  ;;  %v3867_v25 = vmax.f32 %v3858_v52, %v3863_v24  ;;  %v4096_v40 = vld [vmem:[#allocation2 + $0x48] sm:$0x1]  ;;  %v5393_v24 = vld [vmem:[%s10261_s17 + $0x390] sm:$0xff]  ;;  %v4176_v33 = vrot.slane %v4091_v32, 1  ;;  %v6975_v52 = vpack.c.bf16 %v5376_v46, %v5375_v21  ;;  %v4071_v17 = vld [vmem:[%s10261_s17 + $0x160] sm:$0xff] }
 0x63f   : > { %v4190_v34 = vrot.slane %v4096_v40, 1  ;;  %v6977_v38 = vpack.c.bf16 %v5394_v42, %v5393_v24  ;;  %v4072_v19 = vld [vmem:[%s10261_s17 + $0x168] sm:$0xff]  ;;  %v4089_v46 = vld [vmem:[%s10261_s17 + $0x1f0] sm:$0xff]  ;;  %v4090_v40 = vld [vmem:[%s10261_s17 + $0x1f8] sm:$0xff] }
 0x640   : > { %6164 = vmatprep.mubr.msk.f32.mxu0 %vm700_vm0, %v3866_v18  ;;  %v5378_v18 = vld [vmem:[%s10261_s17 + $0x318] sm:$0xff]  ;;  %v7063_v32 = vpack.c.bf16 %v4072_v19, %v4071_v17  ;;  %v5404_v21 = vld [vmem:[%s10261_s17 + $0x3e8] sm:$0xff]  ;;  %v5387_v24 = vld [vmem:[%s10261_s17 + $0x360] sm:$0xff] }
 0x641   : > { %6165 = vmatmul.mubr.msk.f32.vlgmr.msra.gmra.mrb[24].mxu0 %vm700_vm0, %v3867_v25  ;;  %v4178_v25 = vsel %vm1023_vm5, %v4176_v33, %v4177_v27  ;;  %v4191_v41 = vsel %vm1023_vm5, %v4180_v37, %v4190_v34  ;;  %v6979_v5 = vpack.c.bf16 %v5378_v18, %v5377_v39  ;;  %v5397_v37 = vld [vmem:[%s10261_s17 + $0x3b0] sm:$0xff]  ;;  %v5388_v42 = vld [vmem:[%s10261_s17 + $0x368] sm:$0xff]  ;;  %v4074_v34 = vld [vmem:[%s10261_s17 + $0x178] sm:$0xff]  ;;  %vm4774_vm0 = vcmask 261120  }
 0x642   : > { %6944 = vmatpush3.bf16.msra.mxu0 %v6943_v57  ;;  %4268 = vmatprep.mubr.f32.mxu0 %v4181_v8  ;;  %v4188_v57 = vrot.slane %v4095_v48, 1  ;;  %v5379_v8 = vld [vmem:[%s10261_s17 + $0x320] sm:$0xff]  ;;  %v6985_v53 = vpack.c.bf16 %v5398_v45, %v5397_v37  ;;  %v7065_v48 = vpack.c.bf16 %v4090_v40, %v4089_v46  ;;  %v6999_v33 = vpack.c.bf16 %v5388_v42, %v5387_v24  ;;  %v5406_v18 = vld [vmem:[%s10261_s17 + $0x3f8] sm:$0xff] }
 0x643   : > { %6946 = vmatprep.subr.bf16.mxu0 %v6945_v29  ;;  %v5395_v29 = vld [vmem:[%s10261_s17 + $0x3a0] sm:$0xff]  ;;  %v4030_v40 = vld [vmem:[%s10261_s17 + $0x18] sm:$0xff] }
 0x644   : > { %v6981_v36 = vpack.c.bf16 %v5396_v58, %v5395_v29  ;;  %v5456_v29 = vld [vmem:[%s10261_s17 + $0x588] sm:$0xff]  ;;  %v5389_v58 = vld [vmem:[%s10261_s17 + $0x370] sm:$0xff]  ;;  %v5443_v24 = vld [vmem:[%s10261_s17 + $0x520] sm:$0xff] }
 0x645   : > { %v5447_v59 = vld [vmem:[%s10261_s17 + $0x540] sm:$0xff] }
 0x646   : > { %6948 = vmatpush3.bf16.msra.mxu0 %v6947_v44  ;;  %v5380_v44 = vld [vmem:[%s10261_s17 + $0x328] sm:$0xff] }
 0x647   : > { %6950 = vmatprep.subr.bf16.mxu0 %v6949_v12  ;;  %v4189_v12 = vsel %vm1023_vm5, %v4177_v27, %v4188_v57  ;;  %v6983_v49 = vpack.c.bf16 %v5380_v44, %v5379_v8  ;;  %v5455_v57 = vld [vmem:[%s10261_s17 + $0x580] sm:$0xff]  ;;  %v4044_v44 = vld [vmem:[%s10261_s17 + $0x88] sm:$0xff] }
 0x648   : > { %v4043_v8 = vld [vmem:[%s10261_s17 + $0x80] sm:$0xff] }
 0x64a   : > { %6952 = vmatpush3.bf16.msra.mxu0 %v6951_v28  ;;  %v4084_v28 = vld [vmem:[%s10261_s17 + $0x1c8] sm:$0xff] }
 0x64b   : > { %6954 = vmatprep.subr.bf16.mxu0 %v6953_v47  ;;  %v5381_v47 = vld [vmem:[%s10261_s17 + $0x330] sm:$0xff]  ;;  %v7053_v50 = vpack.c.bf16 %v4084_v28, %v4083_v23 }
 0x64d   : > { %7054 = vmatprep.subr.bf16.mxu1 %v7053_v50 }
 0x64e   : > { %6956 = vmatpush3.bf16.msra.mxu0 %v6955_v30  ;;  %v6987_v30 = vpack.c.bf16 %v5382_v51, %v5381_v47 }
 0x64f   : > { %6958 = vmatprep.subr.bf16.mxu0 %v6957_v60  ;;  %v7055_v60 = vpack.c.bf16 %v4068_v55, %v4067_v54  ;;  %v5439_v55 = vld [vmem:[%s10261_s17 + $0x500] sm:$0xff] }
 0x651   : > { %7056 = vmatpush3.bf16.msra.mxu1 %v7055_v60  ;;  %v5457_v60 = vld [vmem:[%s10261_s17 + $0x590] sm:$0xff] }
 0x652   : > { %6960 = vmatpush3.bf16.msra.mxu0 %v6959_v0  ;;  %v4086_v0 = vld [vmem:[%s10261_s17 + $0x1d8] sm:$0xff] }
 0x653   : > { %6962 = vmatprep.subr.bf16.mxu0 %v6961_v43  ;;  %v5383_v43 = vld [vmem:[%s10261_s17 + $0x340] sm:$0xff]  ;;  %v7057_v16 = vpack.c.bf16 %v4086_v0, %v4085_v63  ;;  %v4028_v63 = vld [vmem:[%s10261_s17 + $0x8] sm:$0xff]  ;;  %v4021_v0 = vld [vmem:[#allocation2 + $0x10] sm:$0xff] }
 0x655   : > { %7058 = vmatprep.subr.bf16.mxu1 %v7057_v16  ;;  %v5441_v16 = vld [vmem:[%s10261_s17 + $0x510] sm:$0xff] }
 0x656   : > { %6964 = vmatpush3.bf16.msra.mxu0 %v6963_v15  ;;  %v6991_v15 = vpack.c.bf16 %v5384_v1, %v5383_v43  ;;  %v5442_v1 = vld [vmem:[%s10261_s17 + $0x518] sm:$0xff] }
 0x657   : > { %6966 = vmatprep.subr.bf16.mxu0 %v6965_v3  ;;  %v7059_v3 = vpack.c.bf16 %v4070_v56, %v4069_v2 }
 0x659   : > { %7060 = vmatpush3.bf16.msra.mxu1 %v7059_v3  ;;  %v7105_v3 = vpack.c.bf16 %v5458_v31, %v5457_v60  ;;  %v4033_v60 = vld [vmem:[%s10261_s17 + $0x30] sm:$0xff]  ;;  %v4034_v31 = vld [vmem:[%s10261_s17 + $0x38] sm:$0xff] }
 0x65a   : > { %6968 = vmatpush3.bf16.msra.mxu0 %v6967_v11  ;;  %v4088_v11 = vld [vmem:[%s10261_s17 + $0x1e8] sm:$0xff] }
 0x65b   : > { %6970 = vmatprep.subr.bf16.mxu0 %v6969_v14  ;;  %v5385_v14 = vld [vmem:[%s10261_s17 + $0x350] sm:$0xff]  ;;  %v7061_v13 = vpack.c.bf16 %v4088_v11, %v4087_v10 }
 0x65c   : > { %v4045_v11 = vld [vmem:[%s10261_s17 + $0x90] sm:$0xff] }
 0x65d   : > { %7062 = vmatprep.subr.bf16.mxu1 %v7061_v13  ;;  %v4097_v13 = vld [vmem:[#allocation2 + $0x50] sm:$0x1] }
 0x65e   : > { %6972 = vmatpush3.bf16.msra.mxu0 %v6971_v22  ;;  %v6995_v22 = vpack.c.bf16 %v5386_v61, %v5385_v14  ;;  %7064 = vmatpush3.bf16.msra.mxu1 %v7063_v32  ;;  %v4046_v14 = vld [vmem:[%s10261_s17 + $0x98] sm:$0xff]  ;;  %v4183_v61 = vrot.slane %v9641_v62, 1  ;;  %v5460_v32 = vld [vmem:[%s10261_s17 + $0x5a8] sm:$0xff] }
 0x65f   : > { %6974 = vmatprep.subr.bf16.mxu0 %v6973_v7  ;;  %v5403_v7 = vld [vmem:[%s10261_s17 + $0x3e0] sm:$0xff]  ;;  %7066 = vmatprep.subr.bf16.mxu1 %v7065_v48  ;;  %v7009_v48 = vpack.c.bf16 %v4046_v14, %v4045_v11  ;;  %v4053_v11 = vld [vmem:[%s10261_s17 + $0xd0] sm:$0xff]  ;;  %v4054_v14 = vld [vmem:[%s10261_s17 + $0xd8] sm:$0xff] }
 0x660   : > { %v6997_v27 = vpack.c.bf16 %v5404_v21, %v5403_v7  ;;  %v7107_v21 = vpack.c.bf16 %v5442_v1, %v5441_v16  ;;  %v4184_v42 = vsel %vm1023_vm5, %v4182_v4, %v4183_v61  ;;  %v5465_v16 = vld [vmem:[%s10261_s17 + $0x5d0] sm:$0xff]  ;;  %v5466_v1 = vld [vmem:[%s10261_s17 + $0x5d8] sm:$0xff]  ;;  %v4036_v4 = vld [vmem:[%s10261_s17 + $0x48] sm:$0xff] }
 0x661   : > { %4269 = vmatmul.mubr.f32.vlgmr.msra.gmra.mrb[26].mxu0 %v4178_v25 }
 0x662   : > { %4273 = vmatprep.mubr.f32.mxu0 %v4191_v41  ;;  %6976 = vmatpush3.bf16.msra.mxu0 %v6975_v52  ;;  %v4073_v52 = vld [vmem:[%s10261_s17 + $0x170] sm:$0xff]  ;;  %v7101_v41 = vpack.c.bf16 %v5456_v29, %v5455_v57  ;;  %v5462_v57 = vld [vmem:[%s10261_s17 + $0x5b8] sm:$0xff] }
 0x663   : > { %6978 = vmatprep.subr.bf16.mxu0 %v6977_v38  ;;  %v5405_v38 = vld [vmem:[%s10261_s17 + $0x3f0] sm:$0xff]  ;;  %v7067_v39 = vpack.c.bf16 %v4074_v34, %v4073_v52  ;;  %v5444_v52 = vld [vmem:[%s10261_s17 + $0x528] sm:$0xff]  ;;  %v4047_v34 = vld [vmem:[%s10261_s17 + $0xa0] sm:$0xff] }
 0x664   : > { %v7001_v25 = vpack.c.bf16 %v5406_v18, %v5405_v38  ;;  %v4048_v38 = vld [vmem:[%s10261_s17 + $0xa8] sm:$0xff] }
 0x665   : > { %4274 = vmatmul.mubr.f32.gmra.mrb[28].mxu0 %v4189_v12  ;;  %7068 = vmatpush3.bf16.msra.mxu1 %v7067_v39  ;;  %v7005_v12 = vpack.c.bf16 %v4044_v44, %v4043_v8  ;;  %v4031_v8 = vld [vmem:[%s10261_s17 + $0x20] sm:$0xff]  ;;  %v4032_v44 = vld [vmem:[%s10261_s17 + $0x28] sm:$0xff] }
 0x666   : > { %6980 = vmatpush3.bf16.msra.mxu0 %v6979_v5  ;;  %v5390_v5 = vld [vmem:[%s10261_s17 + $0x378] sm:$0xff]  ;;  %7102 = vmatprep.subr.bf16.mxu1 %v7101_v41 }
 0x667   : > { %6982 = vmatprep.subr.bf16.mxu0 %v6981_v36  ;;  %v7003_v36 = vpack.c.bf16 %v5390_v5, %v5389_v58  ;;  %v7111_v5 = vpack.c.bf16 %v5444_v52, %v5443_v24 }
 0x66a   : > { %6984 = vmatpush3.bf16.msra.mxu0 %v6983_v49  ;;  %v5340_v49 = vld [vmem:[%s10260_s16] ss:$0 sm:$0xff] }
 0x66b   : > { %6986 = vmatprep.subr.bf16.mxu0 %v6985_v53 }
 0x66e   : > { %6988 = vmatpush3.bf16.msra.mxu0 %v6987_v30  ;;  %v5440_v30 = vld [vmem:[%s10261_s17 + $0x508] sm:$0xff] }
 0x66f   : > { %6990 = vmatprep.subr.bf16.mxu0 %v6989_v26  ;;  %v4027_v26 = vld [vmem:[%s10261_s17] sm:$0xff]  ;;  %v7103_v43 = vpack.c.bf16 %v5440_v30, %v5439_v55 }
 0x670   : > { %v7007_v17 = vpack.c.bf16 %v4028_v63, %v4027_v26  ;;  %v5448_v63 = vld [vmem:[%s10261_s17 + $0x548] sm:$0xff] }
 0x672   : > { %6992 = vmatpush3.bf16.msra.mxu0 %v6991_v15 }
 0x673   : > { %6994 = vmatprep.subr.bf16.mxu0 %v6993_v9 }
 0x676   : > { %6996 = vmatpush3.bf16.msra.mxu0 %v6995_v22  ;;  %v5459_v22 = vld [vmem:[%s10261_s17 + $0x5a0] sm:$0xff] }
 0x677   : > { %6998 = vmatprep.subr.bf16.mxu0 %v6997_v27  ;;  %v4029_v27 = vld [vmem:[%s10261_s17 + $0x10] sm:$0xff]  ;;  %v7109_v18 = vpack.c.bf16 %v5460_v32, %v5459_v22 }
 0x678   : > { %v7011_v58 = vpack.c.bf16 %v4030_v40, %v4029_v27  ;;  %v4038_v27 = vld [vmem:[%s10261_s17 + $0x58] sm:$0xff]  ;;  %v5451_v40 = vld [vmem:[%s10261_s17 + $0x560] sm:$0xff] }
 0x67a   : > { %7000 = vmatpush3.bf16.msra.mxu0 %v6999_v33  ;;  %v4192_v33 = vrot.slane %v4097_v13, 1 }
 0x67b   : > { %7002 = vmatprep.subr.bf16.mxu0 %v7001_v25  ;;  %v5461_v25 = vld [vmem:[%s10261_s17 + $0x5b0] sm:$0xff] }
 0x67e   : > { %7004 = vmatpush3.bf16.msra.mxu0 %v7003_v36  ;;  %v7013_v36 = vpack.c.bf16 %v4048_v38, %v4047_v34  ;;  %v5469_v34 = vld [vmem:[%s10261_s17 + $0x5f0] sm:$0xff]  ;;  %v5470_v38 = vld [vmem:[%s10261_s17 + $0x5f8] sm:$0xff] }
 0x67f   : > { %7006 = vmatprep.subr.bf16.mxu0 %v7005_v12  ;;  %v5445_v12 = vld [vmem:[%s10261_s17 + $0x530] sm:$0xff] }
 0x714   : > { %v6166_v37 = vpop.f32.mrb[24].mxu0 }
 0x715   : > { %v3961_v45 = vadd.f32 %v6166_v37, %v5340_v49  ;;  %v3955_v53 = vpop.f32.mrb[25].mxu0  ;;  %v7113_v37 = vpack.c.bf16 %v5462_v57, %v5461_v25 }
 0x716   : > { %v3956_v23 = vadd.f32 %v5340_v49, %v3955_v53  ;;  %v4193_v49 = vsel %vm1023_vm5, %v4183_v61, %v4192_v33  ;;  %v4049_v53 = vld [vmem:[%s10261_s17 + $0xb0] sm:$0xff]  ;;  %v5467_v61 = vld [vmem:[%s10261_s17 + $0x5e0] sm:$0xff]  ;;  %v4056_v33 = vld [vmem:[%s10261_s17 + $0xe8] sm:$0xff] }
 0x717   : > { %v3965_v28 = vmax.f32 %v3961_v45, 0.0  ;;  %v5446_v45 = vld [vmem:[%s10261_s17 + $0x538] sm:$0xff] }
 0x718   : > { %v3964_v47 = vmax.f32 %v3956_v23, 0.0  ;;  %v4050_v23 = vld [vmem:[%s10261_s17 + $0xb8] sm:$0xff]  ;;  %v7115_v55 = vpack.c.bf16 %v5446_v45, %v5445_v12  ;;  %v4057_v12 = vld [vmem:[%s10261_s17 + $0xf0] sm:$0xff] }
 0x719   : > { %v4011_v50 = vrot.slane %v3965_v28, 7  ;;  %v4020_v28 = vld [vmem:[#allocation2 + $0x8] sm:$0xff]  ;;  %v7017_v30 = vpack.c.bf16 %v4050_v23, %v4049_v53  ;;  %v4506_v45 = vld [vmem:[#allocation2 + $0x10] sm:$0xfc] }
 0x71a   : > { %v4010_v51 = vrot.slane %v3964_v47, 7  ;;  %v5463_v47 = vld [vmem:[%s10261_s17 + $0x5c0] sm:$0xff] }
 0x71b   : > { %4018 = vst [vmem:[#allocation2 + $0x58] sm:$0x1] %v4011_v50 }
 0x71c   : > { %v9919_v54 = vsel %vm867_vm3, %v4010_v51, %v4011_v50  ;;  %4016 = vst [vmem:[#allocation2 + $0x18] sm:$0xfe] %v4010_v51  ;;  %v5464_v50 = vld [vmem:[%s10261_s17 + $0x5c8] sm:$0xff]  ;;  %v7015_v51 = vpack.c.bf16 %v4032_v44, %v4031_v8  ;;  %v7129_v8 = vpack.c.bf16 %v5470_v38, %v5469_v34  ;;  %v5454_v44 = vld [vmem:[%s10261_s17 + $0x578] sm:$0xff]  ;;  %v5415_v38 = vld [vmem:[%s10261_s17 + $0x440] sm:$0xff] }
 0x71d   : > { %v4186_v9 = vrot.slane %v9919_v54, 1  ;;  %v4595_v39 = vrot.slane %v9919_v54, 2  ;;  %v7117_v26 = vpack.c.bf16 %v5464_v50, %v5463_v47  ;;  %v4042_v47 = vld [vmem:[%s10261_s17 + $0x78] sm:$0xff] }
 0x722   : > { %v4098_v2 = vld [vmem:[#allocation2 + $0x58] sm:$0x1] }
 0x723   : > { %v4022_v56 = vld [vmem:[#allocation2 + $0x18] sm:$0xff]  ;;  %v4194_v19 = vrot.slane %v4098_v2, 1  ;;  %v7019_v2 = vpack.c.bf16 %v4034_v31, %v4033_v60 }
 0x724   : > { %v4094_v15 = vld [vmem:[#allocation2 + $0x18] sm:$0xfe]  ;;  %4493 = vmatprep.mubr.f32.mxu1 %v4022_v56  ;;  %v7119_v56 = vpack.c.bf16 %v5448_v63, %v5447_v59  ;;  %v4510_v59 = vld [vmem:[#allocation2 + $0x50] sm:$0x3] }
 0x725   : > { %v4507_v6 = vld [vmem:[#allocation2 + $0x18] sm:$0xfc]  ;;  %v4185_v10 = vrot.slane %v4094_v15, 1  ;;  %4494 = vmatmul.mubr.f32.vlgmr.msra.gmra.mrb[10].mxu1 %v4021_v0  ;;  %v4195_v29 = vsel %vm1023_vm5, %v4186_v9, %v4194_v19  ;;  %v4051_v0 = vld [vmem:[%s10261_s17 + $0xc0] sm:$0xff]  ;;  %v4511_v50 = vld [vmem:[#allocation2 + $0x58] sm:$0x3] }
 0x726   : > { %7104 = vmatpush3.bf16.msra.mxu1 %v7103_v43  ;;  %4498 = vmatprep.mubr.f32.mxu1 %v9919_v54  ;;  %v4594_v46 = vrot.slane %v4507_v6, 2  ;;  %v4052_v43 = vld [vmem:[%s10261_s17 + $0xc8] sm:$0xff]  ;;  %v5449_v6 = vld [vmem:[%s10261_s17 + $0x550] sm:$0xff]  ;;  %v4603_v31 = vrot.slane %v4511_v50, 2 }
 0x727   : > { %v4187_v7 = vsel %vm1023_vm5, %v4185_v10, %v4186_v9  ;;  %7106 = vmatprep.subr.bf16.mxu1 %v7105_v3  ;;  %v7021_v15 = vpack.c.bf16 %v4052_v43, %v4051_v0  ;;  %v4035_v3 = vld [vmem:[%s10261_s17 + $0x40] sm:$0xff]  ;;  %v7121_v9 = vpack.c.bf16 %v5466_v1, %v5465_v16  ;;  %v5450_v10 = vld [vmem:[%s10261_s17 + $0x558] sm:$0xff]  ;;  %v5408_v43 = vld [vmem:[%s10261_s17 + $0x408] sm:$0xff]  ;;  %v4601_v1 = vrot.slane %v4510_v59, 2 }
 0x728   : > { %4343 = vmatprep.mubr.f32.mxu0 %v4187_v7  ;;  %v4596_v41 = vsel %vm1201_vm6, %v4594_v46, %v4595_v39  ;;  %v7023_v22 = vpack.c.bf16 %v4036_v4, %v4035_v3  ;;  %v7123_v7 = vpack.c.bf16 %v5450_v10, %v5449_v6  ;;  %v4037_v46 = vld [vmem:[%s10261_s17 + $0x50] sm:$0xff]  ;;  %v5407_v0 = vld [vmem:[%s10261_s17 + $0x400] sm:$0xff]  ;;  %v5410_v10 = vld [vmem:[%s10261_s17 + $0x418] sm:$0xff] }
 0x729   : > { %4344 = vmatmul.mubr.f32.vlgmr.msra.gmra.mrb[30].mxu0 %v4184_v42  ;;  %4499 = vmatmul.mubr.f32.gmra.mrb[12].mxu1 %v9641_v62  ;;  %v5452_v42 = vld [vmem:[%s10261_s17 + $0x568] sm:$0xff]  ;;  %v7027_v25 = vpack.c.bf16 %v4038_v27, %v4037_v46  ;;  %v7071_v3 = vpack.c.bf16 %v5408_v43, %v5407_v0  ;;  %v4019_v4 = vld [vmem:[#allocation2] sm:$0xff]  ;;  %v5430_v46 = vld [vmem:[%s10261_s17 + $0x4b8] sm:$0xff] }
 0x72a   : > { %7008 = vmatpush3.bf16.msra.mxu0 %v7007_v17  ;;  %7108 = vmatpush3.bf16.msra.mxu1 %v7107_v21  ;;  %v5468_v17 = vld [vmem:[%s10261_s17 + $0x5e8] sm:$0xff]  ;;  %v7025_v21 = vpack.c.bf16 %v4054_v14, %v4053_v11  ;;  %v5427_v14 = vld [vmem:[%s10261_s17 + $0x4a0] sm:$0xff]  ;;  %v5421_v50 = vld [vmem:[%s10261_s17 + $0x470] sm:$0xff] }
 0x72b   : > { %4348 = vmatprep.mubr.f32.mxu0 %v4195_v29  ;;  %4752 = vmatprep.mubr.f32.mxu1 %v4596_v41  ;;  %v7125_v24 = vpack.c.bf16 %v5468_v17, %v5467_v61  ;;  %v7127_v29 = vpack.c.bf16 %v5452_v42, %v5451_v40  ;;  %v4039_v41 = vld [vmem:[%s10261_s17 + $0x60] sm:$0xff]  ;;  %v5414_v42 = vld [vmem:[%s10261_s17 + $0x438] sm:$0xff] }
 0x72c   : > { %7010 = vmatprep.subr.bf16.mxu0 %v7009_v48  ;;  %7110 = vmatprep.subr.bf16.mxu1 %v7109_v18  ;;  %v4055_v48 = vld [vmem:[%s10261_s17 + $0xe0] sm:$0xff] }
 0x72d   : > { %4349 = vmatmul.mubr.f32.gmra.mrb[32].mxu0 %v4193_v49  ;;  %v4058_v49 = vld [vmem:[%s10261_s17 + $0xf8] sm:$0xff]  ;;  %v4508_v59 = vld [vmem:[#allocation2 + $0x40] sm:$0x3] }
 0x72e   : > { %7012 = vmatpush3.bf16.msra.mxu0 %v7011_v58  ;;  %4418 = vmatprep.mubr.f32.mxu0 %v4020_v28  ;;  %v7029_v58 = vpack.c.bf16 %v4056_v33, %v4055_v48  ;;  %v7033_v23 = vpack.c.bf16 %v4058_v49, %v4057_v12  ;;  %v4041_v28 = vld [vmem:[%s10261_s17 + $0x70] sm:$0xff]  ;;  %v5431_v48 = vld [vmem:[%s10261_s17 + $0x4c0] sm:$0xff]  ;;  %v5432_v33 = vld [vmem:[%s10261_s17 + $0x4c8] sm:$0xff]  ;;  %v4597_v43 = vrot.slane %v4508_v59, 2 }
 0x72f   : > { %7112 = vmatpush3.bf16.msra.mxu1 %v7111_v5  ;;  %7014 = vmatprep.subr.bf16.mxu0 %v7013_v36  ;;  %v4040_v5 = vld [vmem:[%s10261_s17 + $0x68] sm:$0xff]  ;;  %v5453_v36 = vld [vmem:[%s10261_s17 + $0x570] sm:$0xff]  ;;  %v7035_v60 = vpack.c.bf16 %v4042_v47, %v4041_v28  ;;  %v7085_v34 = vpack.c.bf16 %v5432_v33, %v5431_v48 }
 0x730   : > { %7114 = vmatprep.subr.bf16.mxu1 %v7113_v37  ;;  %v7031_v37 = vpack.c.bf16 %v4040_v5, %v4039_v41  ;;  %v7131_v53 = vpack.c.bf16 %v5454_v44, %v5453_v36  ;;  %v5417_v5 = vld [vmem:[%s10261_s17 + $0x450] sm:$0xff]  ;;  %v5418_v36 = vld [vmem:[%s10261_s17 + $0x458] sm:$0xff]  ;;  %v5436_v44 = vld [vmem:[%s10261_s17 + $0x4e8] sm:$0xff] }
 0x731   : > { %v7091_v12 = vpack.c.bf16 %v5418_v36, %v5417_v5 }
 0x732   : > { %7016 = vmatpush3.bf16.msra.mxu0 %v7015_v51  ;;  %v5423_v51 = vld [vmem:[%s10261_s17 + $0x480] sm:$0xff] }
 0x733   : > { %7116 = vmatpush3.bf16.msra.mxu1 %v7115_v55  ;;  %7018 = vmatprep.subr.bf16.mxu0 %v7017_v30  ;;  %v5424_v55 = vld [vmem:[%s10261_s17 + $0x488] sm:$0xff]  ;;  %v4591_v30 = vrot.slane %v4506_v45, 2 }
 0x734   : > { %7118 = vmatprep.subr.bf16.mxu1 %v7117_v26  ;;  %v5665_v13 = vpop.f32.mrb[26].mxu0  ;;  %v4592_v26 = vrot.slane %v9641_v62, 2  ;;  %v7069_v63 = vpack.c.bf16 %v5424_v55, %v5423_v51  ;;  %v5426_v62 = vld [vmem:[%s10261_s17 + $0x498] sm:$0xff]  ;;  %v5420_v45 = vld [vmem:[%s10261_s17 + $0x468] sm:$0xff] }
 0x735   : > { %v5666_v19 = vpop.f32.mrb[27].mxu0  ;;  %v5422_v51 = vld [vmem:[%s10261_s17 + $0x478] sm:$0xff] }
 0x736   : > { %7020 = vmatpush3.bf16.msra.mxu0 %v7019_v2  ;;  %v10065_v32 = vadd.f32 %v5666_v19, %v5665_v13  ;;  %v4593_v16 = vsel %vm1201_vm6, %v4591_v30, %v4592_v26  ;;  %v5425_v2 = vld [vmem:[%s10261_s17 + $0x490] sm:$0xff]  ;;  %v4602_v11 = vsel %vm1201_vm6, %v4592_v26, %v4601_v1  ;;  %v5428_v13 = vld [vmem:[%s10261_s17 + $0x4a8] sm:$0xff]  ;;  %v5411_v19 = vld [vmem:[%s10261_s17 + $0x420] sm:$0xff]  ;;  %v7099_v55 = vpack.c.bf16 %v5422_v51, %v5421_v50 }
 0x737   : > { %7120 = vmatpush3.bf16.msra.mxu1 %v7119_v56  ;;  %7022 = vmatprep.subr.bf16.mxu0 %v7021_v15  ;;  %v4604_v56 = vsel %vm1201_vm6, %v4595_v39, %v4603_v31  ;;  %v4505_v15 = vld [vmem:[#allocation2 + $0x8] sm:$0xfc]  ;;  %v7073_v6 = vpack.c.bf16 %v5426_v62, %v5425_v2  ;;  %v4589_v39 = vrot.slane %v9649_v35, 2  ;;  %v7077_v17 = vpack.c.bf16 %v5428_v13, %v5427_v14  ;;  %v4504_v30 = vld [vmem:[#allocation2] sm:$0xfc] }
 0x738   : > { %7122 = vmatprep.subr.bf16.mxu1 %v7121_v9  ;;  %v5668_v52 = vpop.f32.mrb[28].mxu0  ;;  %v5409_v9 = vld [vmem:[%s10261_s17 + $0x410] sm:$0xff]  ;;  %v4588_v54 = vrot.slane %v4505_v15, 2  ;;  %v4509_v31 = vld [vmem:[#allocation2 + $0x48] sm:$0x3]  ;;  %v4585_v26 = vrot.slane %v4504_v30, 2 }
 0x739   : > { %v5669_v18 = vpop.f32.mrb[29].mxu0  ;;  %v7075_v61 = vpack.c.bf16 %v5410_v10, %v5409_v9 }
 0x73a   : > { %7024 = vmatpush3.bf16.msra.mxu0 %v7023_v22  ;;  %v10091_v57 = vadd.f32 %v5669_v18, %v5668_v52  ;;  %v5412_v22 = vld [vmem:[%s10261_s17 + $0x428] sm:$0xff] }
 0x73b   : > { %7124 = vmatpush3.bf16.msra.mxu1 %v7123_v7  ;;  %7026 = vmatprep.subr.bf16.mxu0 %v7025_v21  ;;  %v4590_v7 = vsel %vm1201_vm6, %v4588_v54, %v4589_v39  ;;  %v5429_v21 = vld [vmem:[%s10261_s17 + $0x4b0] sm:$0xff]  ;;  %v7079_v27 = vpack.c.bf16 %v5412_v22, %v5411_v19  ;;  %v5416_v18 = vld [vmem:[%s10261_s17 + $0x448] sm:$0xff] }
 0x73c   : > { %7126 = vmatprep.subr.bf16.mxu1 %v7125_v24  ;;  %v7081_v40 = vpack.c.bf16 %v5430_v46, %v5429_v21  ;;  %v5413_v24 = vld [vmem:[%s10261_s17 + $0x430] sm:$0xff] }
 0x73d   : > { %v7083_v52 = vpack.c.bf16 %v5414_v42, %v5413_v24 }
 0x73e   : > { %7028 = vmatpush3.bf16.msra.mxu0 %v7027_v25  ;;  %v5433_v25 = vld [vmem:[%s10261_s17 + $0x4d0] sm:$0xff] }
 0x73f   : > { %7128 = vmatpush3.bf16.msra.mxu1 %v7127_v29  ;;  %7030 = vmatprep.subr.bf16.mxu0 %v7029_v58  ;;  %v5434_v29 = vld [vmem:[%s10261_s17 + $0x4d8] sm:$0xff]  ;;  %v7087_v58 = vpack.c.bf16 %v5416_v18, %v5415_v38 }
 0x740   : > { %7130 = vmatprep.subr.bf16.mxu1 %v7129_v8  ;;  %v7089_v41 = vpack.c.bf16 %v5434_v29, %v5433_v25  ;;  %v5435_v8 = vld [vmem:[%s10261_s17 + $0x4e0] sm:$0xff] }
 0x741   : > { %v7093_v49 = vpack.c.bf16 %v5436_v44, %v5435_v8  ;;  %v5471_v25 = vld [vmem:[%s10262_s18] ss:$0 sm:$0xff] }
 0x742   : > { %7032 = vmatpush3.bf16.msra.mxu0 %v7031_v37  ;;  %v5419_v37 = vld [vmem:[%s10261_s17 + $0x460] sm:$0xff] }
 0x743   : > { %7132 = vmatpush3.bf16.msra.mxu1 %v7131_v53  ;;  %7034 = vmatprep.subr.bf16.mxu0 %v7033_v23  ;;  %v5437_v53 = vld [vmem:[%s10261_s17 + $0x4f0] sm:$0xff]  ;;  %v5438_v23 = vld [vmem:[%s10261_s17 + $0x4f8] sm:$0xff]  ;;  %v7095_v28 = vpack.c.bf16 %v5420_v45, %v5419_v37 }
 0x744   : > { %v7097_v47 = vpack.c.bf16 %v5438_v23, %v5437_v53 }
 0x746   : > { %4753 = vmatmul.mubr.f32.vlgmr.msra.gmra.mrb[14].mxu1 %v4593_v16  ;;  %7036 = vmatpush3.bf16.msra.mxu0 %v7035_v60  ;;  %v4586_v60 = vrot.slane %v9757_v20, 2 }
 0x747   : > { %4757 = vmatprep.mubr.f32.mxu1 %v4604_v56  ;;  %7070 = vmatprep.subr.bf16.mxu0 %v7069_v63  ;;  %v4599_v63 = vrot.slane %v4509_v31, 2 }
 0x748   : > { %v4587_v0 = vsel %vm1201_vm6, %v4585_v26, %v4586_v60  ;;  %v4598_v1 = vsel %vm1201_vm6, %v4586_v60, %v4597_v43 }
 0x749   : > { %4419 = vmatmul.mubr.f32.vlgmr.msra.gmra.mrb[34].mxu0 %v4019_v4  ;;  %v4600_v16 = vsel %vm1201_vm6, %v4589_v39, %v4599_v63 }
 0x74a   : > { %4758 = vmatmul.mubr.f32.gmra.mrb[16].mxu1 %v4602_v11  ;;  %4423 = vmatprep.mubr.f32.mxu0 %v9649_v35 }
 0x74b   : > { %7072 = vmatpush3.bf16.msra.mxu0 %v7071_v3 }
 0x74c   : > { %7074 = vmatprep.subr.bf16.mxu0 %v7073_v6 }
 0x74d   : > { %4424 = vmatmul.mubr.f32.gmra.mrb[36].mxu0 %v9757_v20 }
 0x74e   : > { %4677 = vmatprep.mubr.f32.mxu0 %v4590_v7 }
 0x74f   : > { %7076 = vmatpush3.bf16.msra.mxu0 %v7075_v61 }
 0x750   : > { %7078 = vmatprep.subr.bf16.mxu0 %v7077_v17 }
 0x753   : > { %7080 = vmatpush3.bf16.msra.mxu0 %v7079_v27 }
 0x754   : > { %7082 = vmatprep.subr.bf16.mxu0 %v7081_v40 }
 0x757   : > { %7084 = vmatpush3.bf16.msra.mxu0 %v7083_v52 }
 0x758   : > { %7086 = vmatprep.subr.bf16.mxu0 %v7085_v34 }
 0x75b   : > { %7088 = vmatpush3.bf16.msra.mxu0 %v7087_v58 }
 0x75c   : > { %7090 = vmatprep.subr.bf16.mxu0 %v7089_v41 }
 0x75f   : > { %7092 = vmatpush3.bf16.msra.mxu0 %v7091_v12 }
 0x760   : > { %7094 = vmatprep.subr.bf16.mxu0 %v7093_v49 }
 0x763   : > { %7096 = vmatpush3.bf16.msra.mxu0 %v7095_v28 }
 0x764   : > { %7098 = vmatprep.subr.bf16.mxu0 %v7097_v47 }
 0x767   : > { %7100 = vmatpush3.bf16.msra.mxu0 %v7099_v55 }
 0x76a   : > { %4678 = vmatmul.mubr.f32.vlgmr.msra.gmra.mrb[38].mxu0 %v4587_v0 }
 0x76b   : > { %4682 = vmatprep.mubr.f32.mxu0 %v4600_v16 }
 0x76e   : > { %4683 = vmatmul.mubr.f32.gmra.mrb[40].mxu0 %v4598_v1 }
 0x7f8   : > { %v5779_v2 = vpop.f32.mrb[10].mxu1 }
 0x7f9   : > { %v5780_v62 = vpop.f32.mrb[11].mxu1 }
 0x7fa   : > { %v5781_v20 = vadd.f32 %v5780_v62, %v5779_v2 }
 0x7fc   : > { %v5703_v56 = vpop.f32.mrb[30].mxu0  ;;  %v5782_v15 = vpop.f32.mrb[12].mxu1 }
 0x7fd   : > { %v5704_v3 = vpop.f32.mrb[31].mxu0  ;;  %v5783_v6 = vpop.f32.mrb[13].mxu1 }
 0x7fe   : > { %v5705_v4 = vadd.f32 %v5704_v3, %v5703_v56  ;;  %v5784_v9 = vadd.f32 %v5783_v6, %v5782_v15 }
 0x800   : > { %v4346_v10 = vadd.f32 %v5705_v4, %v10065_v32  ;;  %v5706_v11 = vpop.f32.mrb[32].mxu0 }
 0x801   : > { %v5707_v54 = vpop.f32.mrb[33].mxu0 }
 0x802   : > { %v5708_v35 = vadd.f32 %v5707_v54, %v5706_v11 }
 0x804   : > { %v4351_v39 = vadd.f32 %v5708_v35, %v10091_v57 }
 0x819   : > { %v5855_v14 = vpop.f32.mrb[14].mxu1 }
 0x81a   : > { %v5856_v13 = vpop.f32.mrb[15].mxu1 }
 0x81b   : > { %v5857_v61 = vadd.f32 %v5856_v13, %v5855_v14 }
 0x81c   : > { %v5741_v17 = vpop.f32.mrb[34].mxu0 }
 0x81d   : > { %v5858_v19 = vpop.f32.mrb[16].mxu1  ;;  %v5742_v22 = vpop.f32.mrb[35].mxu0 }
 0x81e   : > { %v5743_v7 = vadd.f32 %v5742_v22, %v5741_v17  ;;  %v5859_v21 = vpop.f32.mrb[17].mxu1 }
 0x81f   : > { %v5860_v46 = vadd.f32 %v5859_v21, %v5858_v19 }
 0x820   : > { %v4421_v27 = vadd.f32 %v5743_v7, %v4346_v10  ;;  %v5744_v40 = vpop.f32.mrb[36].mxu0 }
 0x821   : > { %v5745_v24 = vpop.f32.mrb[37].mxu0 }
 0x822   : > { %v4496_v42 = vadd.f32 %v5781_v20, %v4421_v27  ;;  %v5746_v32 = vadd.f32 %v5745_v24, %v5744_v40 }
 0x824   : > { %v4426_v48 = vadd.f32 %v5746_v32, %v4351_v39 }
 0x826   : > { %v4501_v33 = vadd.f32 %v5784_v9, %v4426_v48 }
 0x83d   : > { %v5817_v52 = vpop.f32.mrb[38].mxu0 }
 0x83e   : > { %v5818_v34 = vpop.f32.mrb[39].mxu0 }
 0x83f   : > { %v5819_v57 = vadd.f32 %v5818_v34, %v5817_v52 }
 0x841   : > { %v4755_v38 = vadd.f32 %v5857_v61, %v5819_v57  ;;  %v5820_v18 = vpop.f32.mrb[40].mxu0 }
 0x842   : > { %v5821_v29 = vpop.f32.mrb[41].mxu0 }
 0x843   : > { %v4763_v58 = vadd.f32 %v4755_v38, %v4496_v42  ;;  %v5822_v41 = vadd.f32 %v5821_v29, %v5820_v18 }
 0x845   : > { %v4772_v5 = vadd.f32 %v5471_v25, %v4763_v58  ;;  %v4760_v36 = vadd.f32 %v5860_v46, %v5822_v41 }
 0x847   : > { %4775 = vst.msk [vmem:[%s656_s3] sm:$0xff] %vm4774_vm0, %v4772_v5  ;;  %v4764_v8 = vadd.f32 %v4760_v36, %v4501_v33 }
 0x849   : > { %v4773_v44 = vadd.f32 %v5471_v25, %v4764_v8 }
 0x84b   : > { %4776 = vst.msk [vmem:[%s656_s3 + $0x8] sm:$0xff] %vm4774_vm0, %v4773_v44 }
 0x84c PF: > { %s31_s2 = sadd.s32 1, %s7212_s2  }
 0x84d   : > { %p28_p4 = scmp.ge.s32.totalorder %s31_s2, 4  }
 0x84f   :  { %30 = sbr.rel (!%p28_p4) target bundleno = 7 (0x7), region = 155 }

</bundles_post_ra>
